<compile_context>
chip_gen: v5e
topology: v5e:2x2
jax: 0.10.0
libtpu: 0.0.40
codegen_flags: <defaults>
</compile_context>

<pallas_src>
import functools

import jax
import jax.numpy as jnp
from jax import lax
from jax.experimental import pallas as pl
from jax.experimental.pallas import tpu as pltpu


# ----------------------------------------------------------------------------
# Fused bottleneck kernel (one grid step = one (image, row-tile))
# ----------------------------------------------------------------------------
def _bottleneck_kernel(x_ref, xt_ref, xb_ref,
                       w1_ref, w2_ref, w3_ref,
                       s1_ref, b1_ref, s2_ref, b2_ref, s3_ref, b3_ref,
                       o_ref, t1p_ref, *, rc):
    # x_ref  : (TH, W, Cin)      bf16  input row-tile (also the residual)
    # xt_ref : (1,  W, Cin)      bf16  row above the tile (clamped at border)
    # xb_ref : (1,  W, Cin)      bf16  row below the tile (clamped at border)
    # w1     : (Cin, Cmid)       bf16  1x1 conv
    # w2     : (3, 3, Cmid, Cmid) bf16 3x3 conv (HWIO)
    # w3     : (Cmid, Cout)      bf16  1x1 conv
    # s*/b*  : (1, C) f32        folded BatchNorm scale / bias
    # o_ref  : (TH, W, Cout)     bf16  output row-tile
    # t1p_ref: (TH+2, W, Cmid)   bf16  conv1 output + 1 halo row above/below
    TH, W, Cin = x_ref.shape
    Cmid = w1_ref.shape[1]
    Cout = w3_ref.shape[1]
    h = pl.program_id(1)
    nh = pl.num_programs(1)
    n_chunks = TH // rc

    def conv1_bn_relu(x2d):                 # (M, Cin) bf16 -> (M, Cmid) bf16
        y = jnp.dot(x2d, w1_ref[...], preferred_element_type=jnp.float32)
        return jnp.maximum(y * s1_ref[...] + b1_ref[...], 0.0).astype(t1p_ref.dtype)

    def run_chunks(chunk_fn):
        # Static unroll for few chunks (scheduler freedom); scf.for otherwise
        # so production shapes (many chunks) don't blow up code size.
        if n_chunks <= 8:
            for c in range(n_chunks):
                chunk_fn(c * rc)
        else:
            pl.loop(0, n_chunks)(lambda c: chunk_fn(c * rc))

    # ---- phase 1: conv1 (1x1) + BN + ReLU into the scratch -------------------
    # Every interior row is fully overwritten -> no scratch zero-fill needed.
    def conv1_chunk(r0):
        xc = x_ref[pl.ds(r0, rc)].reshape(rc * W, Cin)
        t1p_ref[pl.ds(r0 + 1, rc)] = conv1_bn_relu(xc).reshape(rc, W, Cmid)

    run_chunks(conv1_chunk)

    # Halo rows: only compute conv1 when the neighbouring image row exists.
    # At the image border conv2's zero padding of its input is exactly zero.
    @pl.when(h > 0)
    def _():
        t1p_ref[0] = conv1_bn_relu(xt_ref[0])

    @pl.when(h == 0)
    def _():
        t1p_ref[0] = jnp.zeros((W, Cmid), t1p_ref.dtype)

    @pl.when(h + 1 < nh)
    def _():
        t1p_ref[TH + 1] = conv1_bn_relu(xb_ref[0])

    @pl.when(h + 1 == nh)
    def _():
        t1p_ref[TH + 1] = jnp.zeros((W, Cmid), t1p_ref.dtype)

    # ---- phase 2+3: conv2 (3x3) + BN + ReLU, conv3 (1x1) + BN + add + ReLU ---
    zcol = jnp.zeros((rc, 1, Cmid), jnp.float32)   # hoisted, reused by all chunks

    def conv23_chunk(r0):
        acc = jnp.zeros((rc, W, Cmid), jnp.float32)
        for kh in range(3):
            # One ALIGNED scratch load per kh (full width).  The +/-1 column
            # shifts of the 3x3 stencil are applied to the f32 MXU products,
            # so no sublane-misaligned VMEM access (load or store) happens.
            rows = t1p_ref[pl.ds(r0 + kh, rc)]           # (rc, W, Cmid) bf16
            rows2d = rows.reshape(rc * W, Cmid)
            # centre tap: out[:, w] += t1[:, w] @ w2[kh, 1]
            acc = acc + jnp.dot(rows2d, w2_ref[kh, 1],
                                preferred_element_type=jnp.float32
                                ).reshape(rc, W, Cmid)
            # left-neighbour tap: out[:, w] += t1[:, w-1] @ w2[kh, 0]
            p = jnp.dot(rows2d, w2_ref[kh, 0],
                        preferred_element_type=jnp.float32).reshape(rc, W, Cmid)
            acc = acc + jnp.concatenate([zcol, p[:, :W - 1, :]], axis=1)
            # right-neighbour tap: out[:, w] += t1[:, w+1] @ w2[kh, 2]
            p = jnp.dot(rows2d, w2_ref[kh, 2],
                        preferred_element_type=jnp.float32).reshape(rc, W, Cmid)
            acc = acc + jnp.concatenate([p[:, 1:, :], zcol], axis=1)

        t2 = jnp.maximum(acc.reshape(rc * W, Cmid) * s2_ref[...] + b2_ref[...],
                         0.0).astype(jnp.bfloat16)
        y = jnp.dot(t2, w3_ref[...], preferred_element_type=jnp.float32)
        y = y * s3_ref[...] + b3_ref[...]
        y = y + x_ref[pl.ds(r0, rc)].reshape(rc * W, Cin).astype(jnp.float32)
        o_ref[pl.ds(r0, rc)] = jnp.maximum(y, 0.0).reshape(rc, W, Cout
                                                           ).astype(o_ref.dtype)

    run_chunks(conv23_chunk)


# ----------------------------------------------------------------------------
# VMEM policy and tiling selection (generation-aware)
# ----------------------------------------------------------------------------
def _vmem_policy():
    """Returns (tile-selection budget, Mosaic scoped-VMEM limit) in bytes."""
    try:
        cap = int(pltpu.get_tpu_info().vmem_capacity_bytes)
    except Exception:
        cap = 64 * 1024 * 1024            # conservative default (v7x per-TC VMEM)
    budget = int(cap * 0.6)               # ~38 MiB on v7x, ~76 MiB on v5e/v6e
    limit = min(cap, budget + (16 << 20))  # headroom for compiler temporaries
    return budget, limit


def _divisors_desc(n):
    return [d for d in range(n, 0, -1) if n % d == 0]


def _tile_footprint_bytes(th, W, cin, cmid, cout):
    blk_in = th * W * cin * 2              # bf16 input tile
    halo = 2 * W * cin * 2                 # two 1-row halo blocks
    blk_out = th * W * cout * 2            # bf16 output tile
    scratch = (th + 2) * W * cmid * 2      # conv1 scratch (bf16, no col padding)
    weights = (cin * cmid + 9 * cmid * cmid + cmid * cout) * 2
    bn = (4 * cmid + 2 * cout) * 4
    # streamed blocks double-buffered; weights counted twice to be safe;
    # + 2 MiB headroom for compiler temporaries.
    return 2 * (blk_in + halo + blk_out) + scratch + 2 * (weights + bn) + (2 << 20)


def _pick_tile_h(N, H, W, cin, cmid, cout, budget):
    divs = _divisors_desc(H)
    fits = [t for t in divs if _tile_footprint_bytes(t, W, cin, cmid, cout) <= budget]
    if not fits:
        return divs[-1]
    if N * (H // fits[0]) >= 2:            # keep >= 2 grid steps (v7x megacore)
        return fits[0]
    for th in fits:
        if N * (H // th) >= 2:
            return th
    return fits[0]


def _pick_chunk_rows(TH, W, target_m=128):
    rc = 1
    for cand in range(1, TH + 1):
        if TH % cand == 0 and cand * W <= max(W, target_m):
            rc = cand
    return rc


# ----------------------------------------------------------------------------
# Forward wrapper (accepts NCHW like the PyTorch module)
# ----------------------------------------------------------------------------
def bottleneck_forward(x_nchw, p, tile_h=None, chunk_m=128, out_dtype=jnp.bfloat16):
    N, C, H, W = x_nchw.shape
    Cin, Cmid = p["w1"].shape
    Cout = p["w3"].shape[1]
    assert C == Cin and Cin == Cout, "downsample=None requires inplanes == planes*4"
    # TODO(synk): stride=2 / downsample variants of Bottleneck are not covered.

    budget, vmem_limit = _vmem_policy()
    TH = tile_h if tile_h is not None else _pick_tile_h(N, H, W, Cin, Cmid, Cout, budget)
    assert H % TH == 0
    nh = H // TH
    rc = _pick_chunk_rows(TH, W, chunk_m)

    x = jnp.transpose(x_nchw, (0, 2, 3, 1)).astype(jnp.bfloat16)   # NHWC bf16
    w1 = p["w1"].astype(jnp.bfloat16)
    w2 = p["w2"].astype(jnp.bfloat16)
    w3 = p["w3"].astype(jnp.bfloat16)

    flops = 2 * N * H * W * (Cin * Cmid + 9 * Cmid * Cmid + Cmid * Cout)
    bytes_accessed = (N * H * W * (Cin + Cout) * 2
                      + (Cin * Cmid + 9 * Cmid * Cmid + Cmid * Cout) * 2
                      + (4 * Cmid + 2 * Cout) * 4)

    const2 = lambda n, h: (0, 0)
    kernel = functools.partial(_bottleneck_kernel, rc=rc)

    out = pl.pallas_call(
        kernel,
        out_shape=jax.ShapeDtypeStruct((N, H, W, Cout), out_dtype),
        grid_spec=pltpu.PrefetchScalarGridSpec(
            num_scalar_prefetch=0,
            grid=(N, nh),
            in_specs=[
                # main row-tile of x (conv1 input + residual identity)
                pl.BlockSpec((None, TH, W, Cin), lambda n, h: (n, h, 0, 0)),
                # halo row above / below the tile.  NOTE: the H block size is 1,
                # so the returned block index IS the element row index — do not
                # widen these blocks without rewriting the index maps.
                pl.BlockSpec((None, 1, W, Cin),
                             lambda n, h: (n, jnp.maximum(h * TH - 1, 0), 0, 0)),
                pl.BlockSpec((None, 1, W, Cin),
                             lambda n, h: (n, jnp.minimum(h * TH + TH, H - 1), 0, 0)),
                # weights + folded BN params: constant index maps => VMEM-resident
                pl.BlockSpec((Cin, Cmid), const2),
                pl.BlockSpec((3, 3, Cmid, Cmid), lambda n, h: (0, 0, 0, 0)),
                pl.BlockSpec((Cmid, Cout), const2),
                pl.BlockSpec((1, Cmid), const2),
                pl.BlockSpec((1, Cmid), const2),
                pl.BlockSpec((1, Cmid), const2),
                pl.BlockSpec((1, Cmid), const2),
                pl.BlockSpec((1, Cout), const2),
                pl.BlockSpec((1, Cout), const2),
            ],
            out_specs=pl.BlockSpec((None, TH, W, Cout), lambda n, h: (n, h, 0, 0)),
            scratch_shapes=[pltpu.VMEM((TH + 2, W, Cmid), jnp.bfloat16)],
        ),
        compiler_params=pltpu.CompilerParams(
            dimension_semantics=("parallel", "parallel"),
            vmem_limit_bytes=vmem_limit),
        cost_estimate=pl.CostEstimate(flops=flops, transcendentals=0,
                                      bytes_accessed=bytes_accessed),
    )(x, x, x, w1, w2, w3,
      p["s1"], p["b1"], p["s2"], p["b2"], p["s3"], p["b3"])

    return jnp.transpose(out, (0, 3, 1, 2))   # -> NCHW (bf16)


# ----------------------------------------------------------------------------
# Parameters (shapes match the nn.Module; BN folded to inference scale/bias)
# ----------------------------------------------------------------------------
def make_bottleneck_params(key, inplanes, planes, base_width=64, groups=1,
                           eps=1e-5):
    expansion = 4
    width = int(planes * (base_width / 64.0)) * groups
    cout = planes * expansion
    ks = jax.random.split(key, 6)

    w1 = 0.1 * jax.random.normal(ks[0], (inplanes, width), jnp.float32)      # 1x1
    w2 = 0.1 * jax.random.normal(ks[1], (3, 3, width, width), jnp.float32)   # HWIO
    w3 = 0.1 * jax.random.normal(ks[2], (width, cout), jnp.float32)          # 1x1

    def bn(k, c):
        kg, kb, km, kv = jax.random.split(k, 4)
        gamma = 1.0 + 0.1 * jax.random.normal(kg, (c,), jnp.float32)
        beta = 0.1 * jax.random.normal(kb, (c,), jnp.float32)
        mean = 0.1 * jax.random.normal(km, (c,), jnp.float32)
        var = jnp.abs(jax.random.normal(kv, (c,), jnp.float32)) + 0.5
        scale = gamma / jnp.sqrt(var + eps)
        bias = beta - mean * scale
        return scale[None, :], bias[None, :]

    s1, b1 = bn(ks[3], width)
    s2, b2 = bn(ks[4], width)
    s3, b3 = bn(ks[5], cout)
    return dict(w1=w1, w2=w2, w3=w3,
                s1=s1, b1=b1, s2=s2, b2=b2, s3=s3, b3=b3)


# ----------------------------------------------------------------------------
# Pure-JAX reference (mirrors the bf16 cast points of the kernel)
# ----------------------------------------------------------------------------
def bottleneck_reference(x_nchw, p):
    x = jnp.transpose(x_nchw, (0, 2, 3, 1)).astype(jnp.bfloat16).astype(jnp.float32)
    w1 = p["w1"].astype(jnp.bfloat16).astype(jnp.float32)
    w2 = p["w2"].astype(jnp.bfloat16).astype(jnp.float32)
    w3 = p["w3"].astype(jnp.bfloat16).astype(jnp.float32)

    t1 = jnp.maximum(jnp.einsum("nhwc,cd->nhwd", x, w1) * p["s1"][0]
                     + p["b1"][0], 0.0)
    t1 = t1.astype(jnp.bfloat16).astype(jnp.float32)
    t2 = lax.conv_general_dilated(
        t1, w2, window_strides=(1, 1), padding=((1, 1), (1, 1)),
        dimension_numbers=("NHWC", "HWIO", "NHWC"))
    t2 = jnp.maximum(t2 * p["s2"][0] + p["b2"][0], 0.0)
    t2 = t2.astype(jnp.bfloat16).astype(jnp.float32)
    out = jnp.einsum("nhwc,cd->nhwd", t2, w3) * p["s3"][0] + p["b3"][0]
    out = jnp.maximum(out + x, 0.0)
    return jnp.transpose(out, (0, 3, 1, 2))


if __name__ == "__main__":
    key = jax.random.PRNGKey(0)
    k_x, k_p = jax.random.split(key)

    # Small but TPU-friendly shapes: planes=32 -> width=32, inplanes=cout=128
    # (identity path requires inplanes == planes * expansion = 4 * planes).
    N, planes, H, W = 2, 32, 16, 16
    inplanes = planes * 4
    x = jax.random.normal(k_x, (N, inplanes, H, W), jnp.float32)
    params = make_bottleneck_params(k_p, inplanes, planes)

    fwd = jax.jit(bottleneck_forward)
    out = jax.block_until_ready(fwd(x, params))

    ref = bottleneck_reference(x, params)
    assert out.shape == (N, inplanes, H, W)
    out_f32 = out.astype(jnp.float32)
    ref_b16 = ref.astype(jnp.bfloat16).astype(jnp.float32)
    max_err = float(jnp.max(jnp.abs(out_f32 - ref_b16)))
    assert jnp.allclose(out_f32, ref_b16, rtol=2e-2, atol=2e-2), (
        f"mismatch vs reference: max abs err {max_err}")

    print("KERNEL_OK")
</pallas_src>

<mosaic_0001>
module attributes {stable_mosaic.version = 11 : i64} {
  func.func @_bottleneck_kernel(%arg0: i32, %arg1: i32, %arg2: memref<1x16x16x128xbf16, #tpu.memory_space<vmem>>, %arg3: memref<1x1x16x128xbf16, #tpu.memory_space<vmem>>, %arg4: memref<1x1x16x128xbf16, #tpu.memory_space<vmem>>, %arg5: memref<128x32xbf16, #tpu.memory_space<vmem>>, %arg6: memref<3x3x32x32xbf16, #tpu.memory_space<vmem>>, %arg7: memref<32x128xbf16, #tpu.memory_space<vmem>>, %arg8: memref<1x32xf32, #tpu.memory_space<vmem>>, %arg9: memref<1x32xf32, #tpu.memory_space<vmem>>, %arg10: memref<1x32xf32, #tpu.memory_space<vmem>>, %arg11: memref<1x32xf32, #tpu.memory_space<vmem>>, %arg12: memref<1x128xf32, #tpu.memory_space<vmem>>, %arg13: memref<1x128xf32, #tpu.memory_space<vmem>>, %arg14: memref<1x16x16x128xbf16, #tpu.memory_space<vmem>>, %arg15: memref<18x16x32xbf16, #tpu.memory_space<vmem>>) attributes {dimension_semantics = [#tpu.dimension_semantics<parallel>, #tpu.dimension_semantics<parallel>], iteration_bounds = array<i64: 2, 1>, scalar_prefetch = 0 : i64, scratch_operands = 1 : i64, tpu.core_type = #tpu.core_type<tc>, window_params = [{transform_indices = @transform_0, window_bounds = array<i64: 1, 16, 16, 128>}, {transform_indices = @transform_1, window_bounds = array<i64: 1, 1, 16, 128>}, {transform_indices = @transform_2, window_bounds = array<i64: 1, 1, 16, 128>}, {pipeline_mode = #tpu.pipeline_mode<synchronous>, transform_indices = @transform_3, window_bounds = array<i64: 128, 32>}, {pipeline_mode = #tpu.pipeline_mode<synchronous>, transform_indices = @transform_4, window_bounds = array<i64: 3, 3, 32, 32>}, {pipeline_mode = #tpu.pipeline_mode<synchronous>, transform_indices = @transform_5, window_bounds = array<i64: 32, 128>}, {pipeline_mode = #tpu.pipeline_mode<synchronous>, transform_indices = @transform_6, window_bounds = array<i64: 1, 32>}, {pipeline_mode = #tpu.pipeline_mode<synchronous>, transform_indices = @transform_7, window_bounds = array<i64: 1, 32>}, {pipeline_mode = #tpu.pipeline_mode<synchronous>, transform_indices = @transform_8, window_bounds = array<i64: 1, 32>}, {pipeline_mode = #tpu.pipeline_mode<synchronous>, transform_indices = @transform_9, window_bounds = array<i64: 1, 32>}, {pipeline_mode = #tpu.pipeline_mode<synchronous>, transform_indices = @transform_10, window_bounds = array<i64: 1, 128>}, {pipeline_mode = #tpu.pipeline_mode<synchronous>, transform_indices = @transform_11, window_bounds = array<i64: 1, 128>}, {transform_indices = @transform_12, window_bounds = array<i64: 1, 16, 16, 128>}]} {
    %c0 = arith.constant 0 : index
    %c0_0 = arith.constant 0 : index
    %c0_1 = arith.constant 0 : index
    %c0_2 = arith.constant 0 : index
    %0 = vector.load %arg2[%c0, %c0_0, %c0_1, %c0_2] : memref<1x16x16x128xbf16, #tpu.memory_space<vmem>>, vector<1x8x16x128xbf16>
    %1 = vector.shape_cast %0 : vector<1x8x16x128xbf16> to vector<8x16x128xbf16>
    %2 = vector.shape_cast %1 : vector<8x16x128xbf16> to vector<128x128xbf16>
    %c0_3 = arith.constant 0 : index
    %c0_4 = arith.constant 0 : index
    %3 = vector.load %arg5[%c0_3, %c0_4] : memref<128x32xbf16, #tpu.memory_space<vmem>>, vector<128x32xbf16>
    %cst = arith.constant dense<0.000000e+00> : vector<128x32xf32>
    %4 = tpu.matmul %2, %3, %cst {dimension_numbers = #tpu.dot_dimension_numbers<[1], [0], [0], [1], [0, 0, 1, 1], [], []>} : vector<128x128xbf16>, vector<128x32xbf16>, vector<128x32xf32> -> vector<128x32xf32>
    %c0_5 = arith.constant 0 : index
    %c0_6 = arith.constant 0 : index
    %5 = vector.load %arg8[%c0_5, %c0_6] : memref<1x32xf32, #tpu.memory_space<vmem>>, vector<1x32xf32>
    %6 = vector.broadcast %5 : vector<1x32xf32> to vector<128x32xf32>
    %7 = arith.mulf %4, %6 : vector<128x32xf32>
    %c0_7 = arith.constant 0 : index
    %c0_8 = arith.constant 0 : index
    %8 = vector.load %arg9[%c0_7, %c0_8] : memref<1x32xf32, #tpu.memory_space<vmem>>, vector<1x32xf32>
    %9 = vector.broadcast %8 : vector<1x32xf32> to vector<128x32xf32>
    %10 = arith.addf %7, %9 : vector<128x32xf32>
    %cst_9 = arith.constant 0.000000e+00 : f32
    %11 = vector.broadcast %cst_9 : f32 to vector<128x32xf32>
    %12 = arith.maximumf %10, %11 : vector<128x32xf32>
    %13 = arith.truncf %12 : vector<128x32xf32> to vector<128x32xbf16>
    %14 = vector.shape_cast %13 : vector<128x32xbf16> to vector<8x16x32xbf16>
    %c1 = arith.constant 1 : index
    %c0_10 = arith.constant 0 : index
    %c0_11 = arith.constant 0 : index
    %15 = vector.load %arg15[%c1, %c0_10, %c0_11] : memref<18x16x32xbf16, #tpu.memory_space<vmem>>, vector<8x16x32xbf16>
    tpu.vector_store %arg15[%c1, %c0_10, %c0_11], %14 {strides = array<i32>} : memref<18x16x32xbf16, #tpu.memory_space<vmem>>, vector<8x16x32xbf16>,
    %c0_12 = arith.constant 0 : index
    %c8 = arith.constant 8 : index
    %c0_13 = arith.constant 0 : index
    %c0_14 = arith.constant 0 : index
    %16 = vector.load %arg2[%c0_12, %c8, %c0_13, %c0_14] : memref<1x16x16x128xbf16, #tpu.memory_space<vmem>>, vector<1x8x16x128xbf16>
    %17 = vector.shape_cast %16 : vector<1x8x16x128xbf16> to vector<8x16x128xbf16>
    %18 = vector.shape_cast %17 : vector<8x16x128xbf16> to vector<128x128xbf16>
    %c0_15 = arith.constant 0 : index
    %c0_16 = arith.constant 0 : index
    %19 = vector.load %arg5[%c0_15, %c0_16] : memref<128x32xbf16, #tpu.memory_space<vmem>>, vector<128x32xbf16>
    %cst_17 = arith.constant dense<0.000000e+00> : vector<128x32xf32>
    %20 = tpu.matmul %18, %19, %cst_17 {dimension_numbers = #tpu.dot_dimension_numbers<[1], [0], [0], [1], [0, 0, 1, 1], [], []>} : vector<128x128xbf16>, vector<128x32xbf16>, vector<128x32xf32> -> vector<128x32xf32>
    %c0_18 = arith.constant 0 : index
    %c0_19 = arith.constant 0 : index
    %21 = vector.load %arg8[%c0_18, %c0_19] : memref<1x32xf32, #tpu.memory_space<vmem>>, vector<1x32xf32>
    %22 = vector.broadcast %21 : vector<1x32xf32> to vector<128x32xf32>
    %23 = arith.mulf %20, %22 : vector<128x32xf32>
    %c0_20 = arith.constant 0 : index
    %c0_21 = arith.constant 0 : index
    %24 = vector.load %arg9[%c0_20, %c0_21] : memref<1x32xf32, #tpu.memory_space<vmem>>, vector<1x32xf32>
    %25 = vector.broadcast %24 : vector<1x32xf32> to vector<128x32xf32>
    %26 = arith.addf %23, %25 : vector<128x32xf32>
    %cst_22 = arith.constant 0.000000e+00 : f32
    %27 = vector.broadcast %cst_22 : f32 to vector<128x32xf32>
    %28 = arith.maximumf %26, %27 : vector<128x32xf32>
    %29 = arith.truncf %28 : vector<128x32xf32> to vector<128x32xbf16>
    %30 = vector.shape_cast %29 : vector<128x32xbf16> to vector<8x16x32xbf16>
    %c9 = arith.constant 9 : index
    %c0_23 = arith.constant 0 : index
    %c0_24 = arith.constant 0 : index
    %31 = vector.load %arg15[%c9, %c0_23, %c0_24] : memref<18x16x32xbf16, #tpu.memory_space<vmem>>, vector<8x16x32xbf16>
    tpu.vector_store %arg15[%c9, %c0_23, %c0_24], %30 {strides = array<i32>} : memref<18x16x32xbf16, #tpu.memory_space<vmem>>, vector<8x16x32xbf16>,
    %c0_i32 = arith.constant 0 : i32
    %32 = arith.cmpi sgt, %arg1, %c0_i32 : i32
    %33 = arith.extui %32 : i1 to i32
    %c0_i32_25 = arith.constant 0 : i32
    %34 = arith.cmpi ne, %33, %c0_i32_25 : i32
    scf.if %34 {
      %c0_184 = arith.constant 0 : index
      %c0_185 = arith.constant 0 : index
      %c0_186 = arith.constant 0 : index
      %c0_187 = arith.constant 0 : index
      %235 = vector.load %arg3[%c0_184, %c0_185, %c0_186, %c0_187] : memref<1x1x16x128xbf16, #tpu.memory_space<vmem>>, vector<1x1x16x128xbf16>
      %236 = vector.shape_cast %235 : vector<1x1x16x128xbf16> to vector<16x128xbf16>
      %c0_188 = arith.constant 0 : index
      %c0_189 = arith.constant 0 : index
      %237 = vector.load %arg5[%c0_188, %c0_189] : memref<128x32xbf16, #tpu.memory_space<vmem>>, vector<128x32xbf16>
      %cst_190 = arith.constant dense<0.000000e+00> : vector<16x32xf32>
      %238 = tpu.matmul %236, %237, %cst_190 {dimension_numbers = #tpu.dot_dimension_numbers<[1], [0], [0], [1], [0, 0, 1, 1], [], []>} : vector<16x128xbf16>, vector<128x32xbf16>, vector<16x32xf32> -> vector<16x32xf32>
      %c0_191 = arith.constant 0 : index
      %c0_192 = arith.constant 0 : index
      %239 = vector.load %arg8[%c0_191, %c0_192] : memref<1x32xf32, #tpu.memory_space<vmem>>, vector<1x32xf32>
      %240 = vector.broadcast %239 : vector<1x32xf32> to vector<16x32xf32>
      %241 = arith.mulf %238, %240 : vector<16x32xf32>
      %c0_193 = arith.constant 0 : index
      %c0_194 = arith.constant 0 : index
      %242 = vector.load %arg9[%c0_193, %c0_194] : memref<1x32xf32, #tpu.memory_space<vmem>>, vector<1x32xf32>
      %243 = vector.broadcast %242 : vector<1x32xf32> to vector<16x32xf32>
      %244 = arith.addf %241, %243 : vector<16x32xf32>
      %cst_195 = arith.constant 0.000000e+00 : f32
      %245 = vector.broadcast %cst_195 : f32 to vector<16x32xf32>
      %246 = arith.maximumf %244, %245 : vector<16x32xf32>
      %247 = arith.truncf %246 : vector<16x32xf32> to vector<16x32xbf16>
      %c0_196 = arith.constant 0 : index
      %c0_197 = arith.constant 0 : index
      %c0_198 = arith.constant 0 : index
      %248 = vector.load %arg15[%c0_196, %c0_197, %c0_198] : memref<18x16x32xbf16, #tpu.memory_space<vmem>>, vector<1x16x32xbf16>
      %249 = vector.shape_cast %248 : vector<1x16x32xbf16> to vector<16x32xbf16>
      %250 = vector.shape_cast %247 : vector<16x32xbf16> to vector<1x16x32xbf16>
      tpu.vector_store %arg15[%c0_196, %c0_197, %c0_198], %250 {strides = array<i32>} : memref<18x16x32xbf16, #tpu.memory_space<vmem>>, vector<1x16x32xbf16>,
    } else {
    }
    %c0_i32_26 = arith.constant 0 : i32
    %35 = arith.cmpi eq, %arg1, %c0_i32_26 : i32
    %36 = arith.extui %35 : i1 to i32
    %c0_i32_27 = arith.constant 0 : i32
    %37 = arith.cmpi ne, %36, %c0_i32_27 : i32
    scf.if %37 {
      %cst_184 = arith.constant 0.000000e+00 : bf16
      %235 = vector.broadcast %cst_184 : bf16 to vector<16x32xbf16>
      %c0_185 = arith.constant 0 : index
      %c0_186 = arith.constant 0 : index
      %c0_187 = arith.constant 0 : index
      %236 = vector.load %arg15[%c0_185, %c0_186, %c0_187] : memref<18x16x32xbf16, #tpu.memory_space<vmem>>, vector<1x16x32xbf16>
      %237 = vector.shape_cast %236 : vector<1x16x32xbf16> to vector<16x32xbf16>
      %238 = vector.shape_cast %235 : vector<16x32xbf16> to vector<1x16x32xbf16>
      tpu.vector_store %arg15[%c0_185, %c0_186, %c0_187], %238 {strides = array<i32>} : memref<18x16x32xbf16, #tpu.memory_space<vmem>>, vector<1x16x32xbf16>,
    } else {
    }
    %c1_i32 = arith.constant 1 : i32
    %38 = arith.addi %arg1, %c1_i32 : i32
    %c1_i32_28 = arith.constant 1 : i32
    %39 = arith.cmpi slt, %38, %c1_i32_28 : i32
    %40 = arith.extui %39 : i1 to i32
    %c0_i32_29 = arith.constant 0 : i32
    %41 = arith.cmpi ne, %40, %c0_i32_29 : i32
    scf.if %41 {
      %c0_184 = arith.constant 0 : index
      %c0_185 = arith.constant 0 : index
      %c0_186 = arith.constant 0 : index
      %c0_187 = arith.constant 0 : index
      %235 = vector.load %arg4[%c0_184, %c0_185, %c0_186, %c0_187] : memref<1x1x16x128xbf16, #tpu.memory_space<vmem>>, vector<1x1x16x128xbf16>
      %236 = vector.shape_cast %235 : vector<1x1x16x128xbf16> to vector<16x128xbf16>
      %c0_188 = arith.constant 0 : index
      %c0_189 = arith.constant 0 : index
      %237 = vector.load %arg5[%c0_188, %c0_189] : memref<128x32xbf16, #tpu.memory_space<vmem>>, vector<128x32xbf16>
      %cst_190 = arith.constant dense<0.000000e+00> : vector<16x32xf32>
      %238 = tpu.matmul %236, %237, %cst_190 {dimension_numbers = #tpu.dot_dimension_numbers<[1], [0], [0], [1], [0, 0, 1, 1], [], []>} : vector<16x128xbf16>, vector<128x32xbf16>, vector<16x32xf32> -> vector<16x32xf32>
      %c0_191 = arith.constant 0 : index
      %c0_192 = arith.constant 0 : index
      %239 = vector.load %arg8[%c0_191, %c0_192] : memref<1x32xf32, #tpu.memory_space<vmem>>, vector<1x32xf32>
      %240 = vector.broadcast %239 : vector<1x32xf32> to vector<16x32xf32>
      %241 = arith.mulf %238, %240 : vector<16x32xf32>
      %c0_193 = arith.constant 0 : index
      %c0_194 = arith.constant 0 : index
      %242 = vector.load %arg9[%c0_193, %c0_194] : memref<1x32xf32, #tpu.memory_space<vmem>>, vector<1x32xf32>
      %243 = vector.broadcast %242 : vector<1x32xf32> to vector<16x32xf32>
      %244 = arith.addf %241, %243 : vector<16x32xf32>
      %cst_195 = arith.constant 0.000000e+00 : f32
      %245 = vector.broadcast %cst_195 : f32 to vector<16x32xf32>
      %246 = arith.maximumf %244, %245 : vector<16x32xf32>
      %247 = arith.truncf %246 : vector<16x32xf32> to vector<16x32xbf16>
      %c17 = arith.constant 17 : index
      %c0_196 = arith.constant 0 : index
      %c0_197 = arith.constant 0 : index
      %248 = vector.load %arg15[%c17, %c0_196, %c0_197] : memref<18x16x32xbf16, #tpu.memory_space<vmem>>, vector<1x16x32xbf16>
      %249 = vector.shape_cast %248 : vector<1x16x32xbf16> to vector<16x32xbf16>
      %250 = vector.shape_cast %247 : vector<16x32xbf16> to vector<1x16x32xbf16>
      tpu.vector_store %arg15[%c17, %c0_196, %c0_197], %250 {strides = array<i32>} : memref<18x16x32xbf16, #tpu.memory_space<vmem>>, vector<1x16x32xbf16>,
    } else {
    }
    %c1_i32_30 = arith.constant 1 : i32
    %42 = arith.addi %arg1, %c1_i32_30 : i32
    %c1_i32_31 = arith.constant 1 : i32
    %43 = arith.cmpi eq, %42, %c1_i32_31 : i32
    %44 = arith.extui %43 : i1 to i32
    %c0_i32_32 = arith.constant 0 : i32
    %45 = arith.cmpi ne, %44, %c0_i32_32 : i32
    scf.if %45 {
      %cst_184 = arith.constant 0.000000e+00 : bf16
      %235 = vector.broadcast %cst_184 : bf16 to vector<16x32xbf16>
      %c17 = arith.constant 17 : index
      %c0_185 = arith.constant 0 : index
      %c0_186 = arith.constant 0 : index
      %236 = vector.load %arg15[%c17, %c0_185, %c0_186] : memref<18x16x32xbf16, #tpu.memory_space<vmem>>, vector<1x16x32xbf16>
      %237 = vector.shape_cast %236 : vector<1x16x32xbf16> to vector<16x32xbf16>
      %238 = vector.shape_cast %235 : vector<16x32xbf16> to vector<1x16x32xbf16>
      tpu.vector_store %arg15[%c17, %c0_185, %c0_186], %238 {strides = array<i32>} : memref<18x16x32xbf16, #tpu.memory_space<vmem>>, vector<1x16x32xbf16>,
    } else {
    }
    %cst_33 = arith.constant 0.000000e+00 : f32
    %46 = vector.broadcast %cst_33 : f32 to vector<8x1x32xf32>
    %cst_34 = arith.constant 0.000000e+00 : f32
    %47 = vector.broadcast %cst_34 : f32 to vector<8x16x32xf32>
    %c0_35 = arith.constant 0 : index
    %c0_36 = arith.constant 0 : index
    %c0_37 = arith.constant 0 : index
    %48 = vector.load %arg15[%c0_35, %c0_36, %c0_37] : memref<18x16x32xbf16, #tpu.memory_space<vmem>>, vector<8x16x32xbf16>
    %49 = vector.shape_cast %48 : vector<8x16x32xbf16> to vector<128x32xbf16>
    %c0_38 = arith.constant 0 : index
    %c1_39 = arith.constant 1 : index
    %c0_40 = arith.constant 0 : index
    %c0_41 = arith.constant 0 : index
    %50 = vector.load %arg6[%c0_38, %c1_39, %c0_40, %c0_41] : memref<3x3x32x32xbf16, #tpu.memory_space<vmem>>, vector<1x1x32x32xbf16>
    %51 = vector.shape_cast %50 : vector<1x1x32x32xbf16> to vector<32x32xbf16>
    %cst_42 = arith.constant dense<0.000000e+00> : vector<128x32xf32>
    %52 = tpu.matmul %49, %51, %cst_42 {dimension_numbers = #tpu.dot_dimension_numbers<[1], [0], [0], [1], [0, 0, 1, 1], [], []>} : vector<128x32xbf16>, vector<32x32xbf16>, vector<128x32xf32> -> vector<128x32xf32>
    %53 = vector.shape_cast %52 : vector<128x32xf32> to vector<8x16x32xf32>
    %54 = arith.addf %47, %53 : vector<8x16x32xf32>
    %c0_43 = arith.constant 0 : index
    %c0_44 = arith.constant 0 : index
    %c0_45 = arith.constant 0 : index
    %c0_46 = arith.constant 0 : index
    %55 = vector.load %arg6[%c0_43, %c0_44, %c0_45, %c0_46] : memref<3x3x32x32xbf16, #tpu.memory_space<vmem>>, vector<1x1x32x32xbf16>
    %56 = vector.shape_cast %55 : vector<1x1x32x32xbf16> to vector<32x32xbf16>
    %cst_47 = arith.constant dense<0.000000e+00> : vector<128x32xf32>
    %57 = tpu.matmul %49, %56, %cst_47 {dimension_numbers = #tpu.dot_dimension_numbers<[1], [0], [0], [1], [0, 0, 1, 1], [], []>} : vector<128x32xbf16>, vector<32x32xbf16>, vector<128x32xf32> -> vector<128x32xf32>
    %58 = vector.shape_cast %57 : vector<128x32xf32> to vector<8x16x32xf32>
    %59 = vector.extract_strided_slice %58 {offsets = [0, 0, 0], sizes = [8, 15, 32], strides = [1, 1, 1]} : vector<8x16x32xf32> to vector<8x15x32xf32>
    %60 = tpu.concatenate %46, %59 in 1 : vector<8x1x32xf32>, vector<8x15x32xf32> -> vector<8x16x32xf32>
    %61 = arith.addf %54, %60 : vector<8x16x32xf32>
    %c0_48 = arith.constant 0 : index
    %c2 = arith.constant 2 : index
    %c0_49 = arith.constant 0 : index
    %c0_50 = arith.constant 0 : index
    %62 = vector.load %arg6[%c0_48, %c2, %c0_49, %c0_50] : memref<3x3x32x32xbf16, #tpu.memory_space<vmem>>, vector<1x1x32x32xbf16>
    %63 = vector.shape_cast %62 : vector<1x1x32x32xbf16> to vector<32x32xbf16>
    %cst_51 = arith.constant dense<0.000000e+00> : vector<128x32xf32>
    %64 = tpu.matmul %49, %63, %cst_51 {dimension_numbers = #tpu.dot_dimension_numbers<[1], [0], [0], [1], [0, 0, 1, 1], [], []>} : vector<128x32xbf16>, vector<32x32xbf16>, vector<128x32xf32> -> vector<128x32xf32>
    %65 = vector.shape_cast %64 : vector<128x32xf32> to vector<8x16x32xf32>
    %66 = vector.extract_strided_slice %65 {offsets = [0, 1, 0], sizes = [8, 15, 32], strides = [1, 1, 1]} : vector<8x16x32xf32> to vector<8x15x32xf32>
    %67 = tpu.concatenate %66, %46 in 1 : vector<8x15x32xf32>, vector<8x1x32xf32> -> vector<8x16x32xf32>
    %68 = arith.addf %61, %67 : vector<8x16x32xf32>
    %c1_52 = arith.constant 1 : index
    %c0_53 = arith.constant 0 : index
    %c0_54 = arith.constant 0 : index
    %69 = vector.load %arg15[%c1_52, %c0_53, %c0_54] : memref<18x16x32xbf16, #tpu.memory_space<vmem>>, vector<8x16x32xbf16>
    %70 = vector.shape_cast %69 : vector<8x16x32xbf16> to vector<128x32xbf16>
    %c1_55 = arith.constant 1 : index
    %c1_56 = arith.constant 1 : index
    %c0_57 = arith.constant 0 : index
    %c0_58 = arith.constant 0 : index
    %71 = vector.load %arg6[%c1_55, %c1_56, %c0_57, %c0_58] : memref<3x3x32x32xbf16, #tpu.memory_space<vmem>>, vector<1x1x32x32xbf16>
    %72 = vector.shape_cast %71 : vector<1x1x32x32xbf16> to vector<32x32xbf16>
    %cst_59 = arith.constant dense<0.000000e+00> : vector<128x32xf32>
    %73 = tpu.matmul %70, %72, %cst_59 {dimension_numbers = #tpu.dot_dimension_numbers<[1], [0], [0], [1], [0, 0, 1, 1], [], []>} : vector<128x32xbf16>, vector<32x32xbf16>, vector<128x32xf32> -> vector<128x32xf32>
    %74 = vector.shape_cast %73 : vector<128x32xf32> to vector<8x16x32xf32>
    %75 = arith.addf %68, %74 : vector<8x16x32xf32>
    %c1_60 = arith.constant 1 : index
    %c0_61 = arith.constant 0 : index
    %c0_62 = arith.constant 0 : index
    %c0_63 = arith.constant 0 : index
    %76 = vector.load %arg6[%c1_60, %c0_61, %c0_62, %c0_63] : memref<3x3x32x32xbf16, #tpu.memory_space<vmem>>, vector<1x1x32x32xbf16>
    %77 = vector.shape_cast %76 : vector<1x1x32x32xbf16> to vector<32x32xbf16>
    %cst_64 = arith.constant dense<0.000000e+00> : vector<128x32xf32>
    %78 = tpu.matmul %70, %77, %cst_64 {dimension_numbers = #tpu.dot_dimension_numbers<[1], [0], [0], [1], [0, 0, 1, 1], [], []>} : vector<128x32xbf16>, vector<32x32xbf16>, vector<128x32xf32> -> vector<128x32xf32>
    %79 = vector.shape_cast %78 : vector<128x32xf32> to vector<8x16x32xf32>
    %80 = vector.extract_strided_slice %79 {offsets = [0, 0, 0], sizes = [8, 15, 32], strides = [1, 1, 1]} : vector<8x16x32xf32> to vector<8x15x32xf32>
    %81 = tpu.concatenate %46, %80 in 1 : vector<8x1x32xf32>, vector<8x15x32xf32> -> vector<8x16x32xf32>
    %82 = arith.addf %75, %81 : vector<8x16x32xf32>
    %c1_65 = arith.constant 1 : index
    %c2_66 = arith.constant 2 : index
    %c0_67 = arith.constant 0 : index
    %c0_68 = arith.constant 0 : index
    %83 = vector.load %arg6[%c1_65, %c2_66, %c0_67, %c0_68] : memref<3x3x32x32xbf16, #tpu.memory_space<vmem>>, vector<1x1x32x32xbf16>
    %84 = vector.shape_cast %83 : vector<1x1x32x32xbf16> to vector<32x32xbf16>
    %cst_69 = arith.constant dense<0.000000e+00> : vector<128x32xf32>
    %85 = tpu.matmul %70, %84, %cst_69 {dimension_numbers = #tpu.dot_dimension_numbers<[1], [0], [0], [1], [0, 0, 1, 1], [], []>} : vector<128x32xbf16>, vector<32x32xbf16>, vector<128x32xf32> -> vector<128x32xf32>
    %86 = vector.shape_cast %85 : vector<128x32xf32> to vector<8x16x32xf32>
    %87 = vector.extract_strided_slice %86 {offsets = [0, 1, 0], sizes = [8, 15, 32], strides = [1, 1, 1]} : vector<8x16x32xf32> to vector<8x15x32xf32>
    %88 = tpu.concatenate %87, %46 in 1 : vector<8x15x32xf32>, vector<8x1x32xf32> -> vector<8x16x32xf32>
    %89 = arith.addf %82, %88 : vector<8x16x32xf32>
    %c2_70 = arith.constant 2 : index
    %c0_71 = arith.constant 0 : index
    %c0_72 = arith.constant 0 : index
    %90 = vector.load %arg15[%c2_70, %c0_71, %c0_72] : memref<18x16x32xbf16, #tpu.memory_space<vmem>>, vector<8x16x32xbf16>
    %91 = vector.shape_cast %90 : vector<8x16x32xbf16> to vector<128x32xbf16>
    %c2_73 = arith.constant 2 : index
    %c1_74 = arith.constant 1 : index
    %c0_75 = arith.constant 0 : index
    %c0_76 = arith.constant 0 : index
    %92 = vector.load %arg6[%c2_73, %c1_74, %c0_75, %c0_76] : memref<3x3x32x32xbf16, #tpu.memory_space<vmem>>, vector<1x1x32x32xbf16>
    %93 = vector.shape_cast %92 : vector<1x1x32x32xbf16> to vector<32x32xbf16>
    %cst_77 = arith.constant dense<0.000000e+00> : vector<128x32xf32>
    %94 = tpu.matmul %91, %93, %cst_77 {dimension_numbers = #tpu.dot_dimension_numbers<[1], [0], [0], [1], [0, 0, 1, 1], [], []>} : vector<128x32xbf16>, vector<32x32xbf16>, vector<128x32xf32> -> vector<128x32xf32>
    %95 = vector.shape_cast %94 : vector<128x32xf32> to vector<8x16x32xf32>
    %96 = arith.addf %89, %95 : vector<8x16x32xf32>
    %c2_78 = arith.constant 2 : index
    %c0_79 = arith.constant 0 : index
    %c0_80 = arith.constant 0 : index
    %c0_81 = arith.constant 0 : index
    %97 = vector.load %arg6[%c2_78, %c0_79, %c0_80, %c0_81] : memref<3x3x32x32xbf16, #tpu.memory_space<vmem>>, vector<1x1x32x32xbf16>
    %98 = vector.shape_cast %97 : vector<1x1x32x32xbf16> to vector<32x32xbf16>
    %cst_82 = arith.constant dense<0.000000e+00> : vector<128x32xf32>
    %99 = tpu.matmul %91, %98, %cst_82 {dimension_numbers = #tpu.dot_dimension_numbers<[1], [0], [0], [1], [0, 0, 1, 1], [], []>} : vector<128x32xbf16>, vector<32x32xbf16>, vector<128x32xf32> -> vector<128x32xf32>
    %100 = vector.shape_cast %99 : vector<128x32xf32> to vector<8x16x32xf32>
    %101 = vector.extract_strided_slice %100 {offsets = [0, 0, 0], sizes = [8, 15, 32], strides = [1, 1, 1]} : vector<8x16x32xf32> to vector<8x15x32xf32>
    %102 = tpu.concatenate %46, %101 in 1 : vector<8x1x32xf32>, vector<8x15x32xf32> -> vector<8x16x32xf32>
    %103 = arith.addf %96, %102 : vector<8x16x32xf32>
    %c2_83 = arith.constant 2 : index
    %c2_84 = arith.constant 2 : index
    %c0_85 = arith.constant 0 : index
    %c0_86 = arith.constant 0 : index
    %104 = vector.load %arg6[%c2_83, %c2_84, %c0_85, %c0_86] : memref<3x3x32x32xbf16, #tpu.memory_space<vmem>>, vector<1x1x32x32xbf16>
    %105 = vector.shape_cast %104 : vector<1x1x32x32xbf16> to vector<32x32xbf16>
    %cst_87 = arith.constant dense<0.000000e+00> : vector<128x32xf32>
    %106 = tpu.matmul %91, %105, %cst_87 {dimension_numbers = #tpu.dot_dimension_numbers<[1], [0], [0], [1], [0, 0, 1, 1], [], []>} : vector<128x32xbf16>, vector<32x32xbf16>, vector<128x32xf32> -> vector<128x32xf32>
    %107 = vector.shape_cast %106 : vector<128x32xf32> to vector<8x16x32xf32>
    %108 = vector.extract_strided_slice %107 {offsets = [0, 1, 0], sizes = [8, 15, 32], strides = [1, 1, 1]} : vector<8x16x32xf32> to vector<8x15x32xf32>
    %109 = tpu.concatenate %108, %46 in 1 : vector<8x15x32xf32>, vector<8x1x32xf32> -> vector<8x16x32xf32>
    %110 = arith.addf %103, %109 : vector<8x16x32xf32>
    %111 = vector.shape_cast %110 : vector<8x16x32xf32> to vector<128x32xf32>
    %c0_88 = arith.constant 0 : index
    %c0_89 = arith.constant 0 : index
    %112 = vector.load %arg10[%c0_88, %c0_89] : memref<1x32xf32, #tpu.memory_space<vmem>>, vector<1x32xf32>
    %113 = vector.broadcast %112 : vector<1x32xf32> to vector<128x32xf32>
    %114 = arith.mulf %111, %113 : vector<128x32xf32>
    %c0_90 = arith.constant 0 : index
    %c0_91 = arith.constant 0 : index
    %115 = vector.load %arg11[%c0_90, %c0_91] : memref<1x32xf32, #tpu.memory_space<vmem>>, vector<1x32xf32>
    %116 = vector.broadcast %115 : vector<1x32xf32> to vector<128x32xf32>
    %117 = arith.addf %114, %116 : vector<128x32xf32>
    %cst_92 = arith.constant 0.000000e+00 : f32
    %118 = vector.broadcast %cst_92 : f32 to vector<128x32xf32>
    %119 = arith.maximumf %117, %118 : vector<128x32xf32>
    %120 = arith.truncf %119 : vector<128x32xf32> to vector<128x32xbf16>
    %c0_93 = arith.constant 0 : index
    %c0_94 = arith.constant 0 : index
    %121 = vector.load %arg7[%c0_93, %c0_94] : memref<32x128xbf16, #tpu.memory_space<vmem>>, vector<32x128xbf16>
    %cst_95 = arith.constant dense<0.000000e+00> : vector<128x128xf32>
    %122 = tpu.matmul %120, %121, %cst_95 {dimension_numbers = #tpu.dot_dimension_numbers<[1], [0], [0], [1], [0, 0, 1, 1], [], []>} : vector<128x32xbf16>, vector<32x128xbf16>, vector<128x128xf32> -> vector<128x128xf32>
    %c0_96 = arith.constant 0 : index
    %c0_97 = arith.constant 0 : index
    %123 = vector.load %arg12[%c0_96, %c0_97] : memref<1x128xf32, #tpu.memory_space<vmem>>, vector<1x128xf32>
    %124 = vector.broadcast %123 : vector<1x128xf32> to vector<128x128xf32>
    %125 = arith.mulf %122, %124 : vector<128x128xf32>
    %c0_98 = arith.constant 0 : index
    %c0_99 = arith.constant 0 : index
    %126 = vector.load %arg13[%c0_98, %c0_99] : memref<1x128xf32, #tpu.memory_space<vmem>>, vector<1x128xf32>
    %127 = vector.broadcast %126 : vector<1x128xf32> to vector<128x128xf32>
    %128 = arith.addf %125, %127 : vector<128x128xf32>
    %c0_100 = arith.constant 0 : index
    %c0_101 = arith.constant 0 : index
    %c0_102 = arith.constant 0 : index
    %c0_103 = arith.constant 0 : index
    %129 = vector.load %arg2[%c0_100, %c0_101, %c0_102, %c0_103] : memref<1x16x16x128xbf16, #tpu.memory_space<vmem>>, vector<1x8x16x128xbf16>
    %130 = vector.shape_cast %129 : vector<1x8x16x128xbf16> to vector<8x16x128xbf16>
    %131 = vector.shape_cast %130 : vector<8x16x128xbf16> to vector<128x128xbf16>
    %132 = arith.extf %131 : vector<128x128xbf16> to vector<128x128xf32>
    %133 = arith.addf %128, %132 : vector<128x128xf32>
    %cst_104 = arith.constant 0.000000e+00 : f32
    %134 = vector.broadcast %cst_104 : f32 to vector<128x128xf32>
    %135 = arith.maximumf %133, %134 : vector<128x128xf32>
    %136 = vector.shape_cast %135 : vector<128x128xf32> to vector<8x16x128xf32>
    %137 = arith.truncf %136 : vector<8x16x128xf32> to vector<8x16x128xbf16>
    %c0_105 = arith.constant 0 : index
    %c0_106 = arith.constant 0 : index
    %c0_107 = arith.constant 0 : index
    %c0_108 = arith.constant 0 : index
    %138 = vector.load %arg14[%c0_105, %c0_106, %c0_107, %c0_108] : memref<1x16x16x128xbf16, #tpu.memory_space<vmem>>, vector<1x8x16x128xbf16>
    %139 = vector.shape_cast %138 : vector<1x8x16x128xbf16> to vector<8x16x128xbf16>
    %140 = vector.shape_cast %137 : vector<8x16x128xbf16> to vector<1x8x16x128xbf16>
    tpu.vector_store %arg14[%c0_105, %c0_106, %c0_107, %c0_108], %140 {strides = array<i32>} : memref<1x16x16x128xbf16, #tpu.memory_space<vmem>>, vector<1x8x16x128xbf16>,
    %cst_109 = arith.constant 0.000000e+00 : f32
    %141 = vector.broadcast %cst_109 : f32 to vector<8x16x32xf32>
    %c8_110 = arith.constant 8 : index
    %c0_111 = arith.constant 0 : index
    %c0_112 = arith.constant 0 : index
    %142 = vector.load %arg15[%c8_110, %c0_111, %c0_112] : memref<18x16x32xbf16, #tpu.memory_space<vmem>>, vector<8x16x32xbf16>
    %143 = vector.shape_cast %142 : vector<8x16x32xbf16> to vector<128x32xbf16>
    %c0_113 = arith.constant 0 : index
    %c1_114 = arith.constant 1 : index
    %c0_115 = arith.constant 0 : index
    %c0_116 = arith.constant 0 : index
    %144 = vector.load %arg6[%c0_113, %c1_114, %c0_115, %c0_116] : memref<3x3x32x32xbf16, #tpu.memory_space<vmem>>, vector<1x1x32x32xbf16>
    %145 = vector.shape_cast %144 : vector<1x1x32x32xbf16> to vector<32x32xbf16>
    %cst_117 = arith.constant dense<0.000000e+00> : vector<128x32xf32>
    %146 = tpu.matmul %143, %145, %cst_117 {dimension_numbers = #tpu.dot_dimension_numbers<[1], [0], [0], [1], [0, 0, 1, 1], [], []>} : vector<128x32xbf16>, vector<32x32xbf16>, vector<128x32xf32> -> vector<128x32xf32>
    %147 = vector.shape_cast %146 : vector<128x32xf32> to vector<8x16x32xf32>
    %148 = arith.addf %141, %147 : vector<8x16x32xf32>
    %c0_118 = arith.constant 0 : index
    %c0_119 = arith.constant 0 : index
    %c0_120 = arith.constant 0 : index
    %c0_121 = arith.constant 0 : index
    %149 = vector.load %arg6[%c0_118, %c0_119, %c0_120, %c0_121] : memref<3x3x32x32xbf16, #tpu.memory_space<vmem>>, vector<1x1x32x32xbf16>
    %150 = vector.shape_cast %149 : vector<1x1x32x32xbf16> to vector<32x32xbf16>
    %cst_122 = arith.constant dense<0.000000e+00> : vector<128x32xf32>
    %151 = tpu.matmul %143, %150, %cst_122 {dimension_numbers = #tpu.dot_dimension_numbers<[1], [0], [0], [1], [0, 0, 1, 1], [], []>} : vector<128x32xbf16>, vector<32x32xbf16>, vector<128x32xf32> -> vector<128x32xf32>
    %152 = vector.shape_cast %151 : vector<128x32xf32> to vector<8x16x32xf32>
    %153 = vector.extract_strided_slice %152 {offsets = [0, 0, 0], sizes = [8, 15, 32], strides = [1, 1, 1]} : vector<8x16x32xf32> to vector<8x15x32xf32>
    %154 = tpu.concatenate %46, %153 in 1 : vector<8x1x32xf32>, vector<8x15x32xf32> -> vector<8x16x32xf32>
    %155 = arith.addf %148, %154 : vector<8x16x32xf32>
    %c0_123 = arith.constant 0 : index
    %c2_124 = arith.constant 2 : index
    %c0_125 = arith.constant 0 : index
    %c0_126 = arith.constant 0 : index
    %156 = vector.load %arg6[%c0_123, %c2_124, %c0_125, %c0_126] : memref<3x3x32x32xbf16, #tpu.memory_space<vmem>>, vector<1x1x32x32xbf16>
    %157 = vector.shape_cast %156 : vector<1x1x32x32xbf16> to vector<32x32xbf16>
    %cst_127 = arith.constant dense<0.000000e+00> : vector<128x32xf32>
    %158 = tpu.matmul %143, %157, %cst_127 {dimension_numbers = #tpu.dot_dimension_numbers<[1], [0], [0], [1], [0, 0, 1, 1], [], []>} : vector<128x32xbf16>, vector<32x32xbf16>, vector<128x32xf32> -> vector<128x32xf32>
    %159 = vector.shape_cast %158 : vector<128x32xf32> to vector<8x16x32xf32>
    %160 = vector.extract_strided_slice %159 {offsets = [0, 1, 0], sizes = [8, 15, 32], strides = [1, 1, 1]} : vector<8x16x32xf32> to vector<8x15x32xf32>
    %161 = tpu.concatenate %160, %46 in 1 : vector<8x15x32xf32>, vector<8x1x32xf32> -> vector<8x16x32xf32>
    %162 = arith.addf %155, %161 : vector<8x16x32xf32>
    %c9_128 = arith.constant 9 : index
    %c0_129 = arith.constant 0 : index
    %c0_130 = arith.constant 0 : index
    %163 = vector.load %arg15[%c9_128, %c0_129, %c0_130] : memref<18x16x32xbf16, #tpu.memory_space<vmem>>, vector<8x16x32xbf16>
    %164 = vector.shape_cast %163 : vector<8x16x32xbf16> to vector<128x32xbf16>
    %c1_131 = arith.constant 1 : index
    %c1_132 = arith.constant 1 : index
    %c0_133 = arith.constant 0 : index
    %c0_134 = arith.constant 0 : index
    %165 = vector.load %arg6[%c1_131, %c1_132, %c0_133, %c0_134] : memref<3x3x32x32xbf16, #tpu.memory_space<vmem>>, vector<1x1x32x32xbf16>
    %166 = vector.shape_cast %165 : vector<1x1x32x32xbf16> to vector<32x32xbf16>
    %cst_135 = arith.constant dense<0.000000e+00> : vector<128x32xf32>
    %167 = tpu.matmul %164, %166, %cst_135 {dimension_numbers = #tpu.dot_dimension_numbers<[1], [0], [0], [1], [0, 0, 1, 1], [], []>} : vector<128x32xbf16>, vector<32x32xbf16>, vector<128x32xf32> -> vector<128x32xf32>
    %168 = vector.shape_cast %167 : vector<128x32xf32> to vector<8x16x32xf32>
    %169 = arith.addf %162, %168 : vector<8x16x32xf32>
    %c1_136 = arith.constant 1 : index
    %c0_137 = arith.constant 0 : index
    %c0_138 = arith.constant 0 : index
    %c0_139 = arith.constant 0 : index
    %170 = vector.load %arg6[%c1_136, %c0_137, %c0_138, %c0_139] : memref<3x3x32x32xbf16, #tpu.memory_space<vmem>>, vector<1x1x32x32xbf16>
    %171 = vector.shape_cast %170 : vector<1x1x32x32xbf16> to vector<32x32xbf16>
    %cst_140 = arith.constant dense<0.000000e+00> : vector<128x32xf32>
    %172 = tpu.matmul %164, %171, %cst_140 {dimension_numbers = #tpu.dot_dimension_numbers<[1], [0], [0], [1], [0, 0, 1, 1], [], []>} : vector<128x32xbf16>, vector<32x32xbf16>, vector<128x32xf32> -> vector<128x32xf32>
    %173 = vector.shape_cast %172 : vector<128x32xf32> to vector<8x16x32xf32>
    %174 = vector.extract_strided_slice %173 {offsets = [0, 0, 0], sizes = [8, 15, 32], strides = [1, 1, 1]} : vector<8x16x32xf32> to vector<8x15x32xf32>
    %175 = tpu.concatenate %46, %174 in 1 : vector<8x1x32xf32>, vector<8x15x32xf32> -> vector<8x16x32xf32>
    %176 = arith.addf %169, %175 : vector<8x16x32xf32>
    %c1_141 = arith.constant 1 : index
    %c2_142 = arith.constant 2 : index
    %c0_143 = arith.constant 0 : index
    %c0_144 = arith.constant 0 : index
    %177 = vector.load %arg6[%c1_141, %c2_142, %c0_143, %c0_144] : memref<3x3x32x32xbf16, #tpu.memory_space<vmem>>, vector<1x1x32x32xbf16>
    %178 = vector.shape_cast %177 : vector<1x1x32x32xbf16> to vector<32x32xbf16>
    %cst_145 = arith.constant dense<0.000000e+00> : vector<128x32xf32>
    %179 = tpu.matmul %164, %178, %cst_145 {dimension_numbers = #tpu.dot_dimension_numbers<[1], [0], [0], [1], [0, 0, 1, 1], [], []>} : vector<128x32xbf16>, vector<32x32xbf16>, vector<128x32xf32> -> vector<128x32xf32>
    %180 = vector.shape_cast %179 : vector<128x32xf32> to vector<8x16x32xf32>
    %181 = vector.extract_strided_slice %180 {offsets = [0, 1, 0], sizes = [8, 15, 32], strides = [1, 1, 1]} : vector<8x16x32xf32> to vector<8x15x32xf32>
    %182 = tpu.concatenate %181, %46 in 1 : vector<8x15x32xf32>, vector<8x1x32xf32> -> vector<8x16x32xf32>
    %183 = arith.addf %176, %182 : vector<8x16x32xf32>
    %c10 = arith.constant 10 : index
    %c0_146 = arith.constant 0 : index
    %c0_147 = arith.constant 0 : index
    %184 = vector.load %arg15[%c10, %c0_146, %c0_147] : memref<18x16x32xbf16, #tpu.memory_space<vmem>>, vector<8x16x32xbf16>
    %185 = vector.shape_cast %184 : vector<8x16x32xbf16> to vector<128x32xbf16>
    %c2_148 = arith.constant 2 : index
    %c1_149 = arith.constant 1 : index
    %c0_150 = arith.constant 0 : index
    %c0_151 = arith.constant 0 : index
    %186 = vector.load %arg6[%c2_148, %c1_149, %c0_150, %c0_151] : memref<3x3x32x32xbf16, #tpu.memory_space<vmem>>, vector<1x1x32x32xbf16>
    %187 = vector.shape_cast %186 : vector<1x1x32x32xbf16> to vector<32x32xbf16>
    %cst_152 = arith.constant dense<0.000000e+00> : vector<128x32xf32>
    %188 = tpu.matmul %185, %187, %cst_152 {dimension_numbers = #tpu.dot_dimension_numbers<[1], [0], [0], [1], [0, 0, 1, 1], [], []>} : vector<128x32xbf16>, vector<32x32xbf16>, vector<128x32xf32> -> vector<128x32xf32>
    %189 = vector.shape_cast %188 : vector<128x32xf32> to vector<8x16x32xf32>
    %190 = arith.addf %183, %189 : vector<8x16x32xf32>
    %c2_153 = arith.constant 2 : index
    %c0_154 = arith.constant 0 : index
    %c0_155 = arith.constant 0 : index
    %c0_156 = arith.constant 0 : index
    %191 = vector.load %arg6[%c2_153, %c0_154, %c0_155, %c0_156] : memref<3x3x32x32xbf16, #tpu.memory_space<vmem>>, vector<1x1x32x32xbf16>
    %192 = vector.shape_cast %191 : vector<1x1x32x32xbf16> to vector<32x32xbf16>
    %cst_157 = arith.constant dense<0.000000e+00> : vector<128x32xf32>
    %193 = tpu.matmul %185, %192, %cst_157 {dimension_numbers = #tpu.dot_dimension_numbers<[1], [0], [0], [1], [0, 0, 1, 1], [], []>} : vector<128x32xbf16>, vector<32x32xbf16>, vector<128x32xf32> -> vector<128x32xf32>
    %194 = vector.shape_cast %193 : vector<128x32xf32> to vector<8x16x32xf32>
    %195 = vector.extract_strided_slice %194 {offsets = [0, 0, 0], sizes = [8, 15, 32], strides = [1, 1, 1]} : vector<8x16x32xf32> to vector<8x15x32xf32>
    %196 = tpu.concatenate %46, %195 in 1 : vector<8x1x32xf32>, vector<8x15x32xf32> -> vector<8x16x32xf32>
    %197 = arith.addf %190, %196 : vector<8x16x32xf32>
    %c2_158 = arith.constant 2 : index
    %c2_159 = arith.constant 2 : index
    %c0_160 = arith.constant 0 : index
    %c0_161 = arith.constant 0 : index
    %198 = vector.load %arg6[%c2_158, %c2_159, %c0_160, %c0_161] : memref<3x3x32x32xbf16, #tpu.memory_space<vmem>>, vector<1x1x32x32xbf16>
    %199 = vector.shape_cast %198 : vector<1x1x32x32xbf16> to vector<32x32xbf16>
    %cst_162 = arith.constant dense<0.000000e+00> : vector<128x32xf32>
    %200 = tpu.matmul %185, %199, %cst_162 {dimension_numbers = #tpu.dot_dimension_numbers<[1], [0], [0], [1], [0, 0, 1, 1], [], []>} : vector<128x32xbf16>, vector<32x32xbf16>, vector<128x32xf32> -> vector<128x32xf32>
    %201 = vector.shape_cast %200 : vector<128x32xf32> to vector<8x16x32xf32>
    %202 = vector.extract_strided_slice %201 {offsets = [0, 1, 0], sizes = [8, 15, 32], strides = [1, 1, 1]} : vector<8x16x32xf32> to vector<8x15x32xf32>
    %203 = tpu.concatenate %202, %46 in 1 : vector<8x15x32xf32>, vector<8x1x32xf32> -> vector<8x16x32xf32>
    %204 = arith.addf %197, %203 : vector<8x16x32xf32>
    %205 = vector.shape_cast %204 : vector<8x16x32xf32> to vector<128x32xf32>
    %c0_163 = arith.constant 0 : index
    %c0_164 = arith.constant 0 : index
    %206 = vector.load %arg10[%c0_163, %c0_164] : memref<1x32xf32, #tpu.memory_space<vmem>>, vector<1x32xf32>
    %207 = vector.broadcast %206 : vector<1x32xf32> to vector<128x32xf32>
    %208 = arith.mulf %205, %207 : vector<128x32xf32>
    %c0_165 = arith.constant 0 : index
    %c0_166 = arith.constant 0 : index
    %209 = vector.load %arg11[%c0_165, %c0_166] : memref<1x32xf32, #tpu.memory_space<vmem>>, vector<1x32xf32>
    %210 = vector.broadcast %209 : vector<1x32xf32> to vector<128x32xf32>
    %211 = arith.addf %208, %210 : vector<128x32xf32>
    %cst_167 = arith.constant 0.000000e+00 : f32
    %212 = vector.broadcast %cst_167 : f32 to vector<128x32xf32>
    %213 = arith.maximumf %211, %212 : vector<128x32xf32>
    %214 = arith.truncf %213 : vector<128x32xf32> to vector<128x32xbf16>
    %c0_168 = arith.constant 0 : index
    %c0_169 = arith.constant 0 : index
    %215 = vector.load %arg7[%c0_168, %c0_169] : memref<32x128xbf16, #tpu.memory_space<vmem>>, vector<32x128xbf16>
    %cst_170 = arith.constant dense<0.000000e+00> : vector<128x128xf32>
    %216 = tpu.matmul %214, %215, %cst_170 {dimension_numbers = #tpu.dot_dimension_numbers<[1], [0], [0], [1], [0, 0, 1, 1], [], []>} : vector<128x32xbf16>, vector<32x128xbf16>, vector<128x128xf32> -> vector<128x128xf32>
    %c0_171 = arith.constant 0 : index
    %c0_172 = arith.constant 0 : index
    %217 = vector.load %arg12[%c0_171, %c0_172] : memref<1x128xf32, #tpu.memory_space<vmem>>, vector<1x128xf32>
    %218 = vector.broadcast %217 : vector<1x128xf32> to vector<128x128xf32>
    %219 = arith.mulf %216, %218 : vector<128x128xf32>
    %c0_173 = arith.constant 0 : index
    %c0_174 = arith.constant 0 : index
    %220 = vector.load %arg13[%c0_173, %c0_174] : memref<1x128xf32, #tpu.memory_space<vmem>>, vector<1x128xf32>
    %221 = vector.broadcast %220 : vector<1x128xf32> to vector<128x128xf32>
    %222 = arith.addf %219, %221 : vector<128x128xf32>
    %c0_175 = arith.constant 0 : index
    %c8_176 = arith.constant 8 : index
    %c0_177 = arith.constant 0 : index
    %c0_178 = arith.constant 0 : index
    %223 = vector.load %arg2[%c0_175, %c8_176, %c0_177, %c0_178] : memref<1x16x16x128xbf16, #tpu.memory_space<vmem>>, vector<1x8x16x128xbf16>
    %224 = vector.shape_cast %223 : vector<1x8x16x128xbf16> to vector<8x16x128xbf16>
    %225 = vector.shape_cast %224 : vector<8x16x128xbf16> to vector<128x128xbf16>
    %226 = arith.extf %225 : vector<128x128xbf16> to vector<128x128xf32>
    %227 = arith.addf %222, %226 : vector<128x128xf32>
    %cst_179 = arith.constant 0.000000e+00 : f32
    %228 = vector.broadcast %cst_179 : f32 to vector<128x128xf32>
    %229 = arith.maximumf %227, %228 : vector<128x128xf32>
    %230 = vector.shape_cast %229 : vector<128x128xf32> to vector<8x16x128xf32>
    %231 = arith.truncf %230 : vector<8x16x128xf32> to vector<8x16x128xbf16>
    %c0_180 = arith.constant 0 : index
    %c8_181 = arith.constant 8 : index
    %c0_182 = arith.constant 0 : index
    %c0_183 = arith.constant 0 : index
    %232 = vector.load %arg14[%c0_180, %c8_181, %c0_182, %c0_183] : memref<1x16x16x128xbf16, #tpu.memory_space<vmem>>, vector<1x8x16x128xbf16>
    %233 = vector.shape_cast %232 : vector<1x8x16x128xbf16> to vector<8x16x128xbf16>
    %234 = vector.shape_cast %231 : vector<8x16x128xbf16> to vector<1x8x16x128xbf16>
    tpu.vector_store %arg14[%c0_180, %c8_181, %c0_182, %c0_183], %234 {strides = array<i32>} : memref<1x16x16x128xbf16, #tpu.memory_space<vmem>>, vector<1x8x16x128xbf16>,
    return
  }
  func.func @transform_0(%arg0: i32, %arg1: i32) -> (i32, i32, i32, i32) {
    %c0_i32 = arith.constant 0 : i32
    %c0_i32_0 = arith.constant 0 : i32
    %c0_i32_1 = arith.constant 0 : i32
    return %arg0, %arg1, %c0_i32, %c0_i32_0 : i32, i32, i32, i32
  }
  func.func @transform_1(%arg0: i32, %arg1: i32) -> (i32, i32, i32, i32) {
    %c16_i32 = arith.constant 16 : i32
    %0 = arith.muli %arg1, %c16_i32 : i32
    %c1_i32 = arith.constant 1 : i32
    %1 = arith.subi %0, %c1_i32 : i32
    %c0_i32 = arith.constant 0 : i32
    %2 = arith.maxsi %1, %c0_i32 : i32
    %c0_i32_0 = arith.constant 0 : i32
    %c0_i32_1 = arith.constant 0 : i32
    %c0_i32_2 = arith.constant 0 : i32
    return %arg0, %2, %c0_i32_0, %c0_i32_1 : i32, i32, i32, i32
  }
  func.func @transform_2(%arg0: i32, %arg1: i32) -> (i32, i32, i32, i32) {
    %c16_i32 = arith.constant 16 : i32
    %0 = arith.muli %arg1, %c16_i32 : i32
    %c16_i32_0 = arith.constant 16 : i32
    %1 = arith.addi %0, %c16_i32_0 : i32
    %c15_i32 = arith.constant 15 : i32
    %2 = arith.minsi %1, %c15_i32 : i32
    %c0_i32 = arith.constant 0 : i32
    %c0_i32_1 = arith.constant 0 : i32
    %c0_i32_2 = arith.constant 0 : i32
    return %arg0, %2, %c0_i32, %c0_i32_1 : i32, i32, i32, i32
  }
  func.func @transform_3(%arg0: i32, %arg1: i32) -> (i32, i32) {
    %c0_i32 = arith.constant 0 : i32
    %c0_i32_0 = arith.constant 0 : i32
    %c0_i32_1 = arith.constant 0 : i32
    return %c0_i32, %c0_i32_0 : i32, i32
  }
  func.func @transform_4(%arg0: i32, %arg1: i32) -> (i32, i32, i32, i32) {
    %c0_i32 = arith.constant 0 : i32
    %c0_i32_0 = arith.constant 0 : i32
    %c0_i32_1 = arith.constant 0 : i32
    %c0_i32_2 = arith.constant 0 : i32
    %c0_i32_3 = arith.constant 0 : i32
    return %c0_i32, %c0_i32_0, %c0_i32_1, %c0_i32_2 : i32, i32, i32, i32
  }
  func.func @transform_5(%arg0: i32, %arg1: i32) -> (i32, i32) {
    %c0_i32 = arith.constant 0 : i32
    %c0_i32_0 = arith.constant 0 : i32
    %c0_i32_1 = arith.constant 0 : i32
    return %c0_i32, %c0_i32_0 : i32, i32
  }
  func.func @transform_6(%arg0: i32, %arg1: i32) -> (i32, i32) {
    %c0_i32 = arith.constant 0 : i32
    %c0_i32_0 = arith.constant 0 : i32
    %c0_i32_1 = arith.constant 0 : i32
    return %c0_i32, %c0_i32_0 : i32, i32
  }
  func.func @transform_7(%arg0: i32, %arg1: i32) -> (i32, i32) {
    %c0_i32 = arith.constant 0 : i32
    %c0_i32_0 = arith.constant 0 : i32
    %c0_i32_1 = arith.constant 0 : i32
    return %c0_i32, %c0_i32_0 : i32, i32
  }
  func.func @transform_8(%arg0: i32, %arg1: i32) -> (i32, i32) {
    %c0_i32 = arith.constant 0 : i32
    %c0_i32_0 = arith.constant 0 : i32
    %c0_i32_1 = arith.constant 0 : i32
    return %c0_i32, %c0_i32_0 : i32, i32
  }
  func.func @transform_9(%arg0: i32, %arg1: i32) -> (i32, i32) {
    %c0_i32 = arith.constant 0 : i32
    %c0_i32_0 = arith.constant 0 : i32
    %c0_i32_1 = arith.constant 0 : i32
    return %c0_i32, %c0_i32_0 : i32, i32
  }
  func.func @transform_10(%arg0: i32, %arg1: i32) -> (i32, i32) {
    %c0_i32 = arith.constant 0 : i32
    %c0_i32_0 = arith.constant 0 : i32
    %c0_i32_1 = arith.constant 0 : i32
    return %c0_i32, %c0_i32_0 : i32, i32
  }
  func.func @transform_11(%arg0: i32, %arg1: i32) -> (i32, i32) {
    %c0_i32 = arith.constant 0 : i32
    %c0_i32_0 = arith.constant 0 : i32
    %c0_i32_1 = arith.constant 0 : i32
    return %c0_i32, %c0_i32_0 : i32, i32
  }
  func.func @transform_12(%arg0: i32, %arg1: i32) -> (i32, i32, i32, i32) {
    %c0_i32 = arith.constant 0 : i32
    %c0_i32_0 = arith.constant 0 : i32
    %c0_i32_1 = arith.constant 0 : i32
    return %arg0, %arg1, %c0_i32, %c0_i32_0 : i32, i32, i32, i32
  }
}

</mosaic_0001>

<bundles_post_ra>
// kernel: bottleneck_forward.1
= control target key start
LH: loop header
LB: loop body
LE: loop exit
PB: predicated region body
PF: predicated region fallthrough
CT: control target
= control target key end

     0   :  { %17 = vsyncpa [#allocation4], 0  ;;  %s7791_s0 = inlined_call_operand.vmem [shape: bf16[2,16,16,128], index: 0, kind: input, shape index: {}, may-alias: {0,1,2}]   ;;  %s7792_s1 = inlined_call_operand.vmem [shape: bf16[2,16,16,128], index: 1, kind: input, shape index: {}, may-alias: {0,1,2}]   ;;  %s7793_s2 = inlined_call_operand.vmem [shape: bf16[2,16,16,128], index: 2, kind: input, shape index: {}, may-alias: {0,1,2}]   ;;  %s7794_s3 = inlined_call_operand.vmem [shape: bf16[128,32], index: 3, kind: input, shape index: {}]   ;;  %s7795_s4 = inlined_call_operand.vmem [shape: bf16[3,3,32,32], index: 4, kind: input, shape index: {}]   ;;  %s7796_s5 = inlined_call_operand.vmem [shape: bf16[32,128], index: 5, kind: input, shape index: {}]   ;;  %s7797_s6 = inlined_call_operand.vmem [shape: f32[1,32], index: 6, kind: input, shape index: {}]   ;;  %s7798_s7 = inlined_call_operand.vmem [shape: f32[1,32], index: 7, kind: input, shape index: {}]   ;;  %s7799_s8 = inlined_call_operand.vmem [shape: f32[1,32], index: 8, kind: input, shape index: {}]   ;;  %s7800_s9 = inlined_call_operand.vmem [shape: f32[1,32], index: 9, kind: input, shape index: {}]   ;;  %s7801_s10 = inlined_call_operand.vmem [shape: f32[1,128], index: 10, kind: input, shape index: {}]   ;;  %s7802_s11 = inlined_call_operand.vmem [shape: f32[1,128], index: 11, kind: input, shape index: {}]   ;;  %s7803_s12 = inlined_call_operand.hbm [shape: bf16[2,16,16,128], index: 12, kind: output, shape index: {}]  }
   0x1   :  { %19 = vsyncpa [#allocation4 + $0x1], 0  ;;  %s6159_s19 = smov 0   ;;  %s6161_s20 = smov 0  }
   0x2   :  { %s6163_s21 = smov 0   ;;  %s6165_s22 = smov 0  }
   0x3   :  { %s6167_s23 = smov 0   ;;  %s6169_s24 = smov 0  }
   0x4 LB: > { %s4778_s25 = sadd.s32 4294967295, %s6089_s24   ;;  %s4779_s26 = sadd.s32 4294967294, %s6089_s24   ;;  %s6089_s24 = sphi %s6169_s24, %s25_s24   ;;  %s6085_s23 = sphi %s6167_s23, %s7813_s23   ;;  %s6081_s22 = sphi %s6165_s22, %s7812_s22   ;;  %s6077_s21 = sphi %s6163_s21, %s7811_s21   ;;  %s6073_s20 = sphi %s6161_s20, %s7810_s20   ;;  %s6069_s19 = sphi %s6159_s19, %s7809_s19  }
   0x5   : > { %s37_s27 = sadd.s32 1, %s6085_s23  ;;  %s335_s28 = sadd.s32 1, %s6077_s21 }
   0x6   : > { %p39_p0 = scmp.ge.s32.totalorder %s37_s27, 2  ;;  %p345_p1 = scmp.ne.s32.totalorder %s6077_s21, %s6073_s20 }
   0x7   : > { %p346_p2 = scmp.eq.s32.totalorder %s4778_s25, 1  ;;  %p351_p3 = scmp.ne.s32.totalorder %s6073_s20, %s6069_s19 }
   0x8   : > { %s7815_s27 = smov (%p39_p0, %s37_s27), 0  ;;  %p352_p5 = scmp.eq.s32.totalorder %s4779_s26, 1 }
   0x9   : > { %7805 = sst [smem:[#allocation6_spill]] %s7815_s27  ;;  %p6199_p4 = por %p346_p2, %p345_p1 }
   0xa   : > { %s330_s1 = ssub.s32 %s6085_s23, %s7815_s27  ;;  %p4782_p6 = scmp.ge.s32.totalorder %s6089_s24, 1 }
   0xb   : > { %p333_p7 = scmp.eq.s32.totalorder %s330_s1, 0  ;;  %p6206_p8 = por %p352_p5, %p351_p3 }
   0xc   : > { %p451_p9 = scmp.lt.s32.totalorder %s6089_s24, 3 }
   0xd   : > { %s6212_s2 = scalar_select %p333_p7, %s6077_s21, %s335_s28  }
   0xe   : > { %p452_p10 = pnand %p4782_p6, %p451_p9 }
   0xf   : > { %p525_p11 = scmp.lt.s32.totalorder (!%p452_p10), %s6081_s22, 1  ;;  %s5761_s25 = sshll.u32 (!%p452_p10), %s6081_s22, 7 }
  0x10   : > { %455 = sbr.rel (%p452_p10) target bundleno = 1269 (0x4f5), region = 68  ;;  %s4650_s1 = scalar_lea.hbm (!%p452_p10), %s7803_s12, %s5761_s25 }
  0x11   : > { %s4653_s13 = sshll.u32 (!%p452_p10), %s4650_s1, 4  ;;  %s4654_s13 = int_to_ptr.hbm [resolvable:$true] %s4653_s13 }
  0x12   : > { %s6025_s14 = sshra.s32 (!%p452_p10), %s4654_s13, 4  ;;  %s6026_s14 = int_to_ptr.hbm [resolvable:$true] %s6025_s14 }
  0x13   : > { %s6027_s15 = scalar_lea.hbm (!%p452_p10), %s6026_s14, 128  ;;  %p6032_p1 = scmp.lt.s32.totalorder (!%p452_p10), %s6026_s14, %s7803_s12 }
  0x14   : > { %p6028_p12 = scmp.ne.s32.totalorder (!%p452_p10), %s6026_s14, %s6027_s15 }
  0x15   : > { %v5638_v0 = vld [vmem:[%s7794_s3 + $0x38] sm:$0xff]  ;;  %v5637_v2 = vld [vmem:[%s7794_s3 + $0x30] sm:$0xff]  ;;  %v5636_v4 = vld [vmem:[%s7794_s3 + $0x28] sm:$0xff]  ;;  %s526_s17 = scalar_select %p525_p11, %s6081_s22, 1  ;;  %vm821_vm0 = vcmask 257024   ;;  %v6091_v32 = vmov 0  }
  0x16   : > { %v5654_v1 = vld [vmem:[%s7794_s3 + $0x38] sm:$0xff]  ;;  %699 = vmatpush.bf16.msra.mxu0 %v5638_v0  ;;  %v5653_v3 = vld [vmem:[%s7794_s3 + $0x30] sm:$0xff]  ;;  %v5652_v5 = vld [vmem:[%s7794_s3 + $0x28] sm:$0xff]  ;;  %1217 = vst.msk [vmem:[#allocation2] sm:$0xf] %vm821_vm0, %v6091_v32  ;;  %vm1409_vm1 = vcmask 261120   ;;  %p6029_p13 = pnand %p6028_p12, %p6199_p4 }
  0x17   : > { %967 = vmatpush.bf16.msra.mxu1 %v5654_v1  ;;  %v5635_v6 = vld [vmem:[%s7794_s3 + $0x20] sm:$0xff]  ;;  %v5634_v8 = vld [vmem:[%s7794_s3 + $0x18] sm:$0xff]  ;;  %v5633_v10 = vld [vmem:[%s7794_s3 + $0x10] sm:$0xff]  ;;  %s5619_s26 = sshll.u32 %s526_s17, 7  ;;  %1218 = vst.msk [vmem:[#allocation2 + $0x4] sm:$0xf] %vm821_vm0, %v6091_v32 }
  0x18   : > { %v5651_v7 = vld [vmem:[%s7794_s3 + $0x20] sm:$0xff]  ;;  %v5650_v9 = vld [vmem:[%s7794_s3 + $0x18] sm:$0xff]  ;;  %v5649_v11 = vld [vmem:[%s7794_s3 + $0x10] sm:$0xff]  ;;  %s6264_s16 = scalar_lea.vmem %s7791_s0, %s5619_s26  ;;  %1334 = vst.msk [vmem:[#allocation2 + $0x88] sm:$0xf] %vm821_vm0, %v6091_v32  ;;  %vm1580_vm2 = vcmask 1040384   ;;  %p6030_p0 = pneg %p6029_p13 }
  0x19   : > { %v5632_v12 = vld [vmem:[%s7794_s3 + $0x8] sm:$0xff]  ;;  %v5631_v14 = vld [vmem:[%s7794_s3] sm:$0xff]  ;;  %v5625_v20 = vld [vmem:[%s6264_s16 + $0x10] sm:$0xff]  ;;  %1335 = vst.msk [vmem:[#allocation2 + $0x8c] sm:$0xf] %vm821_vm0, %v6091_v32  ;;  %vm1727_vm3 = vcmask 1046528  }
  0x1a   : > { %700 = vmatpush.bf16.msra.mxu0 %v5637_v2  ;;  %v5648_v13 = vld [vmem:[%s7794_s3 + $0x8] sm:$0xff]  ;;  %v5647_v15 = vld [vmem:[%s7794_s3] sm:$0xff]  ;;  %v5641_v21 = vld [vmem:[%s6264_s16 + $0x50] sm:$0xff]  ;;  %s521_s17 = sand.u32 1, %s6073_s20   ;;  %s6031_s26 = scalar_lea.hbm %s7803_s12, 256 }
  0x1b   : > { %968 = vmatpush.bf16.msra.mxu1 %v5653_v3  ;;  %v5623_v16 = vld [vmem:[%s6264_s16] sm:$0xff]  ;;  %v5624_v18 = vld [vmem:[%s6264_s16 + $0x8] sm:$0xff]  ;;  %v5626_v22 = vld [vmem:[%s6264_s16 + $0x18] sm:$0xff]  ;;  %s4783_s18 = sshll.u32 %s521_s17, 7  ;;  %s4636_s22 = scalar_lea.sflag [#allocation4], %s521_s17 }
  0x1c   : > { %v5639_v17 = vld [vmem:[%s6264_s16 + $0x40] sm:$0xff]  ;;  %v5640_v19 = vld [vmem:[%s6264_s16 + $0x48] sm:$0xff]  ;;  %v5642_v23 = vld [vmem:[%s6264_s16 + $0x58] sm:$0xff]  ;;  %s7317_s27 = scalar_lea.vmem [#allocation3], %s4783_s18  ;;  %p6033_p2 = scmp.lt.s32.totalorder %s6031_s26, %s6027_s15 }
  0x1d   : > { %v5627_v24 = vld [vmem:[%s6264_s16 + $0x20] sm:$0xff]  ;;  %v5682_v26 = vld [vmem:[%s7795_s4 + $0x18] sm:$0xff]  ;;  %v5628_v27 = vld [vmem:[%s6264_s16 + $0x28] sm:$0xff] }
  0x1e   : > { %701 = vmatpush.bf16.msra.mxu0 %v5636_v4  ;;  %v5643_v25 = vld [vmem:[%s6264_s16 + $0x60] sm:$0xff]  ;;  %5936 = vmatpush.bf16.msra.mxu2 %v5682_v26  ;;  %v5644_v28 = vld [vmem:[%s6264_s16 + $0x68] sm:$0xff]  ;;  %v5629_v29 = vld [vmem:[%s6264_s16 + $0x30] sm:$0xff]  ;;  %p6034_p3 = por %p6033_p2, %p6032_p1 }
  0x1f   : > { %969 = vmatpush.bf16.msra.mxu1 %v5652_v5  ;;  %v5645_v30 = vld [vmem:[%s6264_s16 + $0x70] sm:$0xff]  ;;  %v5684_v31 = vld [vmem:[%s7795_s4 + $0x8] sm:$0xff]  ;;  %v5683_v34 = vld [vmem:[%s7795_s4] sm:$0xff] }
  0x20   : > { %5938 = vmatpush.bf16.msra.mxu3 %v5684_v31  ;;  %v5681_v33 = vld [vmem:[%s7795_s4 + $0x10] sm:$0xff]  ;;  %v5630_v35 = vld [vmem:[%s6264_s16 + $0x38] sm:$0xff]  ;;  %v6304_v37 = vld [vmem:[%s7797_s6] ss:$0 sm:$0xff]  ;;  %p6035_p5 = pnand %p6034_p3, %p6030_p0 }
  0x21   : > { %v5646_v36 = vld [vmem:[%s6264_s16 + $0x78] sm:$0xff]  ;;  %v6309_v38 = vld [vmem:[%s7797_s6] ss:$0 sm:$0xff] }
  0x22   : > { %702 = vmatpush.bf16.msra.mxu0 %v5635_v6  ;;  %5937 = vmatpush.bf16.msra.mxu2 %v5681_v33  ;;  %v6314_v39 = vld [vmem:[%s7798_s7] ss:$0 sm:$0xff]  ;;  %v5698_v1 = vld [vmem:[%s7795_s4 + $0x38] sm:$0xff] }
  0x23   : > { %970 = vmatpush.bf16.msra.mxu1 %v5651_v7  ;;  %v6316_v40 = vld [vmem:[#allocation2] sm:$0xff]  ;;  %v5700_v2 = vld [vmem:[%s7795_s4 + $0x58] sm:$0xff]  ;;  %v5697_v7 = vld [vmem:[%s7795_s4 + $0x30] sm:$0xff] }
  0x24   : > { %5939 = vmatpush.bf16.msra.mxu3 %v5683_v34  ;;  %v6321_v42 = vld [vmem:[%s7798_s7] ss:$0 sm:$0xff] }
  0x26   : > { %703 = vmatpush.bf16.msra.mxu0 %v5634_v8  ;;  %v5699_v8 = vld [vmem:[%s7795_s4 + $0x50] sm:$0xff] }
  0x27   : > { %971 = vmatpush.bf16.msra.mxu1 %v5650_v9 }
  0x2a   : > { %704 = vmatpush.bf16.msra.mxu0 %v5633_v10 }
  0x2b   : > { %972 = vmatpush.bf16.msra.mxu1 %v5649_v11 }
  0x2e   : > { %705 = vmatpush.bf16.msra.mxu0 %v5632_v12 }
  0x2f   : > { %973 = vmatpush.bf16.msra.mxu1 %v5648_v13 }
  0x32   : > { %706 = vmatpush.bf16.msra.mxu0 %v5631_v14 }
  0x33   : > { %974 = vmatpush.bf16.msra.mxu1 %v5647_v15 }
  0x35   : > { %707 = vmatmul.bf16.vlgmr.msra.gmra.mxu0 %v5623_v16 }
  0x36   : > { %975 = vmatmul.bf16.vlgmr.msra.gmra.mxu1 %v5639_v17  ;;  %1440 = vmatpush.bf16.msrb.mxu0 %v5682_v26  ;;  %v5696_v26 = vld [vmem:[%s7795_s4 + $0x48] sm:$0xff] }
  0x37   : > { %1521 = vmatpush.bf16.msrb.mxu1 %v5684_v31  ;;  %1895 = vmatpush.bf16.msrb.mxu3 %v5696_v26  ;;  %v5685_v26 = vld [vmem:[%s7795_s4 + $0x20] sm:$0xff] }
  0x3a   : > { %1441 = vmatpush.bf16.msrb.mxu0 %v5681_v33 }
  0x3b   : > { %1522 = vmatpush.bf16.msrb.mxu1 %v5683_v34 }
  0x3e   : > { %1977 = vmatpush.bf16.msra.mxu0 %v5698_v1 }
  0x3f   : > { %2123 = vmatpush.bf16.msra.mxu1 %v5700_v2 }
  0x42   : > { %1978 = vmatpush.bf16.msra.mxu0 %v5697_v7 }
  0x43   : > { %2124 = vmatpush.bf16.msra.mxu1 %v5699_v8 }
  0x45   : > { %712 = vmatmul.bf16.gmra.mxu0 %v5624_v18 }
  0x46   : > { %980 = vmatmul.bf16.gmra.mxu1 %v5640_v19 }
  0x55   : > { %717 = vmatmul.bf16.gmra.mxu0 %v5625_v20 }
  0x56   : > { %985 = vmatmul.bf16.gmra.mxu1 %v5641_v21 }
  0x65   : > { %722 = vmatmul.bf16.gmra.mxu0 %v5626_v22 }
  0x66   : > { %990 = vmatmul.bf16.gmra.mxu1 %v5642_v23 }
  0x75   : > { %727 = vmatmul.bf16.gmra.mxu0 %v5627_v24 }
  0x76   : > { %995 = vmatmul.bf16.gmra.mxu1 %v5643_v25 }
  0x85   : > { %732 = vmatmul.bf16.gmra.mxu0 %v5628_v27  ;;  %v5686_v27 = vld [vmem:[%s7795_s4 + $0x28] sm:$0xff] }
  0x86   : > { %1000 = vmatmul.bf16.gmra.mxu1 %v5644_v28  ;;  %1668 = vmatpush.bf16.msrb.mxu2 %v5686_v27 }
  0x8a   : > { %1669 = vmatpush.bf16.msrb.mxu2 %v5685_v26 }
  0x95   : > { %737 = vmatmul.bf16.gmra.mxu0 %v5629_v29 }
  0x96   : > { %1005 = vmatmul.bf16.gmra.mxu1 %v5645_v30 }
  0xa5   : > { %742 = vmatmul.bf16.gmra.mxu0 %v5630_v35 }
  0xa6   : > { %1010 = vmatmul.bf16.gmra.mxu1 %v5646_v36 }
  0xb2   : > { %v708_v41 = vpop.f32.mrf.mxu0 }
  0xb3   : > { %v752_v43 = vmul.f32 %v6304_v37, %v708_v41  ;;  %v976_v44 = vpop.f32.mrf.mxu1 }
  0xb4   : > { %v1020_v45 = vmul.f32 %v6309_v38, %v976_v44 }
  0xb5   : > { %v772_v46 = vadd.f32 %v6314_v39, %v752_v43  ;;  %5050 = vmatmul.msk.bf16.vlgmr.msrb.gmra.mxu0 %vm1409_vm1, %v6316_v40 }
  0xb6   : > { %v1040_v47 = vadd.f32 %v6321_v42, %v1020_v45  ;;  %5066 = vmatmul.msk.bf16.vlgmr.msrb.gmra.mxu1 %vm1409_vm1, %v6316_v40 }
  0xb7   : > { %v788_v48 = vmax.f32 %v772_v46, 0.0 }
  0xb8   : > { %v1056_v49 = vmax.f32 %v1040_v47, 0.0 }
  0xb9   : > { %v804_v50 = vpack.c.bf16 %v788_v48, %v788_v48 }
  0xba   : > { %v710_v51 = vpop.f32.mrf.mxu0  ;;  %v1072_v52 = vpack.c.bf16 %v1056_v49, %v1056_v49 }
  0xbb   : > { %822 = vst.msk [vmem:[#allocation2 + $0x8] sm:$0xf] %vm821_vm0, %v804_v50  ;;  %v753_v53 = vmul.f32 %v6304_v37, %v710_v51  ;;  %v978_v54 = vpop.f32.mrf.mxu1 }
  0xbc   : > { %1089 = vst.msk [vmem:[#allocation2 + $0x48] sm:$0xf] %vm821_vm0, %v1072_v52  ;;  %v1021_v55 = vmul.f32 %v6309_v38, %v978_v54 }
  0xbd   : > { %v773_v56 = vadd.f32 %v6314_v39, %v753_v53 }
  0xbe   : > { %v1041_v57 = vadd.f32 %v6321_v42, %v1021_v55 }
  0xbf   : > { %v789_v58 = vmax.f32 %v773_v56, 0.0 }
  0xc0   : > { %v1057_v59 = vmax.f32 %v1041_v57, 0.0 }
  0xc1   : > { %v805_v60 = vpack.c.bf16 %v789_v58, %v789_v58 }
  0xc2   : > { %v713_v61 = vpop.f32.mrf.mxu0  ;;  %v1073_v62 = vpack.c.bf16 %v1057_v59, %v1057_v59 }
  0xc3   : > { %823 = vst.msk [vmem:[#allocation2 + $0xc] sm:$0xf] %vm821_vm0, %v805_v60  ;;  %v754_v63 = vmul.f32 %v6304_v37, %v713_v61  ;;  %v981_v0 = vpop.f32.mrf.mxu1 }
  0xc4   : > { %1090 = vst.msk [vmem:[#allocation2 + $0x4c] sm:$0xf] %vm821_vm0, %v1073_v62  ;;  %v1022_v3 = vmul.f32 %v6309_v38, %v981_v0 }
  0xc5   : > { %v774_v4 = vadd.f32 %v6314_v39, %v754_v63 }
  0xc6   : > { %v1042_v5 = vadd.f32 %v6321_v42, %v1022_v3 }
  0xc7   : > { %v790_v6 = vmax.f32 %v774_v4, 0.0 }
  0xc8   : > { %v1058_v9 = vmax.f32 %v1042_v5, 0.0 }
  0xc9   : > { %v806_v10 = vpack.c.bf16 %v790_v6, %v790_v6 }
  0xca   : > { %v715_v11 = vpop.f32.mrf.mxu0  ;;  %v1074_v12 = vpack.c.bf16 %v1058_v9, %v1058_v9  ;;  %v6355_v13 = vld [vmem:[#allocation2 + $0x8] sm:$0xff] }
  0xcb   : > { %824 = vst.msk [vmem:[#allocation2 + $0x10] sm:$0xf] %vm821_vm0, %v806_v10  ;;  %v755_v14 = vmul.f32 %v6304_v37, %v715_v11  ;;  %v983_v15 = vpop.f32.mrf.mxu1  ;;  %5051 = vmatmul.msk.bf16.gmra.mxu0 %vm1409_vm1, %v6355_v13  ;;  %5067 = vmatmul.msk.bf16.gmra.mxu1 %vm1409_vm1, %v6355_v13  ;;  %v6401_v0 = vld [vmem:[#allocation2 + $0x8] sm:$0xff] }
  0xcc   : > { %1091 = vst.msk [vmem:[#allocation2 + $0x50] sm:$0xf] %vm821_vm0, %v1074_v12  ;;  %v1023_v16 = vmul.f32 %v6309_v38, %v983_v15 }
  0xcd   : > { %v775_v17 = vadd.f32 %v6314_v39, %v755_v14 }
  0xce   : > { %v1043_v18 = vadd.f32 %v6321_v42, %v1023_v16 }
  0xcf   : > { %v791_v19 = vmax.f32 %v775_v17, 0.0 }
  0xd0   : > { %v1059_v20 = vmax.f32 %v1043_v18, 0.0 }
  0xd1   : > { %v807_v21 = vpack.c.bf16 %v791_v19, %v791_v19 }
  0xd2   : > { %v718_v22 = vpop.f32.mrf.mxu0  ;;  %v1075_v23 = vpack.c.bf16 %v1059_v20, %v1059_v20 }
  0xd3   : > { %825 = vst.msk [vmem:[#allocation2 + $0x14] sm:$0xf] %vm821_vm0, %v807_v21  ;;  %v756_v24 = vmul.f32 %v6304_v37, %v718_v22  ;;  %v986_v25 = vpop.f32.mrf.mxu1 }
  0xd4   : > { %1092 = vst.msk [vmem:[#allocation2 + $0x54] sm:$0xf] %vm821_vm0, %v1075_v23  ;;  %v1024_v28 = vmul.f32 %v6309_v38, %v986_v25  ;;  %v5695_v25 = vld [vmem:[%s7795_s4 + $0x40] sm:$0xff] }
  0xd5   : > { %v776_v29 = vadd.f32 %v6314_v39, %v756_v24  ;;  %1896 = vmatpush.bf16.msrb.mxu3 %v5695_v25 }
  0xd6   : > { %v1044_v30 = vadd.f32 %v6321_v42, %v1024_v28 }
  0xd7   : > { %v792_v31 = vmax.f32 %v776_v29, 0.0 }
  0xd8   : > { %v1060_v32 = vmax.f32 %v1044_v30, 0.0 }
  0xd9   : > { %v808_v33 = vpack.c.bf16 %v792_v31, %v792_v31 }
  0xda   : > { %v720_v34 = vpop.f32.mrf.mxu0  ;;  %v1076_v35 = vpack.c.bf16 %v1060_v32, %v1060_v32  ;;  %v6379_v36 = vld [vmem:[#allocation2 + $0x10] sm:$0xff] }
  0xdb   : > { %826 = vst.msk [vmem:[#allocation2 + $0x18] sm:$0xf] %vm821_vm0, %v808_v33  ;;  %v757_v41 = vmul.f32 %v6304_v37, %v720_v34  ;;  %v988_v43 = vpop.f32.mrf.mxu1  ;;  %5052 = vmatmul.msk.bf16.gmra.mxu0 %vm1409_vm1, %v6379_v36  ;;  %5068 = vmatmul.msk.bf16.gmra.mxu1 %vm1409_vm1, %v6379_v36  ;;  %v6425_v23 = vld [vmem:[#allocation2 + $0x10] sm:$0xff] }
  0xdc   : > { %1093 = vst.msk [vmem:[#allocation2 + $0x58] sm:$0xf] %vm821_vm0, %v1076_v35  ;;  %v1025_v44 = vmul.f32 %v6309_v38, %v988_v43 }
  0xdd   : > { %v777_v45 = vadd.f32 %v6314_v39, %v757_v41 }
  0xde   : > { %v1045_v46 = vadd.f32 %v6321_v42, %v1025_v44 }
  0xdf   : > { %v793_v47 = vmax.f32 %v777_v45, 0.0 }
  0xe0   : > { %v1061_v48 = vmax.f32 %v1045_v46, 0.0 }
  0xe1   : > { %v809_v49 = vpack.c.bf16 %v793_v47, %v793_v47 }
  0xe2   : > { %v723_v50 = vpop.f32.mrf.mxu0  ;;  %v1077_v51 = vpack.c.bf16 %v1061_v48, %v1061_v48 }
  0xe3   : > { %827 = vst.msk [vmem:[#allocation2 + $0x1c] sm:$0xf] %vm821_vm0, %v809_v49  ;;  %v758_v52 = vmul.f32 %v6304_v37, %v723_v50  ;;  %v991_v53 = vpop.f32.mrf.mxu1 }
  0xe4   : > { %1094 = vst.msk [vmem:[#allocation2 + $0x5c] sm:$0xf] %vm821_vm0, %v1077_v51  ;;  %v1026_v54 = vmul.f32 %v6309_v38, %v991_v53 }
  0xe5   : > { %v778_v55 = vadd.f32 %v6314_v39, %v758_v52 }
  0xe6   : > { %v1046_v56 = vadd.f32 %v6321_v42, %v1026_v54 }
  0xe7   : > { %v794_v57 = vmax.f32 %v778_v55, 0.0 }
  0xe8   : > { %v1062_v58 = vmax.f32 %v1046_v56, 0.0 }
  0xe9   : > { %v810_v59 = vpack.c.bf16 %v794_v57, %v794_v57 }
  0xea   : > { %v725_v60 = vpop.f32.mrf.mxu0  ;;  %v1078_v61 = vpack.c.bf16 %v1062_v58, %v1062_v58  ;;  %v6397_v62 = vld [vmem:[#allocation2 + $0x18] sm:$0xff] }
  0xeb   : > { %828 = vst.msk [vmem:[#allocation2 + $0x20] sm:$0xf] %vm821_vm0, %v810_v59  ;;  %v759_v63 = vmul.f32 %v6304_v37, %v725_v60  ;;  %v993_v1 = vpop.f32.mrf.mxu1  ;;  %5053 = vmatmul.msk.bf16.vlgmr.msra.gmra.mxu2 %vm1409_vm1, %v6397_v62  ;;  %5069 = vmatmul.msk.bf16.vlgmr.msra.gmra.mxu3 %vm1409_vm1, %v6397_v62  ;;  %v6455_v53 = vld [vmem:[#allocation2 + $0x18] sm:$0xff] }
  0xec   : > { %1095 = vst.msk [vmem:[#allocation2 + $0x60] sm:$0xf] %vm821_vm0, %v1078_v61  ;;  %v1027_v2 = vmul.f32 %v6309_v38, %v993_v1  ;;  %5158 = vmatmul.msk.bf16.vlgmr.msra.gmra.mxu0 %vm1409_vm1, %v6401_v0  ;;  %5178 = vmatmul.msk.bf16.vlgmr.msra.gmra.mxu1 %vm1409_vm1, %v6401_v0 }
  0xed   : > { %v779_v3 = vadd.f32 %v6314_v39, %v759_v63 }
  0xee   : > { %v1047_v4 = vadd.f32 %v6321_v42, %v1027_v2 }
  0xef   : > { %v795_v5 = vmax.f32 %v779_v3, 0.0 }
  0xf0   : > { %v1063_v6 = vmax.f32 %v1047_v4, 0.0 }
  0xf1   : > { %v811_v7 = vpack.c.bf16 %v795_v5, %v795_v5 }
  0xf2   : > { %v728_v8 = vpop.f32.mrf.mxu0  ;;  %v1079_v9 = vpack.c.bf16 %v1063_v6, %v1063_v6 }
  0xf3   : > { %829 = vst.msk [vmem:[#allocation2 + $0x24] sm:$0xf] %vm821_vm0, %v811_v7  ;;  %v760_v10 = vmul.f32 %v6304_v37, %v728_v8  ;;  %v996_v11 = vpop.f32.mrf.mxu1 }
  0xf4   : > { %1096 = vst.msk [vmem:[#allocation2 + $0x64] sm:$0xf] %vm821_vm0, %v1079_v9  ;;  %v1028_v12 = vmul.f32 %v6309_v38, %v996_v11 }
  0xf5   : > { %v780_v14 = vadd.f32 %v6314_v39, %v760_v10 }
  0xf6   : > { %v1048_v15 = vadd.f32 %v6321_v42, %v1028_v12 }
  0xf7   : > { %v796_v16 = vmax.f32 %v780_v14, 0.0 }
  0xf8   : > { %v1064_v17 = vmax.f32 %v1048_v15, 0.0 }
  0xf9   : > { %v812_v18 = vpack.c.bf16 %v796_v16, %v796_v16 }
  0xfa   : > { %v730_v19 = vpop.f32.mrf.mxu0  ;;  %v1080_v20 = vpack.c.bf16 %v1064_v17, %v1064_v17  ;;  %v6421_v21 = vld [vmem:[#allocation2 + $0x20] sm:$0xff] }
  0xfb   : > { %830 = vst.msk [vmem:[#allocation2 + $0x28] sm:$0xf] %vm821_vm0, %v812_v18  ;;  %v761_v22 = vmul.f32 %v6304_v37, %v730_v19  ;;  %v998_v24 = vpop.f32.mrf.mxu1  ;;  %5054 = vmatmul.msk.bf16.gmra.mxu2 %vm1409_vm1, %v6421_v21  ;;  %5070 = vmatmul.msk.bf16.gmra.mxu3 %vm1409_vm1, %v6421_v21  ;;  %v6479_v14 = vld [vmem:[#allocation2 + $0x20] sm:$0xff]  ;;  %v5712_v18 = vld [vmem:[%s7795_s4 + $0x68] sm:$0xff]  ;;  %v5710_v19 = vld [vmem:[%s7795_s4 + $0x78] sm:$0xff] }
  0xfc   : > { %1097 = vst.msk [vmem:[#allocation2 + $0x68] sm:$0xf] %vm821_vm0, %v1080_v20  ;;  %v1029_v27 = vmul.f32 %v6309_v38, %v998_v24  ;;  %5159 = vmatmul.msk.bf16.gmra.mxu0 %vm1409_vm1, %v6425_v23  ;;  %5179 = vmatmul.msk.bf16.gmra.mxu1 %vm1409_vm1, %v6425_v23 }
  0xfd   : > { %v781_v28 = vadd.f32 %v6314_v39, %v761_v22  ;;  %v5714_v22 = vld [vmem:[%s7795_s4 + $0x88] sm:$0xff]  ;;  %2432 = vmatpush.bf16.msra.mxu3 %v5712_v18  ;;  %2350 = vmatpush.bf16.msra.mxu2 %v5710_v19 }
  0xfe   : > { %v1049_v29 = vadd.f32 %v6321_v42, %v1029_v27  ;;  %2578 = vmatpush.bf16.msrb.mxu0 %v5714_v22 }
  0xff   : > { %v797_v30 = vmax.f32 %v781_v28, 0.0 }
 0x100   : > { %v1065_v31 = vmax.f32 %v1049_v29, 0.0 }
 0x101   : > { %v813_v32 = vpack.c.bf16 %v797_v30, %v797_v30 }
 0x102   : > { %v733_v33 = vpop.f32.mrf.mxu0  ;;  %v1081_v34 = vpack.c.bf16 %v1065_v31, %v1065_v31 }
 0x103   : > { %831 = vst.msk [vmem:[#allocation2 + $0x2c] sm:$0xf] %vm821_vm0, %v813_v32  ;;  %v762_v35 = vmul.f32 %v6304_v37, %v733_v33  ;;  %v1001_v41 = vpop.f32.mrf.mxu1 }
 0x104   : > { %1098 = vst.msk [vmem:[#allocation2 + $0x6c] sm:$0xf] %vm821_vm0, %v1081_v34  ;;  %v1030_v43 = vmul.f32 %v6309_v38, %v1001_v41 }
 0x105   : > { %v782_v44 = vadd.f32 %v6314_v39, %v762_v35 }
 0x106   : > { %v1050_v45 = vadd.f32 %v6321_v42, %v1030_v43 }
 0x107   : > { %v798_v46 = vmax.f32 %v782_v44, 0.0 }
 0x108   : > { %v1066_v47 = vmax.f32 %v1050_v45, 0.0 }
 0x109   : > { %v814_v48 = vpack.c.bf16 %v798_v46, %v798_v46 }
 0x10a   : > { %v735_v49 = vpop.f32.mrf.mxu0  ;;  %v1082_v50 = vpack.c.bf16 %v1066_v47, %v1066_v47  ;;  %v6451_v51 = vld [vmem:[#allocation2 + $0x28] sm:$0xff] }
 0x10b   : > { %832 = vst.msk [vmem:[#allocation2 + $0x30] sm:$0xf] %vm821_vm0, %v814_v48  ;;  %v763_v52 = vmul.f32 %v6304_v37, %v735_v49  ;;  %v1003_v54 = vpop.f32.mrf.mxu1  ;;  %5055 = vmatmul.msk.bf16.gmra.mxu2 %vm1409_vm1, %v6451_v51  ;;  %5071 = vmatmul.msk.bf16.gmra.mxu3 %vm1409_vm1, %v6451_v51  ;;  %v6511_v46 = vld [vmem:[#allocation2 + $0x28] sm:$0xff] }
 0x10c   : > { %1099 = vst.msk [vmem:[#allocation2 + $0x70] sm:$0xf] %vm821_vm0, %v1082_v50  ;;  %v1031_v55 = vmul.f32 %v6309_v38, %v1003_v54  ;;  %5160 = vmatmul.msk.bf16.gmra.mxu0 %vm1409_vm1, %v6455_v53  ;;  %5180 = vmatmul.msk.bf16.gmra.mxu1 %vm1409_vm1, %v6455_v53 }
 0x10d   : > { %v783_v56 = vadd.f32 %v6314_v39, %v763_v52 }
 0x10e   : > { %v1051_v57 = vadd.f32 %v6321_v42, %v1031_v55 }
 0x10f   : > { %v799_v58 = vmax.f32 %v783_v56, 0.0 }
 0x110   : > { %v1067_v59 = vmax.f32 %v1051_v57, 0.0 }
 0x111   : > { %v815_v60 = vpack.c.bf16 %v799_v58, %v799_v58 }
 0x112   : > { %v738_v61 = vpop.f32.mrf.mxu0  ;;  %v1083_v63 = vpack.c.bf16 %v1067_v59, %v1067_v59 }
 0x113   : > { %833 = vst.msk [vmem:[#allocation2 + $0x34] sm:$0xf] %vm821_vm0, %v815_v60  ;;  %v764_v1 = vmul.f32 %v6304_v37, %v738_v61  ;;  %v1006_v2 = vpop.f32.mrf.mxu1 }
 0x114   : > { %1100 = vst.msk [vmem:[#allocation2 + $0x74] sm:$0xf] %vm821_vm0, %v1083_v63  ;;  %v1032_v3 = vmul.f32 %v6309_v38, %v1006_v2 }
 0x115   : > { %v784_v4 = vadd.f32 %v6314_v39, %v764_v1 }
 0x116   : > { %v1052_v5 = vadd.f32 %v6321_v42, %v1032_v3 }
 0x117   : > { %v800_v6 = vmax.f32 %v784_v4, 0.0 }
 0x118   : > { %v1068_v7 = vmax.f32 %v1052_v5, 0.0 }
 0x119   : > { %v816_v8 = vpack.c.bf16 %v800_v6, %v800_v6 }
 0x11a   : > { %v740_v9 = vpop.f32.mrf.mxu0  ;;  %v1084_v10 = vpack.c.bf16 %v1068_v7, %v1068_v7  ;;  %v6475_v11 = vld [vmem:[#allocation2 + $0x30] sm:$0xff] }
 0x11b   : > { %834 = vst.msk [vmem:[#allocation2 + $0x38] sm:$0xf] %vm821_vm0, %v816_v8  ;;  %v765_v12 = vmul.f32 %v6304_v37, %v740_v9  ;;  %v1008_v15 = vpop.f32.mrf.mxu1  ;;  %5056 = vmatmul.msk.bf16.gmra.mxu2 %vm1409_vm1, %v6475_v11  ;;  %5072 = vmatmul.msk.bf16.gmra.mxu3 %vm1409_vm1, %v6475_v11 }
 0x11c   : > { %1101 = vst.msk [vmem:[#allocation2 + $0x78] sm:$0xf] %vm821_vm0, %v1084_v10  ;;  %v1033_v16 = vmul.f32 %v6309_v38, %v1008_v15  ;;  %5161 = vmatmul.msk.bf16.gmra.mxu0 %vm1409_vm1, %v6479_v14  ;;  %5181 = vmatmul.msk.bf16.gmra.mxu1 %vm1409_vm1, %v6479_v14  ;;  %v6601_v15 = vld [vmem:[#allocation2 + $0x18] sm:$0xff] }
 0x11d   : > { %v785_v17 = vadd.f32 %v6314_v39, %v765_v12 }
 0x11e   : > { %v1053_v20 = vadd.f32 %v6321_v42, %v1033_v16 }
 0x11f   : > { %v801_v24 = vmax.f32 %v785_v17, 0.0 }
 0x120   : > { %v1069_v25 = vmax.f32 %v1053_v20, 0.0 }
 0x121   : > { %v817_v26 = vpack.c.bf16 %v801_v24, %v801_v24 }
 0x122   : > { %v1085_v27 = vpack.c.bf16 %v1069_v25, %v1069_v25  ;;  %v743_v28 = vpop.f32.mrf.mxu0 }
 0x123   : > { %835 = vst.msk [vmem:[#allocation2 + $0x3c] sm:$0xf] %vm821_vm0, %v817_v26  ;;  %v766_v29 = vmul.f32 %v6304_v37, %v743_v28  ;;  %v1011_v30 = vpop.f32.mrf.mxu1 }
 0x124   : > { %1102 = vst.msk [vmem:[#allocation2 + $0x7c] sm:$0xf] %vm821_vm0, %v1085_v27  ;;  %v1034_v31 = vmul.f32 %v6309_v38, %v1011_v30 }
 0x125   : > { %v786_v32 = vadd.f32 %v6314_v39, %v766_v29 }
 0x126   : > { %v1054_v33 = vadd.f32 %v6321_v42, %v1034_v31 }
 0x127   : > { %v802_v34 = vmax.f32 %v786_v32, 0.0  ;;  %v6623_v32 = vld [vmem:[#allocation2 + $0x20] sm:$0xff] }
 0x128   : > { %v1070_v35 = vmax.f32 %v1054_v33, 0.0 }
 0x129   : > { %v818_v41 = vpack.c.bf16 %v802_v34, %v802_v34 }
 0x12a   : > { %v1086_v43 = vpack.c.bf16 %v1070_v35, %v1070_v35  ;;  %v6508_v44 = vld [vmem:[#allocation2 + $0x38] sm:$0xff]  ;;  %v745_v45 = vpop.f32.mrf.mxu0 }
 0x12b   : > { %836 = vst.msk [vmem:[#allocation2 + $0x40] sm:$0xf] %vm821_vm0, %v818_v41  ;;  %v767_v47 = vmul.f32 %v6304_v37, %v745_v45  ;;  %v1013_v48 = vpop.f32.mrf.mxu1  ;;  %5057 = vmatmul.msk.bf16.gmra.mxu2 %vm1409_vm1, %v6508_v44  ;;  %5073 = vmatmul.msk.bf16.gmra.mxu3 %vm1409_vm1, %v6508_v44  ;;  %v6547_v59 = vld [vmem:[#allocation2 + $0x38] sm:$0xff] }
 0x12c   : > { %1103 = vst.msk [vmem:[#allocation2 + $0x80] sm:$0xf] %vm821_vm0, %v1086_v43  ;;  %v1035_v49 = vmul.f32 %v6309_v38, %v1013_v48  ;;  %5162 = vmatmul.msk.bf16.gmra.mxu0 %vm1409_vm1, %v6511_v46  ;;  %5182 = vmatmul.msk.bf16.gmra.mxu1 %vm1409_vm1, %v6511_v46  ;;  %v6530_v38 = vld [vmem:[#allocation2 + $0x30] sm:$0xff] }
 0x12d   : > { %v787_v50 = vadd.f32 %v6314_v39, %v767_v47 }
 0x12e   : > { %v1055_v37 = vadd.f32 %v6321_v42, %v1035_v49  ;;  %v5713_v42 = vld [vmem:[%s7795_s4 + $0x80] sm:$0xff] }
 0x12f   : > { %v803_v52 = vmax.f32 %v787_v50, 0.0  ;;  %2579 = vmatpush.bf16.msrb.mxu0 %v5713_v42 }
 0x130   : > { %v1071_v54 = vmax.f32 %v1055_v37, 0.0 }
 0x131   : > { %v819_v55 = vpack.c.bf16 %v803_v52, %v803_v52 }
 0x132   : > { %v1087_v56 = vpack.c.bf16 %v1071_v54, %v1071_v54  ;;  %v6528_v57 = vpop.f32.mrf.mxu0 }
 0x133   : > { %837 = vst.msk [vmem:[#allocation2 + $0x44] sm:$0xf] %vm821_vm0, %v819_v55  ;;  %v6645_v55 = vld [vmem:[#allocation2 + $0x28] sm:$0xff] }
 0x134   : > { %1104 = vst.msk [vmem:[#allocation2 + $0x84] sm:$0xf] %vm821_vm0, %v1087_v56 }
 0x13a   : > { %v6540_v39 = vpop.f32.mrf.mxu0  ;;  %v6561_v60 = vld [vmem:[#allocation2 + $0x40] sm:$0xff] }
 0x13b   : > { %5086 = vmatmul.msk.bf16.vlgmr.msrb.gmra.mxu2 %vm1409_vm1, %v6316_v40  ;;  %5138 = vmatmul.msk.bf16.vlgmr.msrb.gmra.mxu3 %vm1409_vm1, %v6401_v0 }
 0x13c   : > { %5163 = vmatmul.msk.bf16.gmra.mxu0 %vm1409_vm1, %v6530_v38  ;;  %5183 = vmatmul.msk.bf16.gmra.mxu1 %vm1409_vm1, %v6530_v38 }
 0x148   : > { %v6545_v58 = vpop.f32.mrf.mxu0 }
 0x14b   : > { %5087 = vmatmul.msk.bf16.gmra.mxu2 %vm1409_vm1, %v6355_v13  ;;  %5139 = vmatmul.msk.bf16.gmra.mxu3 %vm1409_vm1, %v6425_v23  ;;  %v5711_v13 = vld [vmem:[%s7795_s4 + $0x60] sm:$0xff]  ;;  %v5709_v23 = vld [vmem:[%s7795_s4 + $0x70] sm:$0xff] }
 0x14c   : > { %5164 = vmatmul.msk.bf16.gmra.mxu0 %vm1409_vm1, %v6547_v59  ;;  %5184 = vmatmul.msk.bf16.gmra.mxu1 %vm1409_vm1, %v6547_v59 }
 0x14d   : > { %2433 = vmatpush.bf16.msra.mxu3 %v5711_v13  ;;  %2351 = vmatpush.bf16.msra.mxu2 %v5709_v23 }
 0x150   : > { %v6557_v40 = vpop.f32.mrf.mxu0 }
 0x158   : > { %v6559_v0 = vpop.f32.mrf.mxu0 }
 0x15b   : > { %5088 = vmatmul.msk.bf16.gmra.mxu2 %vm1409_vm1, %v6379_v36  ;;  %5140 = vmatmul.msk.bf16.gmra.mxu3 %vm1409_vm1, %v6455_v53  ;;  %v6581_v53 = vld [vmem:[#allocation2 + $0x10] sm:$0xff] }
 0x15c   : > { %5165 = vmatmul.msk.bf16.gmra.mxu0 %vm1409_vm1, %v6561_v60  ;;  %5185 = vmatmul.msk.bf16.gmra.mxu1 %vm1409_vm1, %v6561_v60 }
 0x160   : > { %v6577_v36 = vpop.f32.mrf.mxu0 }
 0x169   : > { %v6579_v61 = vpop.f32.mrf.mxu0 }
 0x16a   : > { %v2036_v5 = vrot.slane %v6579_v61, 7 }
 0x16b   : > { %5089 = vmatmul.msk.bf16.gmra.mxu2 %vm1409_vm1, %v6397_v62  ;;  %5141 = vmatmul.msk.bf16.gmra.mxu3 %vm1409_vm1, %v6479_v14 }
 0x16c   : > { %5270 = vmatmul.msk.bf16.vlgmr.msrb.gmra.mxu0 %vm1409_vm1, %v6581_v53 }
 0x16e   : > { %v1458_v63 = vpop.f32.mrf.mxu2  ;;  %v1539_v1 = vpop.f32.mrf.mxu3 }
 0x16f   : > { %v1590_v2 = vrot.slane %v1539_v1, 7 }
 0x171   : > { %v1624_v3 = vsel %vm1580_vm2, 0.0, %v1590_v2  ;;  %v1982_v4 = vpop.f32.mrf.mxu0 }
 0x172   : > { %v6591_v6 = vadd.f32 %v1624_v3, %v1458_v63  ;;  %v2037_v7 = vrot.slane %v1982_v4, 7 }
 0x174   : > { %v6596_v62 = vsel %vm1580_vm2, %v2036_v5, %v2037_v7 }
 0x176   : > { %v1460_v8 = vpop.f32.mrf.mxu2  ;;  %v1541_v9 = vpop.f32.mrf.mxu3 }
 0x177   : > { %v1591_v10 = vrot.slane %v1541_v9, 7 }
 0x179   : > { %v1592_v12 = vsel %vm1580_vm2, %v1590_v2, %v1591_v10  ;;  %v6599_v14 = vpop.f32.mrf.mxu0  ;;  %v6667_v10 = vld [vmem:[#allocation2 + $0x30] sm:$0xff] }
 0x17a   : > { %v6603_v16 = vadd.f32 %v1592_v12, %v1460_v8  ;;  %v2039_v24 = vrot.slane %v6599_v14, 7 }
 0x17b   : > { %5090 = vmatmul.msk.bf16.gmra.mxu2 %vm1409_vm1, %v6421_v21  ;;  %5142 = vmatmul.msk.bf16.gmra.mxu3 %vm1409_vm1, %v6511_v46 }
 0x17c   : > { %5271 = vmatmul.msk.bf16.gmra.mxu0 %vm1409_vm1, %v6601_v15 }
 0x17e   : > { %v1463_v17 = vpop.f32.mrf.mxu2  ;;  %v1544_v18 = vpop.f32.mrf.mxu3 }
 0x17f   : > { %v1593_v19 = vrot.slane %v1544_v18, 7 }
 0x181   : > { %v1625_v20 = vsel %vm1580_vm2, 0.0, %v1593_v19  ;;  %v1987_v22 = vpop.f32.mrf.mxu0 }
 0x182   : > { %v6613_v25 = vadd.f32 %v1625_v20, %v1463_v17  ;;  %v2040_v26 = vrot.slane %v1987_v22, 7  ;;  %v1524_v17 = vpop.f32.mrf.mxu1 }
 0x184   : > { %v6618_v21 = vsel %vm1580_vm2, %v2039_v24, %v2040_v26 }
 0x186   : > { %v1465_v27 = vpop.f32.mrf.mxu2  ;;  %v1546_v28 = vpop.f32.mrf.mxu3 }
 0x187   : > { %v1594_v29 = vrot.slane %v1546_v28, 7 }
 0x189   : > { %v1595_v30 = vsel %vm1580_vm2, %v1593_v19, %v1594_v29  ;;  %v6621_v31 = vpop.f32.mrf.mxu0 }
 0x18a   : > { %v6625_v33 = vadd.f32 %v1595_v30, %v1465_v27  ;;  %v2042_v46 = vrot.slane %v6621_v31, 7  ;;  %v1526_v30 = vpop.f32.mrf.mxu1  ;;  %v5725_v31 = vld [vmem:[%s7795_s4 + $0x10] sm:$0xff] }
 0x18b   : > { %5091 = vmatmul.msk.bf16.gmra.mxu2 %vm1409_vm1, %v6451_v51  ;;  %5143 = vmatmul.msk.bf16.gmra.mxu3 %vm1409_vm1, %v6530_v38 }
 0x18c   : > { %5272 = vmatmul.msk.bf16.gmra.mxu0 %vm1409_vm1, %v6623_v32 }
 0x18e   : > { %v1468_v34 = vpop.f32.mrf.mxu2  ;;  %v1549_v35 = vpop.f32.mrf.mxu3 }
 0x18f   : > { %v1596_v41 = vrot.slane %v1549_v35, 7 }
 0x191   : > { %v1626_v43 = vsel %vm1580_vm2, 0.0, %v1596_v41  ;;  %v1992_v45 = vpop.f32.mrf.mxu0 }
 0x192   : > { %v6635_v47 = vadd.f32 %v1626_v43, %v1468_v34  ;;  %v2043_v48 = vrot.slane %v1992_v45, 7 }
 0x194   : > { %v6640_v51 = vsel %vm1580_vm2, %v2042_v46, %v2043_v48  ;;  %v6692_v48 = vld [vmem:[#allocation2 + $0x38] sm:$0xff] }
 0x196   : > { %v1470_v49 = vpop.f32.mrf.mxu2  ;;  %v1551_v50 = vpop.f32.mrf.mxu3 }
 0x197   : > { %v1597_v37 = vrot.slane %v1551_v50, 7 }
 0x199   : > { %v1598_v52 = vsel %vm1580_vm2, %v1596_v41, %v1597_v37  ;;  %v6643_v54 = vpop.f32.mrf.mxu0 }
 0x19a   : > { %v6647_v56 = vadd.f32 %v1598_v52, %v1470_v49  ;;  %v2045_v1 = vrot.slane %v6643_v54, 7  ;;  %v5716_v52 = vld [vmem:[%s7796_s5 + $0x8] sm:$0xff] }
 0x19b   : > { %5092 = vmatmul.msk.bf16.gmra.mxu2 %vm1409_vm1, %v6475_v11  ;;  %5144 = vmatmul.msk.bf16.gmra.mxu3 %vm1409_vm1, %v6547_v59 }
 0x19c   : > { %5273 = vmatmul.msk.bf16.gmra.mxu0 %vm1409_vm1, %v6645_v55  ;;  %2811 = vmatpush.bf16.msrb.mxu1 %v5716_v52 }
 0x19e   : > { %v1473_v38 = vpop.f32.mrf.mxu2  ;;  %v1554_v42 = vpop.f32.mrf.mxu3 }
 0x19f   : > { %v1599_v13 = vrot.slane %v1554_v42, 7  ;;  %v1581_v42 = vrot.slane %v1524_v17, 7 }
 0x1a1   : > { %v1627_v23 = vsel %vm1580_vm2, 0.0, %v1599_v13  ;;  %v1997_v63 = vpop.f32.mrf.mxu0 }
 0x1a2   : > { %v6657_v2 = vadd.f32 %v1627_v23, %v1473_v38  ;;  %v2046_v3 = vrot.slane %v1997_v63, 7  ;;  %v1529_v38 = vpop.f32.mrf.mxu1 }
 0x1a4   : > { %v6662_v11 = vsel %vm1580_vm2, %v2045_v1, %v2046_v3 }
 0x1a6   : > { %v1475_v59 = vpop.f32.mrf.mxu2  ;;  %v1556_v4 = vpop.f32.mrf.mxu3 }
 0x1a7   : > { %v1600_v7 = vrot.slane %v1556_v4, 7  ;;  %v1621_v4 = vsel %vm1580_vm2, 0.0, %v1581_v42 }
 0x1a9   : > { %v1601_v8 = vsel %vm1580_vm2, %v1599_v13, %v1600_v7  ;;  %v6665_v9 = vpop.f32.mrf.mxu0  ;;  %v1582_v13 = vrot.slane %v1526_v30, 7 }
 0x1aa   : > { %v6669_v12 = vadd.f32 %v1601_v8, %v1475_v59  ;;  %v2048_v27 = vrot.slane %v6665_v9, 7 }
 0x1ab   : > { %5093 = vmatmul.msk.bf16.gmra.mxu2 %vm1409_vm1, %v6508_v44  ;;  %5145 = vmatmul.msk.bf16.gmra.mxu3 %vm1409_vm1, %v6561_v60  ;;  %v5726_v44 = vld [vmem:[%s7795_s4 + $0x18] sm:$0xff]  ;;  %v1583_v7 = vsel %vm1580_vm2, %v1581_v42, %v1582_v13 }
 0x1ac   : > { %5274 = vmatmul.msk.bf16.gmra.mxu0 %vm1409_vm1, %v6667_v10  ;;  %3093 = vmatpush.bf16.msrb.mxu2 %v5726_v44 }
 0x1ae   : > { %v1478_v18 = vpop.f32.mrf.mxu2  ;;  %v1559_v19 = vpop.f32.mrf.mxu3 }
 0x1af   : > { %v1602_v20 = vrot.slane %v1559_v19, 7 }
 0x1b0   : > { %3094 = vmatpush.bf16.msrb.mxu2 %v5725_v31  ;;  %v2080_v31 = vsel %vm1580_vm2, 0.0, %v2048_v27 }
 0x1b1   : > { %v1628_v22 = vsel %vm1580_vm2, 0.0, %v1602_v20  ;;  %v2002_v26 = vpop.f32.mrf.mxu0 }
 0x1b2   : > { %v6679_v28 = vadd.f32 %v1628_v22, %v1478_v18  ;;  %v2049_v29 = vrot.slane %v2002_v26, 7  ;;  %v1629_v22 = vadd.f32 %v1621_v4, %v6528_v57  ;;  %v1630_v26 = vadd.f32 %v1583_v7, %v6540_v39 }
 0x1b4   : > { %v6687_v60 = vsel %vm1580_vm2, %v2048_v27, %v2049_v29  ;;  %v1531_v29 = vpop.f32.mrf.mxu1 }
 0x1b6   : > { %v1480_v34 = vpop.f32.mrf.mxu2  ;;  %v1561_v35 = vpop.f32.mrf.mxu3 }
 0x1b7   : > { %v1603_v41 = vrot.slane %v1561_v35, 7 }
 0x1b9   : > { %v1604_v43 = vsel %vm1580_vm2, %v1602_v20, %v1603_v41  ;;  %v6690_v45 = vpop.f32.mrf.mxu0  ;;  %v5729_v20 = vld [vmem:[%s7795_s4 + $0x20] sm:$0xff] }
 0x1ba   : > { %v6694_v49 = vadd.f32 %v1604_v43, %v1480_v34  ;;  %v2051_v63 = vrot.slane %v6690_v45, 7  ;;  %v6725_v43 = vld [vmem:[#allocation2 + $0x40] sm:$0xff] }
 0x1bb   : > { %5230 = vmatmul.msk.bf16.vlgmr.msra.gmra.mxu2 %vm1409_vm1, %v6581_v53  ;;  %5250 = vmatmul.msk.bf16.vlgmr.msra.gmra.mxu3 %vm1409_vm1, %v6581_v53  ;;  %v5730_v53 = vld [vmem:[%s7795_s4 + $0x28] sm:$0xff] }
 0x1bc   : > { %5275 = vmatmul.msk.bf16.gmra.mxu0 %vm1409_vm1, %v6692_v48 }
 0x1bd   : > { %3319 = vmatpush.bf16.msra.mxu0 %v5730_v53  ;;  %v1585_v53 = vrot.slane %v1531_v29, 7 }
 0x1be   : > { %v1671_v50 = vpop.f32.mrf.mxu2  ;;  %v1898_v37 = vpop.f32.mrf.mxu3 }
 0x1bf   : > { %v1728_v18 = vrot.slane %v1671_v50, 1  ;;  %v2076_v50 = vsel %vm1580_vm2, 0.0, %v2036_v5 }
 0x1c1   : > { %v2007_v23 = vpop.f32.mrf.mxu0  ;;  %3320 = vmatpush.bf16.msra.mxu0 %v5729_v20 }
 0x1c2   : > { %v2052_v3 = vrot.slane %v2007_v23, 7 }
 0x1c4   : > { %v6712_v59 = vsel %vm1580_vm2, %v2051_v63, %v2052_v3  ;;  %v1584_v3 = vrot.slane %v1529_v38, 7 }
 0x1c6   : > { %v1673_v8 = vpop.f32.mrf.mxu2  ;;  %v1900_v17 = vpop.f32.mrf.mxu3  ;;  %v1622_v5 = vsel %vm1580_vm2, 0.0, %v1584_v3 }
 0x1c7   : > { %v1729_v19 = vrot.slane %v1673_v8, 1  ;;  %v1534_v8 = vpop.f32.mrf.mxu1  ;;  %v1631_v38 = vadd.f32 %v1622_v5, %v6545_v58 }
 0x1c9   : > { %v1730_v44 = vsel %vm1727_vm3, %v1728_v18, %v1729_v19  ;;  %v1768_v30 = vsel %vm1727_vm3, %v1729_v19, 0.0  ;;  %v6723_v34 = vpop.f32.mrf.mxu0 }
 0x1ca   : > { %v1776_v35 = vadd.f32 %v1730_v44, %v1629_v22  ;;  %v1777_v41 = vadd.f32 %v1768_v30, %v1630_v26 }
 0x1cb   : > { %5231 = vmatmul.msk.bf16.gmra.mxu2 %vm1409_vm1, %v6601_v15  ;;  %5251 = vmatmul.msk.bf16.gmra.mxu3 %vm1409_vm1, %v6601_v15  ;;  %v2054_v15 = vrot.slane %v6723_v34, 7  ;;  %v5742_v34 = vld [vmem:[%s7795_s4 + $0x38] sm:$0xff] }
 0x1cc   : > { %v1939_v57 = vadd.f32 %v1900_v17, %v1777_v41  ;;  %5276 = vmatmul.msk.bf16.gmra.mxu0 %vm1409_vm1, %v6725_v43  ;;  %v1938_v39 = vadd.f32 %v1898_v37, %v1776_v35  ;;  %v6755_v35 = vld [vmem:[#allocation2 + $0x48] sm:$0xff]  ;;  %3625 = vmatpush.bf16.msra.mxu2 %v5742_v34 }
 0x1ce   : > { %v6737_v52 = vadd.f32 %v6596_v62, %v1939_v57  ;;  %v1676_v42 = vpop.f32.mrf.mxu2  ;;  %v1903_v13 = vpop.f32.mrf.mxu3  ;;  %v6739_v23 = vadd.f32 %v2076_v50, %v1938_v39  ;;  %v1586_v62 = vsel %vm1580_vm2, %v1584_v3, %v1585_v53  ;;  %v2077_v57 = vsel %vm1580_vm2, 0.0, %v2039_v24 }
 0x1cf   : > { %v1731_v18 = vrot.slane %v1676_v42, 1  ;;  %v1632_v20 = vadd.f32 %v1586_v62, %v6557_v40  ;;  %v1536_v40 = vpop.f32.mrf.mxu1  ;;  %v1587_v53 = vrot.slane %v1534_v8, 7 }
 0x1d1   : > { %v2012_v4 = vpop.f32.mrf.mxu0 }
 0x1d2   : > { %v2055_v7 = vrot.slane %v2012_v4, 7  ;;  %v1588_v4 = vrot.slane %v1536_v40, 7 }
 0x1d4   : > { %v6745_v61 = vsel %vm1580_vm2, %v2054_v15, %v2055_v7  ;;  %v1623_v7 = vsel %vm1580_vm2, 0.0, %v1587_v53  ;;  %v1589_v5 = vsel %vm1580_vm2, %v1587_v53, %v1588_v4 }
 0x1d5   : > { %v1633_v24 = vadd.f32 %v1623_v7, %v6559_v0 }
 0x1d6   : > { %v1678_v37 = vpop.f32.mrf.mxu2  ;;  %v1905_v17 = vpop.f32.mrf.mxu3 }
 0x1d7   : > { %v1732_v19 = vrot.slane %v1678_v37, 1 }
 0x1d9   : > { %v1733_v22 = vsel %vm1727_vm3, %v1731_v18, %v1732_v19  ;;  %v1769_v26 = vsel %vm1727_vm3, %v1732_v19, 0.0  ;;  %v6753_v29 = vpop.f32.mrf.mxu0 }
 0x1da   : > { %v1778_v44 = vadd.f32 %v1733_v22, %v1631_v38  ;;  %v1779_v30 = vadd.f32 %v1769_v26, %v1632_v20  ;;  %v6779_v20 = vld [vmem:[#allocation2 + $0x40] sm:$0xff] }
 0x1db   : > { %5232 = vmatmul.msk.bf16.gmra.mxu2 %vm1409_vm1, %v6623_v32  ;;  %5252 = vmatmul.msk.bf16.gmra.mxu3 %vm1409_vm1, %v6623_v32 }
 0x1dc   : > { %v1941_v41 = vadd.f32 %v1905_v17, %v1779_v30  ;;  %5277 = vmatmul.msk.bf16.gmra.mxu0 %vm1409_vm1, %v6755_v35  ;;  %v1940_v58 = vadd.f32 %v1903_v13, %v1778_v44 }
 0x1de   : > { %v6767_v39 = vadd.f32 %v6618_v21, %v1941_v41  ;;  %v1681_v50 = vpop.f32.mrf.mxu2  ;;  %v1908_v42 = vpop.f32.mrf.mxu3  ;;  %v6769_v3 = vadd.f32 %v2077_v57, %v1940_v58  ;;  %v1634_v21 = vadd.f32 %v1589_v5, %v6577_v36  ;;  %v2078_v36 = vsel %vm1580_vm2, 0.0, %v2042_v46 }
 0x1df   : > { %v1734_v37 = vrot.slane %v1681_v50, 1  ;;  %v2057_v58 = vrot.slane %v6753_v29, 7 }
 0x1e1   : > { %v2017_v32 = vpop.f32.mrf.mxu0 }
 0x1e2   : > { %v2058_v40 = vrot.slane %v2017_v32, 7 }
 0x1e4   : > { %v6801_v57 = vsel %vm1580_vm2, %v2057_v58, %v2058_v40 }
 0x1e6   : > { %v1683_v13 = vpop.f32.mrf.mxu2  ;;  %v1910_v62 = vpop.f32.mrf.mxu3 }
 0x1e7   : > { %v1735_v14 = vrot.slane %v1683_v13, 1  ;;  %v6812_v13 = vld [vmem:[#allocation2 + $0x48] sm:$0xff] }
 0x1e9   : > { %v1736_v17 = vsel %vm1727_vm3, %v1734_v37, %v1735_v14  ;;  %v1770_v18 = vsel %vm1727_vm3, %v1735_v14, 0.0  ;;  %v6777_v19 = vpop.f32.mrf.mxu0  ;;  %v2079_v14 = vsel %vm1580_vm2, 0.0, %v2045_v1 }
 0x1ea   : > { %v1780_v8 = vadd.f32 %v1736_v17, %v1633_v24  ;;  %v1781_v38 = vadd.f32 %v1770_v18, %v1634_v21  ;;  %v5715_v21 = vld [vmem:[%s7796_s5] sm:$0xff] }
 0x1eb   : > { %5233 = vmatmul.msk.bf16.gmra.mxu2 %vm1409_vm1, %v6645_v55  ;;  %5253 = vmatmul.msk.bf16.gmra.mxu3 %vm1409_vm1, %v6645_v55 }
 0x1ec   : > { %v1943_v22 = vadd.f32 %v1910_v62, %v1781_v38  ;;  %5374 = vmatmul.msk.bf16.vlgmr.msra.gmra.mxu0 %vm1409_vm1, %v6779_v20  ;;  %v1942_v0 = vadd.f32 %v1908_v42, %v1780_v8  ;;  %2812 = vmatpush.bf16.msrb.mxu1 %v5715_v21 }
 0x1ee   : > { %v6791_v26 = vadd.f32 %v6640_v51, %v1943_v22  ;;  %v1686_v44 = vpop.f32.mrf.mxu2  ;;  %v1913_v30 = vpop.f32.mrf.mxu3  ;;  %v6793_v41 = vadd.f32 %v2078_v36, %v1942_v0 }
 0x1ef   : > { %v1737_v50 = vrot.slane %v1686_v44, 1  ;;  %v6839_v44 = vld [vmem:[#allocation2 + $0x50] sm:$0xff] }
 0x1f1   : > { %v6796_v55 = vpop.f32.mrf.mxu0 }
 0x1f2   : > { %v2638_v29 = vrot.slane %v6796_v55, 1 }
 0x1f6   : > { %v1688_v46 = vpop.f32.mrf.mxu2  ;;  %v1915_v51 = vpop.f32.mrf.mxu3 }
 0x1f7   : > { %v1738_v42 = vrot.slane %v1688_v46, 1 }
 0x1f9   : > { %v1739_v53 = vsel %vm1727_vm3, %v1737_v50, %v1738_v42  ;;  %v1771_v4 = vsel %vm1727_vm3, %v1738_v42, 0.0  ;;  %v6808_v32 = vpop.f32.mrf.mxu0  ;;  %v6855_v50 = vpop.f32.mrf.mxu1 }
 0x1fa   : > { %v1782_v7 = vadd.f32 %v1739_v53, %v6591_v6  ;;  %v1783_v5 = vadd.f32 %v1771_v4, %v6603_v16 }
 0x1fb   : > { %5234 = vmatmul.msk.bf16.gmra.mxu2 %vm1409_vm1, %v6667_v10  ;;  %5254 = vmatmul.msk.bf16.gmra.mxu3 %vm1409_vm1, %v6667_v10 }
 0x1fc   : > { %v1945_v62 = vadd.f32 %v1915_v51, %v1783_v5  ;;  %5375 = vmatmul.msk.bf16.gmra.mxu0 %vm1409_vm1, %v6812_v13  ;;  %v1944_v37 = vadd.f32 %v1913_v30, %v1782_v7 }
 0x1fe   : > { %v6824_v6 = vadd.f32 %v6662_v11, %v1945_v62  ;;  %v1691_v16 = vpop.f32.mrf.mxu2  ;;  %v1918_v24 = vpop.f32.mrf.mxu3  ;;  %v6829_v17 = vadd.f32 %v2079_v14, %v1944_v37 }
 0x1ff   : > { %v1740_v38 = vrot.slane %v1691_v16, 1  ;;  %v6871_v16 = vld [vmem:[#allocation2 + $0x58] sm:$0xff] }
 0x201   : > { %v6831_v10 = vpop.f32.mrf.mxu0 }
 0x206   : > { %v1693_v18 = vpop.f32.mrf.mxu2  ;;  %v1920_v8 = vpop.f32.mrf.mxu3 }
 0x207   : > { %v1741_v54 = vrot.slane %v1693_v18, 1 }
 0x209   : > { %v1742_v1 = vsel %vm1727_vm3, %v1740_v38, %v1741_v54  ;;  %v1772_v11 = vsel %vm1727_vm3, %v1741_v54, 0.0  ;;  %v6835_v22 = vpop.f32.mrf.mxu0 }
 0x20a   : > { %v1784_v0 = vadd.f32 %v1742_v1, %v6613_v25  ;;  %v1785_v36 = vadd.f32 %v1772_v11, %v6625_v33 }
 0x20b   : > { %5235 = vmatmul.msk.bf16.gmra.mxu2 %vm1409_vm1, %v6692_v48  ;;  %5255 = vmatmul.msk.bf16.gmra.mxu3 %vm1409_vm1, %v6692_v48  ;;  %v5728_v48 = vld [vmem:[%s7795_s4 + $0x8] sm:$0xff] }
 0x20c   : > { %v1947_v30 = vadd.f32 %v1920_v8, %v1785_v36  ;;  %5376 = vmatmul.msk.bf16.gmra.mxu0 %vm1409_vm1, %v6839_v44  ;;  %v1946_v40 = vadd.f32 %v1918_v24, %v1784_v0  ;;  %3174 = vmatpush.bf16.msrb.mxu3 %v5728_v48  ;;  %v6873_v24 = vpop.f32.mrf.mxu1 }
 0x20e   : > { %v6851_v25 = vadd.f32 %v6687_v60, %v1947_v30  ;;  %v1696_v33 = vpop.f32.mrf.mxu2  ;;  %v1923_v46 = vpop.f32.mrf.mxu3  ;;  %v6853_v51 = vadd.f32 %v2080_v31, %v1946_v40  ;;  %v5727_v60 = vld [vmem:[%s7795_s4] sm:$0xff] }
 0x20f   : > { %v1743_v4 = vrot.slane %v1696_v33, 1  ;;  %v6899_v33 = vld [vmem:[#allocation2 + $0x60] sm:$0xff] }
 0x210   : > { %3175 = vmatpush.bf16.msrb.mxu3 %v5727_v60 }
 0x211   : > { %v6857_v42 = vpop.f32.mrf.mxu0 }
 0x214   : > { %v6891_v11 = vpop.f32.mrf.mxu1 }
 0x216   : > { %v1698_v53 = vpop.f32.mrf.mxu2  ;;  %v1925_v9 = vpop.f32.mrf.mxu3 }
 0x217   : > { %v1744_v27 = vrot.slane %v1698_v53, 1  ;;  %v2082_v53 = vsel %vm1580_vm2, 0.0, %v2054_v15 }
 0x219   : > { %v1745_v7 = vsel %vm1727_vm3, %v1743_v4, %v1744_v27  ;;  %v1773_v5 = vsel %vm1727_vm3, %v1744_v27, 0.0  ;;  %v6867_v62 = vpop.f32.mrf.mxu0 }
 0x21a   : > { %v1786_v37 = vadd.f32 %v1745_v7, %v6635_v47  ;;  %v1787_v14 = vadd.f32 %v1773_v5, %v6647_v56  ;;  %v2081_v47 = vsel %vm1580_vm2, 0.0, %v2051_v63 }
 0x21b   : > { %5236 = vmatmul.msk.bf16.gmra.mxu2 %vm1409_vm1, %v6725_v43  ;;  %5256 = vmatmul.msk.bf16.gmra.mxu3 %vm1409_vm1, %v6725_v43 }
 0x21c   : > { %v1949_v21 = vadd.f32 %v1925_v9, %v1787_v14  ;;  %5377 = vmatmul.msk.bf16.gmra.mxu0 %vm1409_vm1, %v6871_v16  ;;  %v1948_v18 = vadd.f32 %v1923_v46, %v1786_v37  ;;  %v6915_v27 = vpop.f32.mrf.mxu1  ;;  %v2183_v14 = vrot.slane %v6873_v24, 1 }
 0x21e   : > { %v6885_v56 = vadd.f32 %v6712_v59, %v1949_v21  ;;  %v1701_v8 = vpop.f32.mrf.mxu2  ;;  %v1928_v38 = vpop.f32.mrf.mxu3  ;;  %v6887_v54 = vadd.f32 %v2081_v47, %v1948_v18  ;;  %v2182_v47 = vrot.slane %v6855_v50, 1 }
 0x21f   : > { %v1746_v36 = vrot.slane %v1701_v8, 1 }
 0x221   : > { %v6889_v1 = vpop.f32.mrf.mxu0 }
 0x224   : > { %v6923_v15 = vpop.f32.mrf.mxu1 }
 0x226   : > { %v1703_v43 = vpop.f32.mrf.mxu2  ;;  %v1930_v0 = vpop.f32.mrf.mxu3 }
 0x227   : > { %v1747_v30 = vrot.slane %v1703_v43, 1  ;;  %v6932_v43 = vld [vmem:[#allocation2 + $0x68] sm:$0xff] }
 0x229   : > { %v1748_v40 = vsel %vm1727_vm3, %v1746_v36, %v1747_v30  ;;  %v1774_v45 = vsel %vm1727_vm3, %v1747_v30, 0.0  ;;  %v6895_v63 = vpop.f32.mrf.mxu0 }
 0x22a   : > { %v1788_v59 = vadd.f32 %v1748_v40, %v6657_v2  ;;  %v1789_v31 = vadd.f32 %v1774_v45, %v6669_v12 }
 0x22b   : > { %5237 = vmatmul.msk.bf16.gmra.mxu2 %vm1409_vm1, %v6755_v35  ;;  %5257 = vmatmul.msk.bf16.gmra.mxu3 %vm1409_vm1, %v6755_v35 }
 0x22c   : > { %v1951_v46 = vadd.f32 %v1930_v0, %v1789_v31  ;;  %5378 = vmatmul.msk.bf16.gmra.mxu0 %vm1409_vm1, %v6899_v33  ;;  %v1950_v48 = vadd.f32 %v1928_v38, %v1788_v59  ;;  %v2184_v0 = vsel %vm1727_vm3, %v2182_v47, %v2183_v14  ;;  %v2185_v47 = vrot.slane %v6891_v11, 1 }
 0x22e   : > { %v6911_v2 = vadd.f32 %v6745_v61, %v1951_v46  ;;  %v1706_v12 = vpop.f32.mrf.mxu2  ;;  %v1933_v9 = vpop.f32.mrf.mxu3  ;;  %v6913_v4 = vadd.f32 %v2082_v53, %v1950_v48  ;;  %v2637_v48 = vrot.slane %v6777_v19, 1  ;;  %v5754_v53 = vld [vmem:[%s7795_s4 + $0x78] sm:$0xff] }
 0x22f   : > { %v1749_v5 = vrot.slane %v1706_v12, 1  ;;  %v2222_v12 = vsel %vm1727_vm3, %v2183_v14, 0.0  ;;  %3996 = vmatpush.bf16.msrb.mxu0 %v5754_v53  ;;  %v2186_v14 = vrot.slane %v6915_v27, 1 }
 0x231   : > { %v6917_v60 = vpop.f32.mrf.mxu0  ;;  %v2187_v11 = vsel %vm1727_vm3, %v2185_v47, %v2186_v14 }
 0x236   : > { %v1708_v35 = vpop.f32.mrf.mxu2  ;;  %v1935_v7 = vpop.f32.mrf.mxu3 }
 0x237   : > { %v1750_v37 = vrot.slane %v1708_v35, 1  ;;  %v2231_v35 = vadd.f32 %v2222_v12, %v6737_v52 }
 0x239   : > { %v1751_v61 = vsel %vm1727_vm3, %v1749_v5, %v1750_v37  ;;  %v1775_v21 = vsel %vm1727_vm3, %v1750_v37, 0.0  ;;  %v6927_v18 = vpop.f32.mrf.mxu0 }
 0x23a   : > { %v1790_v8 = vadd.f32 %v1751_v61, %v6679_v28  ;;  %v1791_v38 = vadd.f32 %v1775_v21, %v6694_v49  ;;  %v2083_v28 = vsel %vm1580_vm2, 0.0, %v2057_v58  ;;  %v2230_v49 = vadd.f32 %v2184_v0, %v6739_v23  ;;  %v5753_v61 = vld [vmem:[%s7795_s4 + $0x70] sm:$0xff] }
 0x23b   : > { %5338 = vmatmul.msk.bf16.vlgmr.msrb.gmra.mxu2 %vm1409_vm1, %v6779_v20  ;;  %5354 = vmatmul.msk.bf16.vlgmr.msrb.gmra.mxu3 %vm1409_vm1, %v6779_v20  ;;  %v5740_v20 = vld [vmem:[%s7795_s4 + $0x48] sm:$0xff]  ;;  %v6985_v0 = vld [vmem:[#allocation2 + $0x70] sm:$0xff] }
 0x23c   : > { %v1953_v24 = vadd.f32 %v1935_v7, %v1791_v38  ;;  %5379 = vmatmul.msk.bf16.gmra.mxu0 %vm1409_vm1, %v6932_v43  ;;  %v1952_v50 = vadd.f32 %v1933_v9, %v1790_v8  ;;  %3544 = vmatpush.bf16.msra.mxu1 %v5740_v20  ;;  %v2639_v9 = vsel %vm1727_vm3, %v2637_v48, %v2638_v29  ;;  %v6969_v7 = vld [vmem:[%s7799_s8] ss:$0 sm:$0xff] }
 0x23d   : > { %3997 = vmatpush.bf16.msrb.mxu0 %v5753_v61  ;;  %v6983_v38 = vld [vmem:[%s7800_s9] ss:$0 sm:$0xff] }
 0x23e   : > { %v6946_v36 = vadd.f32 %v6801_v57, %v1953_v24  ;;  %v2353_v30 = vpop.f32.mrf.mxu2  ;;  %v2435_v40 = vpop.f32.mrf.mxu3  ;;  %v6951_v45 = vadd.f32 %v2083_v28, %v1952_v50  ;;  %v2677_v50 = vsel %vm1727_vm3, %v2638_v29, 0.0 }
 0x23f   : > { %v2393_v59 = vadd.f32 %v2353_v30, %v2230_v49  ;;  %v2491_v31 = vrot.slane %v2435_v40, 7  ;;  %v6957_v57 = vpop.f32.mrf.mxu1  ;;  %v2232_v49 = vadd.f32 %v2187_v11, %v6769_v3  ;;  %v2640_v3 = vrot.slane %v6808_v32, 1 }
 0x241   : > { %v2531_v58 = vsel %vm1580_vm2, 0.0, %v2491_v31  ;;  %v6955_v46 = vpop.f32.mrf.mxu0 }
 0x242   : > { %v2539_v23 = vadd.f32 %v2531_v58, %v2393_v59  ;;  %v2641_v58 = vrot.slane %v6831_v10, 1 }
 0x244   : > { %v2685_v55 = vadd.f32 %v2639_v9, %v2539_v23  ;;  %v2678_v11 = vsel %vm1727_vm3, %v2641_v58, 0.0 }
 0x246   : > { %v2355_v5 = vpop.f32.mrf.mxu2  ;;  %v2437_v37 = vpop.f32.mrf.mxu3  ;;  %v2705_v8 = vmul.f32 %v6969_v7, %v2685_v55 }
 0x247   : > { %v2394_v19 = vadd.f32 %v2355_v5, %v2231_v35  ;;  %v2492_v34 = vrot.slane %v2437_v37, 7  ;;  %v6995_v28 = vpop.f32.mrf.mxu1  ;;  %v2223_v35 = vsel %vm1727_vm3, %v2186_v14, 0.0  ;;  %v2642_v5 = vsel %vm1727_vm3, %v2640_v3, %v2641_v58 }
 0x248   : > { %v2725_v30 = vadd.f32 %v6983_v38, %v2705_v8  ;;  %v2233_v37 = vadd.f32 %v2223_v35, %v6767_v39  ;;  %v2189_v8 = vrot.slane %v6957_v57, 1  ;;  %v2188_v14 = vrot.slane %v6923_v15, 1 }
 0x249   : > { %v2493_v21 = vsel %vm1580_vm2, %v2491_v31, %v2492_v34  ;;  %v6976_v52 = vpop.f32.mrf.mxu0  ;;  %v2643_v3 = vrot.slane %v6835_v22, 1  ;;  %v2191_v22 = vrot.slane %v6995_v28, 1 }
 0x24a   : > { %v2540_v24 = vadd.f32 %v2493_v21, %v2394_v19  ;;  %v2741_v53 = vmax.f32 %v2725_v30, 0.0  ;;  %v2224_v35 = vsel %vm1727_vm3, %v2189_v8, 0.0 }
 0x24b   : > { %5339 = vmatmul.msk.bf16.gmra.mxu2 %vm1409_vm1, %v6812_v13  ;;  %5355 = vmatmul.msk.bf16.gmra.mxu3 %vm1409_vm1, %v6812_v13 }
 0x24c   : > { %v2686_v27 = vadd.f32 %v2677_v50, %v2540_v24  ;;  %5380 = vmatmul.msk.bf16.gmra.mxu0 %vm1409_vm1, %v6985_v0 }
 0x24e   : > { %v2706_v40 = vmul.f32 %v6969_v7, %v2686_v27  ;;  %v2358_v20 = vpop.f32.mrf.mxu2  ;;  %v2440_v59 = vpop.f32.mrf.mxu3  ;;  %v7018_v27 = vld [vmem:[#allocation2 + $0x78] sm:$0xff] }
 0x24f   : > { %v2395_v31 = vadd.f32 %v2358_v20, %v2232_v49  ;;  %v2494_v29 = vrot.slane %v2440_v59, 7  ;;  %v7010_v10 = vpop.f32.mrf.mxu1  ;;  %v2190_v49 = vsel %vm1727_vm3, %v2188_v14, %v2189_v8 }
 0x250   : > { %v2726_v13 = vadd.f32 %v6983_v38, %v2706_v40  ;;  %v2234_v15 = vadd.f32 %v2190_v49, %v6793_v41 }
 0x251   : > { %v2532_v23 = vsel %vm1580_vm2, 0.0, %v2494_v29  ;;  %v7003_v48 = vpop.f32.mrf.mxu0 }
 0x252   : > { %v2742_v12 = vmax.f32 %v2726_v13, 0.0  ;;  %v2541_v9 = vadd.f32 %v2532_v23, %v2395_v31 }
 0x254   : > { %v2757_v55 = vpack.c.bf16 %v2742_v12, %v2741_v53  ;;  %v2687_v19 = vadd.f32 %v2642_v5, %v2541_v9 }
 0x256   : > { %v2360_v34 = vpop.f32.mrf.mxu2  ;;  %v2442_v61 = vpop.f32.mrf.mxu3  ;;  %5286 = vmatmul.msk.bf16.vlgmr.msrb.gmra.mxu1 %vm1409_vm1, %v2757_v55  ;;  %v2707_v50 = vmul.f32 %v6969_v7, %v2687_v19 }
 0x257   : > { %v2396_v21 = vadd.f32 %v2360_v34, %v2233_v37  ;;  %v2495_v47 = vrot.slane %v2442_v61, 7  ;;  %v7032_v58 = vpop.f32.mrf.mxu1  ;;  %v2235_v37 = vadd.f32 %v2224_v35, %v6791_v26 }
 0x258   : > { %v2727_v30 = vadd.f32 %v6983_v38, %v2707_v50 }
 0x259   : > { %v2496_v32 = vsel %vm1580_vm2, %v2494_v29, %v2495_v47  ;;  %v7014_v24 = vpop.f32.mrf.mxu0  ;;  %v2192_v47 = vrot.slane %v7010_v10, 1 }
 0x25a   : > { %v2542_v39 = vadd.f32 %v2496_v32, %v2396_v21  ;;  %v2743_v41 = vmax.f32 %v2727_v30, 0.0 }
 0x25b   : > { %5340 = vmatmul.msk.bf16.gmra.mxu2 %vm1409_vm1, %v6839_v44  ;;  %5356 = vmatmul.msk.bf16.gmra.mxu3 %vm1409_vm1, %v6839_v44  ;;  %v2644_v44 = vrot.slane %v6857_v42, 1  ;;  %v2193_v28 = vsel %vm1727_vm3, %v2191_v22, %v2192_v47  ;;  %v2194_v22 = vrot.slane %v7032_v58, 1 }
 0x25c   : > { %v2688_v57 = vadd.f32 %v2678_v11, %v2542_v39  ;;  %5381 = vmatmul.msk.bf16.gmra.mxu0 %vm1409_vm1, %v7018_v27  ;;  %v7047_v39 = vld [vmem:[#allocation2 + $0x50] sm:$0xff] }
 0x25d   : > { %v2645_v5 = vsel %vm1727_vm3, %v2643_v3, %v2644_v44  ;;  %v2679_v11 = vsel %vm1727_vm3, %v2644_v44, 0.0  ;;  %v2225_v3 = vsel %vm1727_vm3, %v2192_v47, 0.0  ;;  %v5741_v47 = vld [vmem:[%s7795_s4 + $0x30] sm:$0xff] }
 0x25e   : > { %v2708_v40 = vmul.f32 %v6969_v7, %v2688_v57  ;;  %v2363_v20 = vpop.f32.mrf.mxu2  ;;  %v2445_v59 = vpop.f32.mrf.mxu3  ;;  %v2236_v57 = vadd.f32 %v2193_v28, %v6829_v17  ;;  %3626 = vmatpush.bf16.msra.mxu2 %v5741_v47 }
 0x25f   : > { %v2397_v31 = vadd.f32 %v2363_v20, %v2234_v15  ;;  %v2497_v29 = vrot.slane %v2445_v59, 7  ;;  %v7049_v26 = vpop.f32.mrf.mxu1 }
 0x260   : > { %v2728_v13 = vadd.f32 %v6983_v38, %v2708_v40 }
 0x261   : > { %v2533_v23 = vsel %vm1580_vm2, 0.0, %v2497_v29  ;;  %v7036_v53 = vpop.f32.mrf.mxu0 }
 0x262   : > { %v2543_v12 = vadd.f32 %v2533_v23, %v2397_v31  ;;  %v2744_v9 = vmax.f32 %v2728_v13, 0.0 }
 0x264   : > { %v2758_v55 = vpack.c.bf16 %v2744_v9, %v2743_v41  ;;  %v2689_v19 = vadd.f32 %v2645_v5, %v2543_v12  ;;  %v2646_v9 = vrot.slane %v6867_v62, 1 }
 0x266   : > { %v2365_v34 = vpop.f32.mrf.mxu2  ;;  %v2447_v61 = vpop.f32.mrf.mxu3  ;;  %5287 = vmatmul.msk.bf16.gmra.mxu1 %vm1409_vm1, %v2758_v55  ;;  %v2709_v8 = vmul.f32 %v6969_v7, %v2689_v19 }
 0x267   : > { %v2398_v42 = vadd.f32 %v2365_v34, %v2235_v37  ;;  %v2498_v21 = vrot.slane %v2447_v61, 7  ;;  %v2237_v37 = vadd.f32 %v2225_v3, %v6824_v6 }
 0x268   : > { %v2729_v49 = vadd.f32 %v6983_v38, %v2709_v8 }
 0x269   : > { %v2499_v32 = vsel %vm1580_vm2, %v2497_v29, %v2498_v21  ;;  %v3322_v14 = vpop.f32.mrf.mxu0  ;;  %v2195_v21 = vrot.slane %v7049_v26, 1 }
 0x26a   : > { %v2544_v50 = vadd.f32 %v2499_v32, %v2398_v42  ;;  %v3378_v29 = vrot.slane %v3322_v14, 1  ;;  %v2745_v12 = vmax.f32 %v2729_v49, 0.0 }
 0x26b   : > { %5341 = vmatmul.msk.bf16.gmra.mxu2 %vm1409_vm1, %v6871_v16  ;;  %5357 = vmatmul.msk.bf16.gmra.mxu3 %vm1409_vm1, %v6871_v16  ;;  %v2647_v16 = vrot.slane %v6889_v1, 1  ;;  %v7075_v1 = vpop.f32.mrf.mxu1  ;;  %v2196_v58 = vsel %vm1727_vm3, %v2194_v22, %v2195_v21  ;;  %v2226_v3 = vsel %vm1727_vm3, %v2195_v21, 0.0 }
 0x26c   : > { %v2690_v10 = vadd.f32 %v2679_v11, %v2544_v50  ;;  %5518 = vmatmul.msk.bf16.vlgmr.msrb.gmra.mxu0 %vm1409_vm1, %v7047_v39  ;;  %v7087_v50 = vld [vmem:[#allocation2 + $0x58] sm:$0xff] }
 0x26d   : > { %v2648_v5 = vsel %vm1727_vm3, %v2646_v9, %v2647_v16  ;;  %v2680_v11 = vsel %vm1727_vm3, %v2647_v16, 0.0  ;;  %v2649_v9 = vrot.slane %v6895_v63, 1 }
 0x26e   : > { %v2710_v15 = vmul.f32 %v6969_v7, %v2690_v10  ;;  %v2368_v30 = vpop.f32.mrf.mxu2  ;;  %v2450_v40 = vpop.f32.mrf.mxu3  ;;  %v2238_v10 = vadd.f32 %v2196_v58, %v6853_v51 }
 0x26f   : > { %v2399_v20 = vadd.f32 %v2368_v30, %v2236_v57  ;;  %v2500_v59 = vrot.slane %v2450_v40, 7  ;;  %v5739_v30 = vld [vmem:[%s7795_s4 + $0x40] sm:$0xff] }
 0x270   : > { %v2730_v31 = vadd.f32 %v6983_v38, %v2710_v15  ;;  %3545 = vmatpush.bf16.msra.mxu1 %v5739_v30 }
 0x271   : > { %v2534_v13 = vsel %vm1580_vm2, 0.0, %v2500_v59  ;;  %v7065_v44 = vpop.f32.mrf.mxu0 }
 0x272   : > { %v2545_v23 = vadd.f32 %v2534_v13, %v2399_v20  ;;  %v3379_v17 = vrot.slane %v7065_v44, 1  ;;  %v2746_v41 = vmax.f32 %v2730_v31, 0.0  ;;  %v2650_v31 = vrot.slane %v6917_v60, 1 }
 0x273   : > { %v2153_v40 = vpop.f32.mrf.mxu1 }
 0x274   : > { %v2759_v35 = vpack.c.bf16 %v2746_v41, %v2745_v12  ;;  %v7073_v55 = vsel %vm1727_vm3, %v3378_v29, %v3379_v17  ;;  %v2691_v19 = vadd.f32 %v2648_v5, %v2545_v23  ;;  %v2651_v60 = vsel %vm1727_vm3, %v2649_v9, %v2650_v31 }
 0x275   : > { %v2198_v63 = vrot.slane %v2153_v40, 1 }
 0x276   : > { %v2370_v34 = vpop.f32.mrf.mxu2  ;;  %v2452_v61 = vpop.f32.mrf.mxu3  ;;  %5288 = vmatmul.msk.bf16.gmra.mxu1 %vm1409_vm1, %v2759_v35  ;;  %v2711_v6 = vmul.f32 %v6969_v7, %v2691_v19 }
 0x277   : > { %v2400_v62 = vadd.f32 %v2370_v34, %v2237_v37  ;;  %v2501_v42 = vrot.slane %v2452_v61, 7  ;;  %v2239_v37 = vadd.f32 %v2226_v3, %v6851_v25  ;;  %v2681_v25 = vsel %vm1727_vm3, %v2650_v31, 0.0 }
 0x278   : > { %v2731_v28 = vadd.f32 %v6983_v38, %v2711_v6 }
 0x279   : > { %v2502_v32 = vsel %vm1580_vm2, %v2500_v59, %v2501_v42  ;;  %v3327_v14 = vpop.f32.mrf.mxu0 }
 0x27a   : > { %v2546_v8 = vadd.f32 %v2502_v32, %v2400_v62  ;;  %v3381_v16 = vrot.slane %v3327_v14, 1  ;;  %v2747_v12 = vmax.f32 %v2731_v28, 0.0  ;;  %v2197_v14 = vrot.slane %v7075_v1, 1 }
 0x27b   : > { %5342 = vmatmul.msk.bf16.gmra.mxu2 %vm1409_vm1, %v6899_v33  ;;  %5358 = vmatmul.msk.bf16.gmra.mxu3 %vm1409_vm1, %v6899_v33  ;;  %v2156_v47 = vpop.f32.mrf.mxu1 }
 0x27c   : > { %v2692_v26 = vadd.f32 %v2680_v11, %v2546_v8  ;;  %5519 = vmatmul.msk.bf16.gmra.mxu0 %vm1409_vm1, %v7087_v50  ;;  %v7122_v8 = vld [vmem:[#allocation2 + $0x60] sm:$0xff] }
 0x27e   : > { %v2712_v57 = vmul.f32 %v6969_v7, %v2692_v26  ;;  %v2373_v49 = vpop.f32.mrf.mxu2  ;;  %v2455_v15 = vpop.f32.mrf.mxu3  ;;  %v2199_v26 = vsel %vm1727_vm3, %v2197_v14, %v2198_v63  ;;  %v7161_v14 = vld [vmem:[#allocation2 + $0x68] sm:$0xff] }
 0x27f   : > { %v2401_v33 = vadd.f32 %v2373_v49, %v2238_v10  ;;  %v2503_v20 = vrot.slane %v2455_v15, 7  ;;  %v2240_v1 = vadd.f32 %v2199_v26, %v6887_v54 }
 0x280   : > { %v2732_v59 = vadd.f32 %v6983_v38, %v2712_v57 }
 0x281   : > { %v2535_v51 = vsel %vm1580_vm2, 0.0, %v2503_v20  ;;  %v7106_v29 = vpop.f32.mrf.mxu0 }
 0x282   : > { %v2547_v13 = vadd.f32 %v2535_v51, %v2401_v33  ;;  %v3382_v23 = vrot.slane %v7106_v29, 1  ;;  %v2748_v41 = vmax.f32 %v2732_v59, 0.0 }
 0x283   : > { %v2158_v51 = vpop.f32.mrf.mxu1 }
 0x284   : > { %v2760_v35 = vpack.c.bf16 %v2748_v41, %v2747_v12  ;;  %v7114_v5 = vsel %vm1727_vm3, %v3381_v16, %v3382_v23  ;;  %v2693_v19 = vadd.f32 %v2651_v60, %v2547_v13  ;;  %v2652_v13 = vrot.slane %v6927_v18, 1  ;;  %v5744_v12 = vld [vmem:[%s7795_s4 + $0x58] sm:$0xff] }
 0x285   : > { %v2227_v41 = vsel %vm1727_vm3, %v2198_v63, 0.0  ;;  %3770 = vmatpush.bf16.msra.mxu3 %v5744_v12 }
 0x286   : > { %v2375_v34 = vpop.f32.mrf.mxu2  ;;  %v2457_v61 = vpop.f32.mrf.mxu3  ;;  %5289 = vmatmul.msk.bf16.gmra.mxu1 %vm1409_vm1, %v2760_v35  ;;  %v2713_v22 = vmul.f32 %v6969_v7, %v2693_v19  ;;  %v2241_v35 = vadd.f32 %v2227_v41, %v6885_v56 }
 0x287   : > { %v2402_v62 = vadd.f32 %v2375_v34, %v2239_v37  ;;  %v2504_v42 = vrot.slane %v2457_v61, 7  ;;  %v5743_v61 = vld [vmem:[%s7795_s4 + $0x50] sm:$0xff] }
 0x288   : > { %v2733_v58 = vadd.f32 %v6983_v38, %v2713_v22 }
 0x289   : > { %v2505_v21 = vsel %vm1580_vm2, %v2503_v20, %v2504_v42  ;;  %v3332_v32 = vpop.f32.mrf.mxu0  ;;  %3771 = vmatpush.bf16.msra.mxu3 %v5743_v61 }
 0x28a   : > { %v2548_v6 = vadd.f32 %v2505_v21, %v2402_v62  ;;  %v3384_v40 = vrot.slane %v3332_v32, 1  ;;  %v2749_v31 = vmax.f32 %v2733_v58, 0.0  ;;  %v2201_v62 = vrot.slane %v2158_v51, 1 }
 0x28b   : > { %5343 = vmatmul.msk.bf16.gmra.mxu2 %vm1409_vm1, %v6932_v43  ;;  %5359 = vmatmul.msk.bf16.gmra.mxu3 %vm1409_vm1, %v6932_v43  ;;  %v2653_v43 = vrot.slane %v6955_v46, 1  ;;  %v2200_v21 = vrot.slane %v2156_v47, 1  ;;  %v2161_v22 = vpop.f32.mrf.mxu1 }
 0x28c   : > { %v2694_v11 = vadd.f32 %v2681_v25, %v2548_v6  ;;  %5520 = vmatmul.msk.bf16.gmra.mxu0 %vm1409_vm1, %v7122_v8 }
 0x28d   : > { %v2654_v3 = vsel %vm1727_vm3, %v2652_v13, %v2653_v43  ;;  %v2682_v6 = vsel %vm1727_vm3, %v2653_v43, 0.0  ;;  %v2202_v47 = vsel %vm1727_vm3, %v2200_v21, %v2201_v62 }
 0x28e   : > { %v2714_v10 = vmul.f32 %v6969_v7, %v2694_v11  ;;  %v2378_v28 = vpop.f32.mrf.mxu2  ;;  %v2460_v57 = vpop.f32.mrf.mxu3  ;;  %v2242_v11 = vadd.f32 %v2202_v47, %v6913_v4  ;;  %v2655_v4 = vrot.slane %v6976_v52, 1 }
 0x28f   : > { %v2403_v49 = vadd.f32 %v2378_v28, %v2240_v1  ;;  %v2506_v15 = vrot.slane %v2460_v57, 7 }
 0x290   : > { %v2734_v30 = vadd.f32 %v6983_v38, %v2714_v10 }
 0x291   : > { %v2536_v33 = vsel %vm1580_vm2, 0.0, %v2506_v15  ;;  %v7138_v20 = vpop.f32.mrf.mxu0 }
 0x292   : > { %v2549_v59 = vadd.f32 %v2536_v33, %v2403_v49  ;;  %v3385_v54 = vrot.slane %v7138_v20, 1  ;;  %v2750_v16 = vmax.f32 %v2734_v30, 0.0 }
 0x294   : > { %v2761_v46 = vpack.c.bf16 %v2750_v16, %v2749_v31  ;;  %v7149_v9 = vsel %vm1727_vm3, %v3384_v40, %v3385_v54  ;;  %v2695_v60 = vadd.f32 %v2654_v3, %v2549_v59  ;;  %v2228_v59 = vsel %vm1727_vm3, %v2201_v62, 0.0  ;;  %v2163_v16 = vpop.f32.mrf.mxu1 }
 0x295   : > { %v2243_v13 = vadd.f32 %v2228_v59, %v6911_v2 }
 0x296   : > { %v2380_v37 = vpop.f32.mrf.mxu2  ;;  %v2462_v18 = vpop.f32.mrf.mxu3  ;;  %5290 = vmatmul.msk.bf16.gmra.mxu1 %vm1409_vm1, %v2761_v46  ;;  %v2715_v56 = vmul.f32 %v6969_v7, %v2695_v60  ;;  %v2204_v60 = vrot.slane %v2163_v16, 1 }
 0x297   : > { %v2404_v19 = vadd.f32 %v2380_v37, %v2241_v35  ;;  %v2507_v34 = vrot.slane %v2462_v18, 7  ;;  %v2203_v35 = vrot.slane %v2161_v22, 1 }
 0x298   : > { %v2735_v26 = vadd.f32 %v6983_v38, %v2715_v56 }
 0x299   : > { %v2508_v42 = vsel %vm1580_vm2, %v2506_v15, %v2507_v34  ;;  %v7158_v63 = vpop.f32.mrf.mxu0  ;;  %v7186_v34 = vld [vmem:[#allocation2 + $0x70] sm:$0xff]  ;;  %v2205_v62 = vsel %vm1727_vm3, %v2203_v35, %v2204_v60 }
 0x29a   : > { %v2550_v32 = vadd.f32 %v2508_v42, %v2404_v19  ;;  %v2751_v40 = vmax.f32 %v2735_v26, 0.0  ;;  %v2244_v42 = vadd.f32 %v2205_v62, %v6951_v45 }
 0x29b   : > { %5344 = vmatmul.msk.bf16.gmra.mxu2 %vm1409_vm1, %v6985_v0  ;;  %5360 = vmatmul.msk.bf16.gmra.mxu3 %vm1409_vm1, %v6985_v0  ;;  %v2656_v0 = vrot.slane %v7003_v48, 1 }
 0x29c   : > { %v2696_v25 = vadd.f32 %v2682_v6, %v2550_v32  ;;  %5521 = vmatmul.msk.bf16.gmra.mxu0 %vm1409_vm1, %v7161_v14 }
 0x29d   : > { %v2657_v51 = vsel %vm1727_vm3, %v2655_v4, %v2656_v0  ;;  %v2683_v61 = vsel %vm1727_vm3, %v2656_v0, 0.0 }
 0x29e   : > { %v2716_v1 = vmul.f32 %v6969_v7, %v2696_v25  ;;  %v2383_v58 = vpop.f32.mrf.mxu2  ;;  %v2465_v10 = vpop.f32.mrf.mxu3 }
 0x29f   : > { %v2405_v28 = vadd.f32 %v2383_v58, %v2242_v11  ;;  %v2509_v57 = vrot.slane %v2465_v10, 7 }
 0x2a0   : > { %v2736_v49 = vadd.f32 %v6983_v38, %v2716_v1 }
 0x2a1   : > { %v2537_v15 = vsel %vm1580_vm2, 0.0, %v2509_v57  ;;  %v7177_v30 = vpop.f32.mrf.mxu0 }
 0x2a2   : > { %v2551_v43 = vadd.f32 %v2537_v15, %v2405_v28  ;;  %v2752_v33 = vmax.f32 %v2736_v49, 0.0  ;;  %v2229_v49 = vsel %vm1727_vm3, %v2204_v60, 0.0  ;;  %v5758_v15 = vld [vmem:[%s7795_s4 + $0x88] sm:$0xff] }
 0x2a3   : > { %4222 = vmatpush.bf16.msrb.mxu2 %v5758_v15 }
 0x2a4   : > { %v2762_v31 = vpack.c.bf16 %v2752_v33, %v2751_v40  ;;  %v2697_v12 = vadd.f32 %v2657_v51, %v2551_v43  ;;  %v2245_v40 = vadd.f32 %v2229_v49, %v6946_v36  ;;  %v5756_v36 = vld [vmem:[%s7795_s4 + $0x68] sm:$0xff] }
 0x2a5   : > { %4077 = vmatpush.bf16.msrb.mxu1 %v5756_v36 }
 0x2a6   : > { %v2385_v41 = vpop.f32.mrf.mxu2  ;;  %v2467_v48 = vpop.f32.mrf.mxu3  ;;  %5291 = vmatmul.msk.bf16.gmra.mxu1 %vm1409_vm1, %v2762_v31  ;;  %v2717_v18 = vmul.f32 %v6969_v7, %v2697_v12 }
 0x2a7   : > { %v2406_v46 = vadd.f32 %v2385_v41, %v2243_v13  ;;  %v2510_v3 = vrot.slane %v2467_v48, 7  ;;  %v5731_v13 = vld [vmem:[#allocation2 + $0x48] sm:$0xff]  ;;  %v7220_v48 = vld [vmem:[#allocation2 + $0x78] sm:$0xff] }
 0x2a8   : > { %v2737_v21 = vadd.f32 %v6983_v38, %v2717_v18 }
 0x2a9   : > { %v2511_v37 = vsel %vm1580_vm2, %v2509_v57, %v2510_v3  ;;  %v3342_v52 = vpop.f32.mrf.mxu0  ;;  %v2658_v57 = vrot.slane %v7014_v24, 1 }
 0x2aa   : > { %v2552_v19 = vadd.f32 %v2511_v37, %v2406_v46  ;;  %v3390_v11 = vrot.slane %v3342_v52, 1  ;;  %v2753_v10 = vmax.f32 %v2737_v21, 0.0 }
 0x2ab   : > { %5345 = vmatmul.msk.bf16.gmra.mxu2 %vm1409_vm1, %v7018_v27  ;;  %5361 = vmatmul.msk.bf16.gmra.mxu3 %vm1409_vm1, %v7018_v27  ;;  %v2659_v27 = vrot.slane %v7036_v53, 1 }
 0x2ac   : > { %v2698_v2 = vadd.f32 %v2683_v61, %v2552_v19  ;;  %5522 = vmatmul.msk.bf16.gmra.mxu0 %vm1409_vm1, %v7186_v34 }
 0x2ad   : > { %v2660_v43 = vsel %vm1727_vm3, %v2658_v57, %v2659_v27  ;;  %v2684_v46 = vsel %vm1727_vm3, %v2659_v27, 0.0 }
 0x2ae   : > { %v2718_v56 = vmul.f32 %v6969_v7, %v2698_v2  ;;  %v2388_v32 = vpop.f32.mrf.mxu2  ;;  %v2470_v22 = vpop.f32.mrf.mxu3 }
 0x2af   : > { %v2407_v6 = vadd.f32 %v2388_v32, %v2244_v42  ;;  %v2512_v25 = vrot.slane %v2470_v22, 7 }
 0x2b0   : > { %v2738_v47 = vadd.f32 %v6983_v38, %v2718_v56 }
 0x2b1   : > { %v2538_v26 = vsel %vm1580_vm2, 0.0, %v2512_v25  ;;  %v7202_v1 = vpop.f32.mrf.mxu0 }
 0x2b2   : > { %v2553_v58 = vadd.f32 %v2538_v26, %v2407_v6  ;;  %v3391_v45 = vrot.slane %v7202_v1, 1  ;;  %v2754_v28 = vmax.f32 %v2738_v47, 0.0  ;;  %v7247_v26 = vld [vmem:[#allocation2 + $0x50] sm:$0xff] }
 0x2b4   : > { %v2763_v0 = vpack.c.bf16 %v2754_v28, %v2753_v10  ;;  %v7213_v53 = vsel %vm1727_vm3, %v3390_v11, %v3391_v45  ;;  %v2699_v33 = vadd.f32 %v2660_v43, %v2553_v58  ;;  %v7249_v58 = vld [vmem:[#allocation2 + $0x80] sm:$0xff] }
 0x2b6   : > { %v2390_v4 = vpop.f32.mrf.mxu2  ;;  %v2472_v59 = vpop.f32.mrf.mxu3  ;;  %5292 = vmatmul.msk.bf16.gmra.mxu1 %vm1409_vm1, %v2763_v0  ;;  %v2719_v12 = vmul.f32 %v6969_v7, %v2699_v33  ;;  %v7269_v33 = vld [vmem:[%s7801_s10] ss:$0 sm:$0xff] }
 0x2b7   : > { %v2408_v24 = vadd.f32 %v2390_v4, %v2245_v40  ;;  %v2513_v31 = vrot.slane %v2472_v59, 7 }
 0x2b8   : > { %v2739_v35 = vadd.f32 %v6983_v38, %v2719_v12 }
 0x2b9   : > { %v2514_v16 = vsel %vm1580_vm2, %v2512_v25, %v2513_v31  ;;  %v3347_v51 = vpop.f32.mrf.mxu0 }
 0x2ba   : > { %v2554_v41 = vadd.f32 %v2514_v16, %v2408_v24  ;;  %v3393_v61 = vrot.slane %v3347_v51, 1  ;;  %v2755_v56 = vmax.f32 %v2739_v35, 0.0  ;;  %v7283_v16 = vld [vmem:[%s7802_s11] ss:$0 sm:$0xff] }
 0x2bb   : > { %5446 = vmatmul.msk.bf16.vlgmr.msra.gmra.mxu2 %vm1409_vm1, %v5731_v13  ;;  %5466 = vmatmul.msk.bf16.vlgmr.msra.gmra.mxu3 %vm1409_vm1, %v5731_v13 }
 0x2bc   : > { %v2700_v3 = vadd.f32 %v2684_v46, %v2554_v41  ;;  %5523 = vmatmul.msk.bf16.gmra.mxu0 %vm1409_vm1, %v7220_v48  ;;  %v5763_v41 = vld [vmem:[%s6264_s16] sm:$0xff]  }
 0x2be   : > { %v2720_v60 = vmul.f32 %v6969_v7, %v2700_v3  ;;  %v3096_v37 = vpop.f32.mrf.mxu2  ;;  %v3177_v52 = vpop.f32.mrf.mxu3  ;;  %v7288_v3 = vld [vmem:[#allocation2 + $0x58] sm:$0xff] }
 0x2bf   : > { %v3233_v18 = vrot.slane %v3177_v52, 7  ;;  %v3419_v52 = vsel %vm1727_vm3, %v3382_v23, 0.0 }
 0x2c0   : > { %v2740_v19 = vadd.f32 %v6983_v38, %v2720_v60  ;;  %v5764_v60 = vunpack.c.l.bf16 %v5763_v41 }
 0x2c1   : > { %v3273_v2 = vsel %vm1580_vm2, 0.0, %v3233_v18  ;;  %v7234_v62 = vpop.f32.mrf.mxu0 }
 0x2c2   : > { %v3281_v42 = vadd.f32 %v3273_v2, %v3096_v37  ;;  %v3394_v21 = vrot.slane %v7234_v62, 1  ;;  %v2756_v32 = vmax.f32 %v2740_v19, 0.0  ;;  %v5765_v19 = vunpack.c.h.bf16 %v5763_v41 }
 0x2c4   : > { %v2764_v22 = vpack.c.bf16 %v2756_v32, %v2755_v56  ;;  %v7238_v6 = vadd.f32 %v7073_v55, %v3281_v42  ;;  %v7243_v7 = vsel %vm1727_vm3, %v3393_v61, %v3394_v21  ;;  %v3418_v55 = vsel %vm1727_vm3, %v3379_v17, 0.0 }
 0x2c6   : > { %5293 = vmatmul.msk.bf16.gmra.mxu1 %vm1409_vm1, %v2764_v22  ;;  %v3098_v38 = vpop.f32.mrf.mxu2  ;;  %v3179_v25 = vpop.f32.mrf.mxu3 }
 0x2c7   : > { %v3234_v47 = vrot.slane %v3179_v25, 7 }
 0x2c9   : > { %v3235_v27 = vsel %vm1580_vm2, %v3233_v18, %v3234_v47  ;;  %v3352_v11 = vpop.f32.mrf.mxu0 }
 0x2ca   : > { %v3282_v10 = vadd.f32 %v3235_v27, %v3098_v38  ;;  %v3396_v17 = vrot.slane %v3352_v11, 1 }
 0x2cb   : > { %5447 = vmatmul.msk.bf16.gmra.mxu2 %vm1409_vm1, %v7247_v26  ;;  %5467 = vmatmul.msk.bf16.gmra.mxu3 %vm1409_vm1, %v7247_v26 }
 0x2cc   : > { %5524 = vmatmul.msk.bf16.gmra.mxu0 %vm1409_vm1, %v7249_v58  ;;  %v7260_v28 = vadd.f32 %v3418_v55, %v3282_v10 }
 0x2ce   : > { %v3101_v57 = vpop.f32.mrf.mxu2  ;;  %v3182_v49 = vpop.f32.mrf.mxu3 }
 0x2cf   : > { %v3236_v0 = vrot.slane %v3182_v49, 7 }
 0x2d1   : > { %v3274_v15 = vsel %vm1580_vm2, 0.0, %v3236_v0  ;;  %v7263_v44 = vpop.f32.mrf.mxu0 }
 0x2d2   : > { %v3283_v43 = vadd.f32 %v3274_v15, %v3101_v57  ;;  %v3397_v40 = vrot.slane %v7263_v44, 1 }
 0x2d3   : > { %v2814_v4 = vpop.f32.mrf.mxu1 }
 0x2d4   : > { %v7272_v59 = vadd.f32 %v7114_v5, %v3283_v43  ;;  %v7277_v24 = vsel %vm1727_vm3, %v3396_v17, %v3397_v40  ;;  %v2858_v31 = vmul.f32 %v7269_v33, %v2814_v4  ;;  %v5906_v4 = vld [vmem:[%s6264_s16 + $0x8] sm:$0xff]  }
 0x2d5   : > { %v5768_v41 = vunpack.c.l.bf16 %v5906_v4 }
 0x2d6   : > { %v3103_v51 = vpop.f32.mrf.mxu2  ;;  %v3184_v12 = vpop.f32.mrf.mxu3  ;;  %5426 = vmatmul.msk.bf16.vlgmr.msra.gmra.mxu1 %vm1409_vm1, %v5731_v13  ;;  %v2878_v35 = vadd.f32 %v7283_v16, %v2858_v31 }
 0x2d7   : > { %v3237_v5 = vrot.slane %v3184_v12, 7 }
 0x2d8   : > { %v2926_v2 = vadd.f32 %v5764_v60, %v2878_v35  ;;  %v5769_v35 = vunpack.c.h.bf16 %v5906_v4 }
 0x2d9   : > { %v3238_v36 = vsel %vm1580_vm2, %v3236_v0, %v3237_v5  ;;  %v3357_v46 = vpop.f32.mrf.mxu0 }
 0x2da   : > { %v3284_v37 = vadd.f32 %v3238_v36, %v3103_v51  ;;  %v2942_v25 = vmax.f32 %v2926_v2, 0.0  ;;  %v3399_v10 = vrot.slane %v3357_v46, 1  ;;  %v7325_v51 = vld [vmem:[#allocation2 + $0x60] sm:$0xff]  ;;  %v3420_v36 = vsel %vm1727_vm3, %v3385_v54, 0.0 }
 0x2db   : > { %v2816_v18 = vpop.f32.mrf.mxu1  ;;  %5448 = vmatmul.msk.bf16.gmra.mxu2 %vm1409_vm1, %v7288_v3  ;;  %5468 = vmatmul.msk.bf16.gmra.mxu3 %vm1409_vm1, %v7288_v3  ;;  %v3388_v54 = vrot.slane %v7177_v30, 1  ;;  %v3387_v2 = vrot.slane %v7158_v63, 1  ;;  %v5757_v63 = vld [vmem:[%s7795_s4 + $0x80] sm:$0xff] }
 0x2dc   : > { %v2859_v13 = vmul.f32 %v7269_v33, %v2816_v18  ;;  %v7299_v61 = vadd.f32 %v3419_v52, %v3284_v37  ;;  %4223 = vmatpush.bf16.msrb.mxu2 %v5757_v63 }
 0x2de   : > { %v2879_v42 = vadd.f32 %v7283_v16, %v2859_v13  ;;  %v3106_v56 = vpop.f32.mrf.mxu2  ;;  %v3187_v29 = vpop.f32.mrf.mxu3 }
 0x2df   : > { %v3239_v32 = vrot.slane %v3187_v29, 7 }
 0x2e0   : > { %v2927_v23 = vadd.f32 %v5765_v19, %v2879_v42 }
 0x2e1   : > { %v3275_v22 = vsel %vm1580_vm2, 0.0, %v3239_v32  ;;  %v7306_v38 = vpop.f32.mrf.mxu0 }
 0x2e2   : > { %v2943_v47 = vmax.f32 %v2927_v23, 0.0  ;;  %v3285_v27 = vadd.f32 %v3275_v22, %v3106_v56  ;;  %v3400_v11 = vrot.slane %v7306_v38, 1  ;;  %v3389_v22 = vsel %vm1727_vm3, %v3387_v2, %v3388_v54 }
 0x2e3   : > { %v2819_v55 = vpop.f32.mrf.mxu1 }
 0x2e4   : > { %v5797_v57 = vpack.c.bf16 %v2943_v47, %v2942_v25  ;;  %v7310_v49 = vadd.f32 %v7149_v9, %v3285_v27  ;;  %v7315_v0 = vsel %vm1727_vm3, %v3399_v10, %v3400_v11  ;;  %v2860_v15 = vmul.f32 %v7269_v33, %v2819_v55 }
 0x2e6   : > { %5798 = vst [vmem:[%s7317_s27] sm:$0xff] %v5797_v57   ;;  %v3108_v17 = vpop.f32.mrf.mxu2  ;;  %v3189_v43 = vpop.f32.mrf.mxu3  ;;  %5427 = vmatmul.msk.bf16.gmra.mxu1 %vm1409_vm1, %v7247_v26  ;;  %v2880_v12 = vadd.f32 %v7283_v16, %v2860_v15  ;;  %v5907_v57 = vld [vmem:[%s6264_s16 + $0x10] sm:$0xff]  }
 0x2e7   : > { %v3240_v31 = vrot.slane %v3189_v43, 7  ;;  %v5735_v43 = vld [vmem:[#allocation2 + $0x68] sm:$0xff] }
 0x2e8   : > { %v2928_v37 = vadd.f32 %v5768_v41, %v2880_v12 }
 0x2e9   : > { %v3241_v9 = vsel %vm1580_vm2, %v3239_v32, %v3240_v31  ;;  %v5772_v31 = vunpack.c.l.bf16 %v5907_v57 }
 0x2ea   : > { %v3286_v5 = vadd.f32 %v3241_v9, %v3108_v17  ;;  %v2944_v56 = vmax.f32 %v2928_v37, 0.0  ;;  %v5755_v9 = vld [vmem:[%s7795_s4 + $0x60] sm:$0xff] }
 0x2eb   : > { %v2821_v46 = vpop.f32.mrf.mxu1  ;;  %5449 = vmatmul.msk.bf16.gmra.mxu2 %vm1409_vm1, %v7325_v51  ;;  %5469 = vmatmul.msk.bf16.gmra.mxu3 %vm1409_vm1, %v7325_v51 }
 0x2ec   : > { %v2861_v26 = vmul.f32 %v7269_v33, %v2821_v46  ;;  %v7336_v60 = vadd.f32 %v3420_v36, %v3286_v5  ;;  %v5773_v5 = vunpack.c.h.bf16 %v5907_v57  ;;  %4078 = vmatpush.bf16.msrb.mxu1 %v5755_v9 }
 0x2ee   : > { %v2881_v52 = vadd.f32 %v7283_v16, %v2861_v26  ;;  %v3111_v18 = vpop.f32.mrf.mxu2  ;;  %v3192_v20 = vpop.f32.mrf.mxu3 }
 0x2ef   : > { %v3242_v13 = vrot.slane %v3192_v20, 7 }
 0x2f0   : > { %v2929_v19 = vadd.f32 %v5769_v35, %v2881_v52 }
 0x2f1   : > { %v3276_v42 = vsel %vm1580_vm2, 0.0, %v3242_v13 }
 0x2f2   : > { %v2945_v29 = vmax.f32 %v2929_v19, 0.0  ;;  %v3287_v32 = vadd.f32 %v3276_v42, %v3111_v18 }
 0x2f3   : > { %v2824_v23 = vpop.f32.mrf.mxu1 }
 0x2f4   : > { %v5802_v25 = vpack.c.bf16 %v2945_v29, %v2944_v56  ;;  %v7345_v47 = vadd.f32 %v3389_v22, %v3287_v32  ;;  %v2862_v27 = vmul.f32 %v7269_v33, %v2824_v23  ;;  %v5908_v22 = vld [vmem:[%s6264_s16 + $0x18] sm:$0xff]  }
 0x2f5   : > { %v5776_v63 = vunpack.c.l.bf16 %v5908_v22 }
 0x2f6   : > { %5913 = vst [vmem:[%s7317_s27 + $0x8] sm:$0xff] %v5802_v25   ;;  %v3113_v10 = vpop.f32.mrf.mxu2  ;;  %v3194_v55 = vpop.f32.mrf.mxu3  ;;  %5428 = vmatmul.msk.bf16.gmra.mxu1 %vm1409_vm1, %v7288_v3  ;;  %v2882_v4 = vadd.f32 %v7283_v16, %v2862_v27  ;;  %v5736_v27 = vld [vmem:[#allocation2 + $0x70] sm:$0xff] }
 0x2f7   : > { %v3243_v15 = vrot.slane %v3194_v55, 7 }
 0x2f8   : > { %v2930_v36 = vadd.f32 %v5772_v31, %v2882_v4 }
 0x2f9   : > { %v3244_v17 = vsel %vm1580_vm2, %v3242_v13, %v3243_v15 }
 0x2fa   : > { %v7360_v12 = vadd.f32 %v3244_v17, %v3113_v10  ;;  %v2946_v20 = vmax.f32 %v2930_v36, 0.0  ;;  %v5777_v17 = vunpack.c.h.bf16 %v5908_v22 }
 0x2fb   : > { %v2826_v3 = vpop.f32.mrf.mxu1  ;;  %5450 = vmatmul.msk.bf16.gmra.mxu2 %vm1409_vm1, %v5735_v43  ;;  %5470 = vmatmul.msk.bf16.gmra.mxu3 %vm1409_vm1, %v5735_v43 }
 0x2fc   : > { %v2863_v41 = vmul.f32 %v7269_v33, %v2826_v3 }
 0x2fe   : > { %v2883_v46 = vadd.f32 %v7283_v16, %v2863_v41  ;;  %v3116_v26 = vpop.f32.mrf.mxu2  ;;  %v3197_v35 = vpop.f32.mrf.mxu3 }
 0x2ff   : > { %v3245_v37 = vrot.slane %v3197_v35, 7 }
 0x300   : > { %v2931_v52 = vadd.f32 %v5773_v5, %v2883_v46 }
 0x301   : > { %v3277_v18 = vsel %vm1580_vm2, 0.0, %v3245_v37 }
 0x302   : > { %v2947_v13 = vmax.f32 %v2931_v52, 0.0  ;;  %v3289_v19 = vadd.f32 %v3277_v18, %v3116_v26 }
 0x303   : > { %v2829_v2 = vpop.f32.mrf.mxu1 }
 0x304   : > { %v5807_v42 = vpack.c.bf16 %v2947_v13, %v2946_v20  ;;  %v7368_v56 = vadd.f32 %v7213_v53, %v3289_v19  ;;  %v2864_v29 = vmul.f32 %v7269_v33, %v2829_v2  ;;  %v3422_v53 = vsel %vm1727_vm3, %v3391_v45, 0.0  ;;  %v5909_v19 = vld [vmem:[%s6264_s16 + $0x20] sm:$0xff]  }
 0x306   : > { %5914 = vst [vmem:[%s7317_s27 + $0x10] sm:$0xff] %v5807_v42   ;;  %v3118_v32 = vpop.f32.mrf.mxu2  ;;  %v3199_v23 = vpop.f32.mrf.mxu3  ;;  %5429 = vmatmul.msk.bf16.gmra.mxu1 %vm1409_vm1, %v7325_v51  ;;  %v2884_v55 = vadd.f32 %v7283_v16, %v2864_v29  ;;  %v7394_v42 = vld [vmem:[#allocation2 + $0x78] sm:$0xff] }
 0x307   : > { %v3246_v25 = vrot.slane %v3199_v23, 7  ;;  %v5780_v23 = vunpack.c.l.bf16 %v5909_v19 }
 0x308   : > { %v2932_v31 = vadd.f32 %v5776_v63, %v2884_v55 }
 0x309   : > { %v3247_v10 = vsel %vm1580_vm2, %v3245_v37, %v3246_v25 }
 0x30a   : > { %v3290_v57 = vadd.f32 %v3247_v10, %v3118_v32  ;;  %v2948_v36 = vmax.f32 %v2932_v31, 0.0  ;;  %v5781_v10 = vunpack.c.h.bf16 %v5909_v19 }
 0x30b   : > { %v2831_v15 = vpop.f32.mrf.mxu1  ;;  %5451 = vmatmul.msk.bf16.gmra.mxu2 %vm1409_vm1, %v5736_v27  ;;  %5471 = vmatmul.msk.bf16.gmra.mxu3 %vm1409_vm1, %v5736_v27 }
 0x30c   : > { %v2865_v51 = vmul.f32 %v7269_v33, %v2831_v15  ;;  %v7383_v4 = vadd.f32 %v3422_v53, %v3290_v57 }
 0x30e   : > { %v2885_v9 = vadd.f32 %v7283_v16, %v2865_v51  ;;  %v3121_v3 = vpop.f32.mrf.mxu2  ;;  %v3202_v41 = vpop.f32.mrf.mxu3 }
 0x30f   : > { %v3248_v1 = vrot.slane %v3202_v41, 7 }
 0x310   : > { %v2933_v5 = vadd.f32 %v5777_v17, %v2885_v9 }
 0x311   : > { %v3278_v45 = vsel %vm1580_vm2, 0.0, %v3248_v1 }
 0x312   : > { %v2949_v46 = vmax.f32 %v2933_v5, 0.0  ;;  %v3291_v26 = vadd.f32 %v3278_v45, %v3121_v3 }
 0x313   : > { %v2834_v35 = vpop.f32.mrf.mxu1 }
 0x314   : > { %v5812_v37 = vpack.c.bf16 %v2949_v46, %v2948_v36  ;;  %v7388_v52 = vadd.f32 %v7243_v7, %v3291_v26  ;;  %v2866_v18 = vmul.f32 %v7269_v33, %v2834_v35  ;;  %v3423_v7 = vsel %vm1727_vm3, %v3394_v21, 0.0  ;;  %v5910_v46 = vld [vmem:[%s6264_s16 + $0x28] sm:$0xff]   ;;  %v5738_v35 = vld [vmem:[#allocation2 + $0x80] sm:$0xff] }
 0x316   : > { %5915 = vst [vmem:[%s7317_s27 + $0x18] sm:$0xff] %v5812_v37   ;;  %v3123_v20 = vpop.f32.mrf.mxu2  ;;  %v3204_v13 = vpop.f32.mrf.mxu3  ;;  %5430 = vmatmul.msk.bf16.gmra.mxu1 %vm1409_vm1, %v5735_v43  ;;  %v2886_v32 = vadd.f32 %v7283_v16, %v2866_v18 }
 0x317   : > { %v3249_v2 = vrot.slane %v3204_v13, 7 }
 0x318   : > { %v2934_v63 = vadd.f32 %v5780_v23, %v2886_v32 }
 0x319   : > { %v3250_v29 = vsel %vm1580_vm2, %v3248_v1, %v3249_v2  ;;  %v7424_v2 = vld [vmem:[#allocation2 + $0x88] sm:$0xff] }
 0x31a   : > { %v3292_v22 = vadd.f32 %v3250_v29, %v3123_v20  ;;  %v2950_v17 = vmax.f32 %v2934_v63, 0.0  ;;  %v5784_v20 = vunpack.c.l.bf16 %v5910_v46  ;;  %v5785_v29 = vunpack.c.h.bf16 %v5910_v46  ;;  %5525 = vmatmul.msk.bf16.gmra.mxu0 %vm1409_vm1, %v7424_v2 }
 0x31b   : > { %v2836_v25 = vpop.f32.mrf.mxu1  ;;  %5452 = vmatmul.msk.bf16.gmra.mxu2 %vm1409_vm1, %v7394_v42  ;;  %5472 = vmatmul.msk.bf16.gmra.mxu3 %vm1409_vm1, %v7394_v42 }
 0x31c   : > { %v2867_v43 = vmul.f32 %v7269_v33, %v2836_v25  ;;  %v7406_v55 = vadd.f32 %v3423_v7, %v3292_v22 }
 0x31e   : > { %v2887_v57 = vadd.f32 %v7283_v16, %v2867_v43  ;;  %v3126_v53 = vpop.f32.mrf.mxu2  ;;  %v3207_v62 = vpop.f32.mrf.mxu3 }
 0x31f   : > { %v3251_v21 = vrot.slane %v3207_v62, 7 }
 0x320   : > { %v2935_v15 = vadd.f32 %v5781_v10, %v2887_v57 }
 0x321   : > { %v3279_v51 = vsel %vm1580_vm2, 0.0, %v3251_v21 }
 0x322   : > { %v2951_v31 = vmax.f32 %v2935_v15, 0.0  ;;  %v3293_v9 = vadd.f32 %v3279_v51, %v3126_v53 }
 0x323   : > { %v2839_v3 = vpop.f32.mrf.mxu1 }
 0x324   : > { %v5817_v41 = vpack.c.bf16 %v2951_v31, %v2950_v17  ;;  %v7411_v1 = vadd.f32 %v7277_v24, %v3293_v9  ;;  %v2868_v5 = vmul.f32 %v7269_v33, %v2839_v3  ;;  %v3424_v24 = vsel %vm1727_vm3, %v3397_v40, 0.0  ;;  %v5911_v31 = vld [vmem:[%s6264_s16 + $0x30] sm:$0xff]  }
 0x326   : > { %5916 = vst [vmem:[%s7317_s27 + $0x20] sm:$0xff] %v5817_v41   ;;  %v3128_v45 = vpop.f32.mrf.mxu2  ;;  %v3209_v36 = vpop.f32.mrf.mxu3  ;;  %5431 = vmatmul.msk.bf16.gmra.mxu1 %vm1409_vm1, %v5736_v27  ;;  %v2888_v18 = vadd.f32 %v7283_v16, %v2868_v5  ;;  %v5788_v5 = vunpack.c.l.bf16 %v5911_v31 }
 0x327   : > { %v3252_v26 = vrot.slane %v3209_v36, 7 }
 0x328   : > { %v2936_v23 = vadd.f32 %v5784_v20, %v2888_v18 }
 0x329   : > { %v3253_v37 = vsel %vm1580_vm2, %v3251_v21, %v3252_v26 }
 0x32a   : > { %v3294_v13 = vadd.f32 %v3253_v37, %v3128_v45  ;;  %v2952_v10 = vmax.f32 %v2936_v23, 0.0  ;;  %v5912_v23 = vld [vmem:[%s6264_s16 + $0x38] sm:$0xff]  }
 0x32b   : > { %v2841_v19 = vpop.f32.mrf.mxu1  ;;  %5453 = vmatmul.msk.bf16.gmra.mxu2 %vm1409_vm1, %v5738_v35  ;;  %5473 = vmatmul.msk.bf16.gmra.mxu3 %vm1409_vm1, %v5738_v35 }
 0x32c   : > { %v2869_v27 = vmul.f32 %v7269_v33, %v2841_v19  ;;  %v7427_v32 = vadd.f32 %v3424_v24, %v3294_v13 }
 0x32e   : > { %v2889_v44 = vadd.f32 %v7283_v16, %v2869_v27  ;;  %v3131_v40 = vpop.f32.mrf.mxu2  ;;  %v3212_v22 = vpop.f32.mrf.mxu3 }
 0x32f   : > { %v3254_v7 = vrot.slane %v3212_v22, 7 }
 0x330   : > { %v2937_v25 = vadd.f32 %v5785_v29, %v2889_v44 }
 0x331   : > { %v3280_v43 = vsel %vm1580_vm2, 0.0, %v3254_v7 }
 0x332   : > { %v2953_v63 = vmax.f32 %v2937_v25, 0.0  ;;  %v3295_v57 = vadd.f32 %v3280_v43, %v3131_v40 }
 0x333   : > { %v2844_v53 = vpop.f32.mrf.mxu1 }
 0x334   : > { %v5822_v62 = vpack.c.bf16 %v2953_v63, %v2952_v10  ;;  %v7434_v21 = vadd.f32 %v7315_v0, %v3295_v57  ;;  %v2870_v15 = vmul.f32 %v7269_v33, %v2844_v53  ;;  %v3425_v0 = vsel %vm1727_vm3, %v3400_v11, 0.0 }
 0x335   : > { %v5793_v10 = vunpack.c.h.bf16 %v5912_v23 }
 0x336   : > { %5917 = vst [vmem:[%s7317_s27 + $0x28] sm:$0xff] %v5822_v62   ;;  %v3133_v51 = vpop.f32.mrf.mxu2  ;;  %v3214_v17 = vpop.f32.mrf.mxu3  ;;  %5432 = vmatmul.msk.bf16.gmra.mxu1 %vm1409_vm1, %v7394_v42  ;;  %v2890_v41 = vadd.f32 %v7283_v16, %v2870_v15  ;;  %v5789_v42 = vunpack.c.h.bf16 %v5911_v31 }
 0x337   : > { %v3255_v9 = vrot.slane %v3214_v17, 7 }
 0x338   : > { %v2938_v37 = vadd.f32 %v5788_v5, %v2890_v41 }
 0x339   : > { %v3256_v3 = vsel %vm1580_vm2, %v3254_v7, %v3255_v9  ;;  %v5792_v7 = vunpack.c.l.bf16 %v5912_v23 }
 0x33a   : > { %v3296_v45 = vadd.f32 %v3256_v3, %v3133_v51  ;;  %v2954_v24 = vmax.f32 %v2938_v37, 0.0  ;;  %v5760_v51 = vld [vmem:[%s7796_s5 + $0x8] sm:$0xff] }
 0x33b   : > { %v2846_v36 = vpop.f32.mrf.mxu1  ;;  %5558 = vmatmul.msk.bf16.vlgmr.msrb.gmra.mxu2 %vm1409_vm1, %v7047_v39  ;;  %4455 = vmatpush.bf16.msrb.mxu3 %v5760_v51 }
 0x33c   : > { %v2871_v46 = vmul.f32 %v7269_v33, %v2846_v36  ;;  %v7449_v26 = vadd.f32 %v3425_v0, %v3296_v45 }
 0x33e   : > { %v2891_v18 = vadd.f32 %v7283_v16, %v2871_v46  ;;  %v3628_v20 = vpop.f32.mrf.mxu2 }
 0x33f   : > { %v3684_v29 = vrot.slane %v3628_v20, 7 }
 0x340   : > { %v2939_v13 = vadd.f32 %v5789_v42, %v2891_v18 }
 0x341   : > { %v3724_v3 = vsel %vm1580_vm2, 0.0, %v3684_v29 }
 0x342   : > { %v2955_v19 = vmax.f32 %v2939_v13, 0.0 }
 0x343   : > { %v2849_v38 = vpop.f32.mrf.mxu1 }
 0x344   : > { %v5827_v27 = vpack.c.bf16 %v2955_v19, %v2954_v24  ;;  %v2872_v11 = vmul.f32 %v7269_v33, %v2849_v38 }
 0x346   : > { %5918 = vst [vmem:[%s7317_s27 + $0x30] sm:$0xff] %v5827_v27   ;;  %5433 = vmatmul.msk.bf16.gmra.mxu1 %vm1409_vm1, %v5738_v35  ;;  %v3630_v39 = vpop.f32.mrf.mxu2  ;;  %v2892_v22 = vadd.f32 %v7283_v16, %v2872_v11 }
 0x347   : > { %v3685_v44 = vrot.slane %v3630_v39, 7 }
 0x348   : > { %v2940_v63 = vadd.f32 %v5792_v7, %v2892_v22 }
 0x349   : > { %v3686_v40 = vsel %vm1580_vm2, %v3684_v29, %v3685_v44 }
 0x34a   : > { %v2956_v62 = vmax.f32 %v2940_v63, 0.0 }
 0x34b   : > { %v2851_v25 = vpop.f32.mrf.mxu1  ;;  %5559 = vmatmul.msk.bf16.gmra.mxu2 %vm1409_vm1, %v7087_v50 }
 0x34c   : > { %v2873_v43 = vmul.f32 %v7269_v33, %v2851_v25 }
 0x34e   : > { %v2893_v35 = vadd.f32 %v7283_v16, %v2873_v43  ;;  %v3633_v57 = vpop.f32.mrf.mxu2  ;;  %v6010_v16 = vld [vmem:[#allocation2 + $0x50] sm:$0xff] }
 0x34f   : > { %v3687_v5 = vrot.slane %v3633_v57, 7 }
 0x350   : > { %v2941_v53 = vadd.f32 %v5793_v10, %v2893_v35 }
 0x351   : > { %v3725_v20 = vsel %vm1580_vm2, 0.0, %v3687_v5 }
 0x352   : > { %v2957_v15 = vmax.f32 %v2941_v53, 0.0 }
 0x353   : > { %v3547_v17 = vpop.f32.mrf.mxu1 }
 0x354   : > { %v5832_v31 = vpack.c.bf16 %v2957_v15, %v2956_v62  ;;  %v3587_v9 = vadd.f32 %v3547_v17, %v7238_v6 }
 0x356   : > { %5919 = vst [vmem:[%s7317_s27 + $0x38] sm:$0xff] %v5832_v31   ;;  %v7468_v33 = vadd.f32 %v3724_v3, %v3587_v9  ;;  %v3635_v41 = vpop.f32.mrf.mxu2  ;;  %5538 = vmatmul.msk.bf16.vlgmr.msrb.gmra.mxu1 %vm1409_vm1, %v6010_v16 }
 0x357   : > { %v3688_v45 = vrot.slane %v3635_v41, 7 }
 0x359   : > { %v3689_v0 = vsel %vm1580_vm2, %v3687_v5, %v3688_v45 }
 0x35b   : > { %v3549_v36 = vpop.f32.mrf.mxu1  ;;  %5560 = vmatmul.msk.bf16.gmra.mxu2 %vm1409_vm1, %v7122_v8 }
 0x35c   : > { %v3588_v6 = vadd.f32 %v3549_v36, %v7260_v28 }
 0x35e   : > { %v7475_v46 = vadd.f32 %v3686_v40, %v3588_v6  ;;  %v3638_v42 = vpop.f32.mrf.mxu2 }
 0x35f   : > { %v3690_v19 = vrot.slane %v3638_v42, 7 }
 0x361   : > { %v3726_v44 = vsel %vm1580_vm2, 0.0, %v3690_v19 }
 0x363   : > { %v3552_v37 = vpop.f32.mrf.mxu1 }
 0x364   : > { %v3589_v18 = vadd.f32 %v3552_v37, %v7272_v59  ;;  %v3773_v37 = vpop.f32.mrf.mxu3 }
 0x366   : > { %v7479_v13 = vadd.f32 %v3725_v20, %v3589_v18  ;;  %v3640_v24 = vpop.f32.mrf.mxu2  ;;  %5539 = vmatmul.msk.bf16.gmra.mxu1 %vm1409_vm1, %v7087_v50 }
 0x367   : > { %v3691_v38 = vrot.slane %v3640_v24, 7 }
 0x369   : > { %v3692_v27 = vsel %vm1580_vm2, %v3690_v19, %v3691_v38 }
 0x36b   : > { %v3554_v11 = vpop.f32.mrf.mxu1  ;;  %5561 = vmatmul.msk.bf16.gmra.mxu2 %vm1409_vm1, %v7161_v14 }
 0x36c   : > { %v3590_v28 = vadd.f32 %v3554_v11, %v7299_v61 }
 0x36e   : > { %v7487_v39 = vadd.f32 %v3689_v0, %v3590_v28  ;;  %v3643_v59 = vpop.f32.mrf.mxu2  ;;  %v3775_v28 = vpop.f32.mrf.mxu3 }
 0x36f   : > { %v3693_v22 = vrot.slane %v3643_v59, 7 }
 0x371   : > { %v3727_v57 = vsel %vm1580_vm2, 0.0, %v3693_v22 }
 0x373   : > { %v3557_v29 = vpop.f32.mrf.mxu1 }
 0x374   : > { %v3591_v23 = vadd.f32 %v3557_v29, %v7310_v49 }
 0x376   : > { %v7491_v40 = vadd.f32 %v3726_v44, %v3591_v23  ;;  %v3645_v50 = vpop.f32.mrf.mxu2  ;;  %5540 = vmatmul.msk.bf16.gmra.mxu1 %vm1409_vm1, %v7122_v8 }
 0x377   : > { %v3694_v7 = vrot.slane %v3645_v50, 7  ;;  %v3999_v50 = vpop.f32.mrf.mxu0 }
 0x379   : > { %v3695_v25 = vsel %vm1580_vm2, %v3693_v22, %v3694_v7  ;;  %v3778_v22 = vpop.f32.mrf.mxu3 }
 0x37b   : > { %v3559_v43 = vpop.f32.mrf.mxu1  ;;  %5562 = vmatmul.msk.bf16.gmra.mxu2 %vm1409_vm1, %v7186_v34 }
 0x37c   : > { %v3592_v61 = vadd.f32 %v3559_v43, %v7336_v60  ;;  %v3421_v60 = vsel %vm1727_vm3, %v3388_v54, 0.0 }
 0x37d   : > { %v3433_v17 = vadd.f32 %v3421_v60, %v7360_v12 }
 0x37e   : > { %v7499_v10 = vadd.f32 %v3692_v27, %v3592_v61  ;;  %v3648_v49 = vpop.f32.mrf.mxu2 }
 0x37f   : > { %v3696_v62 = vrot.slane %v3648_v49, 7 }
 0x381   : > { %v3728_v54 = vsel %vm1580_vm2, 0.0, %v3696_v62 }
 0x383   : > { %v3562_v63 = vpop.f32.mrf.mxu1 }
 0x384   : > { %v3593_v35 = vadd.f32 %v3562_v63, %v7345_v47 }
 0x386   : > { %v7503_v53 = vadd.f32 %v3727_v57, %v3593_v35  ;;  %v3650_v8 = vpop.f32.mrf.mxu2  ;;  %5541 = vmatmul.msk.bf16.gmra.mxu1 %vm1409_vm1, %v7161_v14  ;;  %v5759_v14 = vld [vmem:[%s7796_s5] sm:$0xff]  ;;  %v4001_v57 = vpop.f32.mrf.mxu0 }
 0x387   : > { %v3697_v15 = vrot.slane %v3650_v8, 7  ;;  %4456 = vmatpush.bf16.msrb.mxu3 %v5759_v14  ;;  %v3780_v8 = vpop.f32.mrf.mxu3  ;;  %v3829_v14 = vrot.slane %v3773_v37, 1 }
 0x389   : > { %v3698_v51 = vsel %vm1580_vm2, %v3696_v62, %v3697_v15 }
 0x38b   : > { %v3564_v31 = vpop.f32.mrf.mxu1  ;;  %5563 = vmatmul.msk.bf16.gmra.mxu2 %vm1409_vm1, %v7220_v48 }
 0x38c   : > { %v3594_v47 = vadd.f32 %v3564_v31, %v3433_v17 }
 0x38e   : > { %v7514_v9 = vadd.f32 %v3695_v25, %v3594_v47  ;;  %v3653_v3 = vpop.f32.mrf.mxu2  ;;  %v4004_v17 = vpop.f32.mrf.mxu0  ;;  %v3830_v47 = vrot.slane %v3775_v28, 1 }
 0x38f   : > { %v3699_v5 = vrot.slane %v3653_v3, 7  ;;  %v7559_v31 = vpop.f32.mrf.mxu3 }
 0x391   : > { %v3729_v24 = vsel %vm1580_vm2, 0.0, %v3699_v5 }
 0x393   : > { %v3567_v41 = vpop.f32.mrf.mxu1 }
 0x394   : > { %v3595_v30 = vadd.f32 %v3567_v41, %v7368_v56 }
 0x396   : > { %v7521_v16 = vadd.f32 %v3728_v54, %v3595_v30  ;;  %v3655_v12 = vpop.f32.mrf.mxu2  ;;  %5542 = vmatmul.msk.bf16.gmra.mxu1 %vm1409_vm1, %v7186_v34 }
 0x397   : > { %v3700_v45 = vrot.slane %v3655_v12, 7  ;;  %v4006_v12 = vpop.f32.mrf.mxu0 }
 0x399   : > { %v3701_v0 = vsel %vm1580_vm2, %v3699_v5, %v3700_v45  ;;  %v7566_v45 = vpop.f32.mrf.mxu3 }
 0x39b   : > { %v3569_v36 = vpop.f32.mrf.mxu1  ;;  %5564 = vmatmul.msk.bf16.gmra.mxu2 %vm1409_vm1, %v7249_v58 }
 0x39c   : > { %v3596_v6 = vadd.f32 %v3569_v36, %v7383_v4 }
 0x39e   : > { %v7529_v56 = vadd.f32 %v3698_v51, %v3596_v6  ;;  %v3658_v42 = vpop.f32.mrf.mxu2 }
 0x39f   : > { %v3702_v38 = vrot.slane %v3658_v42, 7 }
 0x3a3   : > { %v3572_v18 = vpop.f32.mrf.mxu1 }
 0x3a4   : > { %v3597_v20 = vadd.f32 %v3572_v18, %v7388_v52 }
 0x3a6   : > { %v7533_v34 = vadd.f32 %v3729_v24, %v3597_v20  ;;  %v3660_v19 = vpop.f32.mrf.mxu2  ;;  %5543 = vmatmul.msk.bf16.gmra.mxu1 %vm1409_vm1, %v7220_v48  ;;  %v3730_v48 = vsel %vm1580_vm2, 0.0, %v3702_v38 }
 0x3a7   : > { %v3703_v27 = vrot.slane %v3660_v19, 7 }
 0x3a9   : > { %v3704_v11 = vsel %vm1580_vm2, %v3702_v38, %v3703_v27  ;;  %v3833_v27 = vrot.slane %v3780_v8, 1 }
 0x3ab   : > { %v3574_v4 = vpop.f32.mrf.mxu1  ;;  %5565 = vmatmul.msk.bf16.gmra.mxu2 %vm1409_vm1, %v7424_v2 }
 0x3ac   : > { %v3598_v59 = vadd.f32 %v3574_v4, %v7406_v55  ;;  %v4009_v4 = vpop.f32.mrf.mxu0 }
 0x3ae   : > { %v7541_v52 = vadd.f32 %v3701_v0, %v3598_v59  ;;  %v3663_v29 = vpop.f32.mrf.mxu2  ;;  %v3832_v59 = vrot.slane %v3778_v22, 1 }
 0x3af   : > { %v3705_v43 = vrot.slane %v3663_v29, 7  ;;  %v7577_v29 = vpop.f32.mrf.mxu3 }
 0x3b1   : > { %v3731_v60 = vsel %vm1580_vm2, 0.0, %v3705_v43 }
 0x3b3   : > { %v3577_v23 = vpop.f32.mrf.mxu1 }
 0x3b4   : > { %v3599_v44 = vadd.f32 %v3577_v23, %v7411_v1 }
 0x3b6   : > { %v7545_v7 = vadd.f32 %v3730_v48, %v3599_v44  ;;  %v3665_v25 = vpop.f32.mrf.mxu2  ;;  %5544 = vmatmul.msk.bf16.gmra.mxu1 %vm1409_vm1, %v7249_v58 }
 0x3b7   : > { %v3706_v61 = vrot.slane %v3665_v25, 7  ;;  %v3834_v25 = vsel %vm1727_vm3, %v3832_v59, %v3833_v27 }
 0x3b9   : > { %v3707_v55 = vsel %vm1580_vm2, %v3705_v43, %v3706_v61  ;;  %v3879_v61 = vadd.f32 %v3834_v25, %v7479_v13  ;;  %v3870_v13 = vsel %vm1727_vm3, %v3833_v27, 0.0 }
 0x3bb   : > { %v3579_v49 = vpop.f32.mrf.mxu1  ;;  %v4041_v8 = vadd.f32 %v4004_v17, %v3879_v61 }
 0x3bc   : > { %v3600_v63 = vadd.f32 %v3579_v49, %v7427_v32 }
 0x3be   : > { %v7551_v35 = vadd.f32 %v3704_v11, %v3600_v63  ;;  %v4225_v1 = vpop.f32.mrf.mxu2 }
 0x3bf   : > { %v4281_v37 = vrot.slane %v4225_v1, 1 }
 0x3c3   : > { %v3582_v62 = vpop.f32.mrf.mxu1 }
 0x3c4   : > { %v3601_v15 = vadd.f32 %v3582_v62, %v7434_v21  ;;  %v3831_v21 = vsel %vm1727_vm3, %v3829_v14, %v3830_v47  ;;  %v7594_v14 = vpop.f32.mrf.mxu3 }
 0x3c5   : > { %v3877_v54 = vadd.f32 %v3831_v21, %v7468_v33  ;;  %v7575_v33 = vld [vmem:[%s7799_s8] ss:$0 sm:$0xff] }
 0x3c6   : > { %v7555_v51 = vadd.f32 %v3731_v60, %v3601_v15  ;;  %5545 = vmatmul.msk.bf16.gmra.mxu1 %vm1409_vm1, %v7424_v2  ;;  %v4227_v58 = vpop.f32.mrf.mxu2 }
 0x3c7   : > { %v4039_v0 = vadd.f32 %v3999_v50, %v3877_v54  ;;  %v4282_v36 = vrot.slane %v4227_v58, 1  ;;  %v7584_v50 = vld [vmem:[%s7800_s9] ss:$0 sm:$0xff]  ;;  %v3880_v54 = vadd.f32 %v3870_v13, %v7487_v39 }
 0x3c9   : > { %v4283_v24 = vsel %vm1727_vm3, %v4281_v37, %v4282_v36  ;;  %v4321_v43 = vsel %vm1727_vm3, %v4282_v36, 0.0  ;;  %v3836_v36 = vrot.slane %v7566_v45, 1 }
 0x3cb   : > { %v3584_v32 = vpop.f32.mrf.mxu1 }
 0x3cc   : > { %v3602_v3 = vadd.f32 %v3584_v32, %v7449_v26  ;;  %v3869_v26 = vsel %vm1727_vm3, %v3830_v47, 0.0  ;;  %v7608_v45 = vpop.f32.mrf.mxu3 }
 0x3cd   : > { %v3878_v20 = vadd.f32 %v3869_v26, %v7475_v46 }
 0x3ce   : > { %v7562_v41 = vadd.f32 %v3707_v55, %v3602_v3  ;;  %v4230_v30 = vpop.f32.mrf.mxu2  ;;  %v4011_v3 = vpop.f32.mrf.mxu0 }
 0x3cf   : > { %v4040_v28 = vadd.f32 %v4001_v57, %v3878_v20  ;;  %v4284_v21 = vrot.slane %v4230_v30, 1 }
 0x3d3   : > { %v4080_v5 = vpop.f32.mrf.mxu1 }
 0x3d4   : > { %v4136_v2 = vrot.slane %v4080_v5, 7 }
 0x3d6   : > { %v4176_v6 = vsel %vm1580_vm2, 0.0, %v4136_v2  ;;  %v4232_v42 = vpop.f32.mrf.mxu2  ;;  %v4014_v27 = vpop.f32.mrf.mxu0 }
 0x3d7   : > { %v4184_v18 = vadd.f32 %v4176_v6, %v4039_v0  ;;  %v4285_v62 = vrot.slane %v4232_v42, 1  ;;  %v4042_v42 = vadd.f32 %v4006_v12, %v3880_v54 }
 0x3d9   : > { %v4329_v19 = vadd.f32 %v4283_v24, %v4184_v18  ;;  %v3835_v18 = vrot.slane %v7559_v31, 1  ;;  %v4322_v24 = vsel %vm1727_vm3, %v4285_v62, 0.0 }
 0x3db   : > { %v4082_v38 = vpop.f32.mrf.mxu1  ;;  %v4349_v46 = vmul.f32 %v7575_v33, %v4329_v19  ;;  %v3837_v20 = vsel %vm1727_vm3, %v3835_v18, %v3836_v36 }
 0x3dc   : > { %v4137_v11 = vrot.slane %v4082_v38, 7  ;;  %v3881_v19 = vadd.f32 %v3837_v20, %v7491_v40 }
 0x3dd   : > { %v4369_v55 = vadd.f32 %v7584_v50, %v4349_v46 }
 0x3de   : > { %v4138_v23 = vsel %vm1580_vm2, %v4136_v2, %v4137_v11  ;;  %v4235_v44 = vpop.f32.mrf.mxu2  ;;  %v4286_v2 = vsel %vm1727_vm3, %v4284_v21, %v4285_v62  ;;  %v4043_v59 = vadd.f32 %v4009_v4, %v3881_v19  ;;  %v4016_v4 = vpop.f32.mrf.mxu0  ;;  %v3839_v62 = vrot.slane %v7594_v14, 1 }
 0x3df   : > { %v4185_v48 = vadd.f32 %v4138_v23, %v4040_v28  ;;  %v4385_v58 = vmax.f32 %v4369_v55, 0.0  ;;  %v4287_v55 = vrot.slane %v4235_v44, 1 }
 0x3e1   : > { %v4330_v22 = vadd.f32 %v4321_v43, %v4185_v48 }
 0x3e3   : > { %v4350_v49 = vmul.f32 %v7575_v33, %v4330_v22  ;;  %v4085_v63 = vpop.f32.mrf.mxu1  ;;  %v3871_v22 = vsel %vm1727_vm3, %v3836_v36, 0.0 }
 0x3e4   : > { %v4139_v1 = vrot.slane %v4085_v63, 7 }
 0x3e5   : > { %v4370_v57 = vadd.f32 %v7584_v50, %v4350_v49  ;;  %v3882_v49 = vadd.f32 %v3871_v22, %v7499_v10 }
 0x3e6   : > { %v4177_v15 = vsel %vm1580_vm2, 0.0, %v4139_v1  ;;  %v4237_v60 = vpop.f32.mrf.mxu2 }
 0x3e7   : > { %v4386_v32 = vmax.f32 %v4370_v57, 0.0  ;;  %v4186_v47 = vadd.f32 %v4177_v15, %v4041_v8  ;;  %v4288_v46 = vrot.slane %v4237_v60, 1  ;;  %v3795_v15 = vpop.f32.mrf.mxu3 }
 0x3e9   : > { %v4401_v5 = vpack.c.bf16 %v4386_v32, %v4385_v58  ;;  %v4331_v0 = vadd.f32 %v4286_v2, %v4186_v47  ;;  %v4044_v58 = vadd.f32 %v4011_v3, %v3882_v49  ;;  %v3838_v32 = vrot.slane %v7577_v29, 1 }
 0x3ea   : > { %v4323_v54 = vsel %vm1727_vm3, %v4288_v46, 0.0 }
 0x3eb   : > { %v4087_v17 = vpop.f32.mrf.mxu1  ;;  %5574 = vmatmul.msk.bf16.vlgmr.msrb.gmra.mxu3 %vm1409_vm1, %v4401_v5  ;;  %v4351_v30 = vmul.f32 %v7575_v33, %v4331_v0  ;;  %v3840_v21 = vsel %vm1727_vm3, %v3838_v32, %v3839_v62 }
 0x3ec   : > { %v4140_v6 = vrot.slane %v4087_v17, 7  ;;  %v3883_v5 = vadd.f32 %v3840_v21, %v7503_v53  ;;  %v3872_v53 = vsel %vm1727_vm3, %v3839_v62, 0.0 }
 0x3ed   : > { %v4371_v12 = vadd.f32 %v7584_v50, %v4351_v30 }
 0x3ee   : > { %v4141_v26 = vsel %vm1580_vm2, %v4139_v1, %v4140_v6  ;;  %v7602_v37 = vpop.f32.mrf.mxu2  ;;  %v4289_v1 = vsel %vm1727_vm3, %v4287_v55, %v4288_v46  ;;  %v4045_v29 = vadd.f32 %v4014_v27, %v3883_v5  ;;  %v4019_v6 = vpop.f32.mrf.mxu0  ;;  %v3841_v46 = vrot.slane %v7608_v45, 1 }
 0x3ef   : > { %v4187_v39 = vadd.f32 %v4141_v26, %v4042_v42  ;;  %v4387_v61 = vmax.f32 %v4371_v12, 0.0  ;;  %v3798_v42 = vpop.f32.mrf.mxu3  ;;  %v4290_v19 = vrot.slane %v7602_v37, 1 }
 0x3f1   : > { %v4332_v38 = vadd.f32 %v4322_v24, %v4187_v39 }
 0x3f3   : > { %v4352_v31 = vmul.f32 %v7575_v33, %v4332_v38  ;;  %v4090_v11 = vpop.f32.mrf.mxu1  ;;  %v3884_v38 = vadd.f32 %v3872_v53, %v7514_v9 }
 0x3f4   : > { %v4142_v28 = vrot.slane %v4090_v11, 7 }
 0x3f5   : > { %v4372_v23 = vadd.f32 %v7584_v50, %v4352_v31 }
 0x3f6   : > { %v4178_v48 = vsel %vm1580_vm2, 0.0, %v4142_v28  ;;  %v4242_v25 = vpop.f32.mrf.mxu2  ;;  %v4021_v37 = vpop.f32.mrf.mxu0 }
 0x3f7   : > { %v4188_v43 = vadd.f32 %v4178_v48, %v4043_v59  ;;  %v4388_v40 = vmax.f32 %v4372_v23, 0.0  ;;  %v4291_v18 = vrot.slane %v4242_v25, 1  ;;  %v4046_v23 = vadd.f32 %v4016_v4, %v3884_v38 }
 0x3f9   : > { %v4402_v63 = vpack.c.bf16 %v4388_v40, %v4387_v61  ;;  %v4333_v57 = vadd.f32 %v4289_v1, %v4188_v43  ;;  %v4292_v27 = vsel %vm1727_vm3, %v4290_v19, %v4291_v18  ;;  %v3800_v61 = vpop.f32.mrf.mxu3  ;;  %v4324_v40 = vsel %vm1727_vm3, %v4291_v18, 0.0 }
 0x3fb   : > { %v4092_v8 = vpop.f32.mrf.mxu1  ;;  %5575 = vmatmul.msk.bf16.gmra.mxu3 %vm1409_vm1, %v4402_v63  ;;  %v4353_v10 = vmul.f32 %v7575_v33, %v4333_v57 }
 0x3fc   : > { %v4143_v60 = vrot.slane %v4092_v8, 7 }
 0x3fd   : > { %v4373_v14 = vadd.f32 %v7584_v50, %v4353_v10 }
 0x3fe   : > { %v4144_v47 = vsel %vm1580_vm2, %v4142_v28, %v4143_v60  ;;  %v4245_v44 = vpop.f32.mrf.mxu2  ;;  %v3842_v28 = vrot.slane %v3795_v15, 1  ;;  %v4024_v21 = vpop.f32.mrf.mxu0 }
 0x3ff   : > { %v4189_v13 = vadd.f32 %v4144_v47, %v4044_v58  ;;  %v4389_v20 = vmax.f32 %v4373_v14, 0.0 }
 0x400   : > { %v3843_v9 = vsel %vm1727_vm3, %v3841_v46, %v3842_v28  ;;  %v3873_v47 = vsel %vm1727_vm3, %v3842_v28, 0.0 }
 0x401   : > { %v4334_v2 = vadd.f32 %v4323_v54, %v4189_v13  ;;  %v3885_v22 = vadd.f32 %v3843_v9, %v7521_v16  ;;  %v4293_v16 = vrot.slane %v4245_v44, 1  ;;  %v3886_v10 = vadd.f32 %v3873_v47, %v7529_v56  ;;  %v3803_v54 = vpop.f32.mrf.mxu3 }
 0x403   : > { %v4354_v0 = vmul.f32 %v7575_v33, %v4334_v2  ;;  %v4095_v3 = vpop.f32.mrf.mxu1  ;;  %v4047_v8 = vadd.f32 %v4019_v6, %v3885_v22 }
 0x404   : > { %v4145_v17 = vrot.slane %v4095_v3, 7  ;;  %v3845_v3 = vrot.slane %v3800_v61, 1 }
 0x405   : > { %v4374_v36 = vadd.f32 %v7584_v50, %v4354_v0 }
 0x406   : > { %v4179_v26 = vsel %vm1580_vm2, 0.0, %v4145_v17  ;;  %v4247_v39 = vpop.f32.mrf.mxu2  ;;  %v4026_v19 = vpop.f32.mrf.mxu0 }
 0x407   : > { %v4190_v30 = vadd.f32 %v4179_v26, %v4045_v29  ;;  %v4390_v24 = vmax.f32 %v4374_v36, 0.0  ;;  %v4294_v62 = vrot.slane %v4247_v39, 1  ;;  %v4048_v29 = vadd.f32 %v4021_v37, %v3886_v10 }
 0x408   : > { %v3844_v36 = vrot.slane %v3798_v42, 1 }
 0x409   : > { %v4403_v12 = vpack.c.bf16 %v4390_v24, %v4389_v20  ;;  %v4335_v31 = vadd.f32 %v4292_v27, %v4190_v30  ;;  %v4295_v5 = vsel %vm1727_vm3, %v4293_v16, %v4294_v62  ;;  %v4325_v26 = vsel %vm1727_vm3, %v4294_v62, 0.0  ;;  %v3805_v42 = vpop.f32.mrf.mxu3 }
 0x40a   : > { %v3846_v56 = vsel %vm1727_vm3, %v3844_v36, %v3845_v3 }
 0x40b   : > { %v4097_v11 = vpop.f32.mrf.mxu1  ;;  %5576 = vmatmul.msk.bf16.gmra.mxu3 %vm1409_vm1, %v4403_v12  ;;  %v4355_v25 = vmul.f32 %v7575_v33, %v4335_v31  ;;  %v3887_v30 = vadd.f32 %v3846_v56, %v7533_v34  ;;  %v3874_v34 = vsel %vm1727_vm3, %v3845_v3, 0.0 }
 0x40c   : > { %v4146_v59 = vrot.slane %v4097_v11, 7 }
 0x40d   : > { %v4375_v63 = vadd.f32 %v7584_v50, %v4355_v25  ;;  %v4049_v27 = vadd.f32 %v4024_v21, %v3887_v30  ;;  %v3888_v25 = vadd.f32 %v3874_v34, %v7541_v52 }
 0x40e   : > { %v4147_v48 = vsel %vm1580_vm2, %v4145_v17, %v4146_v59  ;;  %v4250_v49 = vpop.f32.mrf.mxu2 }
 0x40f   : > { %v4191_v43 = vadd.f32 %v4147_v48, %v4046_v23  ;;  %v4391_v58 = vmax.f32 %v4375_v63, 0.0  ;;  %v4296_v48 = vrot.slane %v4250_v49, 1  ;;  %v4029_v63 = vpop.f32.mrf.mxu0 }
 0x411   : > { %v4336_v55 = vadd.f32 %v4324_v40, %v4191_v43  ;;  %v3848_v40 = vrot.slane %v3805_v42, 1 }
 0x413   : > { %v4356_v1 = vmul.f32 %v7575_v33, %v4336_v55  ;;  %v4100_v45 = vpop.f32.mrf.mxu1  ;;  %v4050_v55 = vadd.f32 %v4026_v19, %v3888_v25 }
 0x414   : > { %v4148_v57 = vrot.slane %v4100_v45, 7 }
 0x415   : > { %v4376_v4 = vadd.f32 %v7584_v50, %v4356_v1  ;;  %v3847_v1 = vrot.slane %v3803_v54, 1 }
 0x416   : > { %v4180_v15 = vsel %vm1580_vm2, 0.0, %v4148_v57  ;;  %v4252_v14 = vpop.f32.mrf.mxu2 }
 0x417   : > { %v4192_v60 = vadd.f32 %v4180_v15, %v4047_v8  ;;  %v4392_v32 = vmax.f32 %v4376_v4, 0.0  ;;  %v4297_v11 = vrot.slane %v4252_v14, 1  ;;  %v3849_v52 = vsel %vm1727_vm3, %v3847_v1, %v3848_v40  ;;  %v4031_v3 = vpop.f32.mrf.mxu0 }
 0x418   : > { %v3889_v15 = vadd.f32 %v3849_v52, %v7545_v7  ;;  %v3875_v7 = vsel %vm1727_vm3, %v3848_v40, 0.0 }
 0x419   : > { %v4404_v13 = vpack.c.bf16 %v4392_v32, %v4391_v58  ;;  %v4337_v2 = vadd.f32 %v4295_v5, %v4192_v60  ;;  %v4298_v37 = vsel %vm1727_vm3, %v4296_v48, %v4297_v11  ;;  %v4326_v62 = vsel %vm1727_vm3, %v4297_v11, 0.0 }
 0x41a   : > { %v4051_v10 = vadd.f32 %v4029_v63, %v3889_v15  ;;  %v3890_v36 = vadd.f32 %v3875_v7, %v7551_v35 }
 0x41b   : > { %v4102_v0 = vpop.f32.mrf.mxu1  ;;  %5577 = vmatmul.msk.bf16.gmra.mxu3 %vm1409_vm1, %v4404_v13  ;;  %v4357_v44 = vmul.f32 %v7575_v33, %v4337_v2 }
 0x41c   : > { %v4149_v17 = vrot.slane %v4102_v0, 7 }
 0x41d   : > { %v4377_v20 = vadd.f32 %v7584_v50, %v4357_v44 }
 0x41e   : > { %v4150_v6 = vsel %vm1580_vm2, %v4148_v57, %v4149_v17  ;;  %v4255_v12 = vpop.f32.mrf.mxu2  ;;  %v3808_v57 = vpop.f32.mrf.mxu3 }
 0x41f   : > { %v4193_v18 = vadd.f32 %v4150_v6, %v4048_v29  ;;  %v4393_v23 = vmax.f32 %v4377_v20, 0.0  ;;  %v4299_v17 = vrot.slane %v4255_v12, 1  ;;  %v3850_v20 = vrot.slane %v3808_v57, 1  ;;  %v4034_v42 = vpop.f32.mrf.mxu0 }
 0x421   : > { %v4338_v39 = vadd.f32 %v4325_v26, %v4193_v18 }
 0x423   : > { %v4358_v24 = vmul.f32 %v7575_v33, %v4338_v39  ;;  %v4105_v53 = vpop.f32.mrf.mxu1  ;;  %v4052_v39 = vadd.f32 %v4031_v3, %v3890_v36 }
 0x424   : > { %v4151_v38 = vrot.slane %v4105_v53, 7 }
 0x425   : > { %v4378_v31 = vadd.f32 %v7584_v50, %v4358_v24 }
 0x426   : > { %v4181_v28 = vsel %vm1580_vm2, 0.0, %v4151_v38  ;;  %v4257_v49 = vpop.f32.mrf.mxu2  ;;  %v3810_v29 = vpop.f32.mrf.mxu3 }
 0x427   : > { %v4194_v59 = vadd.f32 %v4181_v28, %v4049_v27  ;;  %v4394_v46 = vmax.f32 %v4378_v31, 0.0  ;;  %v4300_v21 = vrot.slane %v4257_v49, 1  ;;  %v3851_v26 = vrot.slane %v3810_v29, 1  ;;  %v4036_v63 = vpop.f32.mrf.mxu0 }
 0x429   : > { %v4405_v43 = vpack.c.bf16 %v4394_v46, %v4393_v23  ;;  %v4339_v9 = vadd.f32 %v4298_v37, %v4194_v59  ;;  %v4301_v44 = vsel %vm1727_vm3, %v4299_v17, %v4300_v21  ;;  %v4327_v35 = vsel %vm1727_vm3, %v4300_v21, 0.0 }
 0x42b   : > { %v4107_v61 = vpop.f32.mrf.mxu1  ;;  %5578 = vmatmul.msk.bf16.gmra.mxu3 %vm1409_vm1, %v4405_v43  ;;  %v4359_v8 = vmul.f32 %v7575_v33, %v4339_v9 }
 0x42c   : > { %v4152_v22 = vrot.slane %v4107_v61, 7 }
 0x42d   : > { %v4379_v58 = vadd.f32 %v7584_v50, %v4359_v8 }
 0x42e   : > { %v4153_v45 = vsel %vm1580_vm2, %v4151_v38, %v4152_v22  ;;  %v4260_v0 = vpop.f32.mrf.mxu2  ;;  %v3852_v38 = vsel %vm1727_vm3, %v3850_v20, %v3851_v26 }
 0x42f   : > { %v4195_v4 = vadd.f32 %v4153_v45, %v4050_v55  ;;  %v4395_v2 = vmax.f32 %v4379_v58, 0.0  ;;  %v3891_v12 = vadd.f32 %v3852_v38, %v7555_v51  ;;  %v4302_v23 = vrot.slane %v4260_v0, 1 }
 0x430   : > { %v3876_v51 = vsel %vm1727_vm3, %v3851_v26, 0.0 }
 0x431   : > { %v4340_v60 = vadd.f32 %v4326_v62, %v4195_v4  ;;  %v4053_v48 = vadd.f32 %v4034_v42, %v3891_v12  ;;  %v3892_v22 = vadd.f32 %v3876_v51, %v7562_v41 }
 0x433   : > { %v4360_v32 = vmul.f32 %v7575_v33, %v4340_v60  ;;  %v4110_v47 = vpop.f32.mrf.mxu1  ;;  %v4054_v8 = vadd.f32 %v4036_v63, %v3892_v22  ;;  %v5923_v22 = vld [vmem:[%s6264_s16 + $0x58] sm:$0xff]  }
 0x434   : > { %v4154_v16 = vrot.slane %v4110_v47, 7  ;;  %v5848_v63 = vunpack.c.l.bf16 %v5923_v22 }
 0x435   : > { %v4380_v13 = vadd.f32 %v7584_v50, %v4360_v32 }
 0x436   : > { %v4182_v54 = vsel %vm1580_vm2, 0.0, %v4154_v16  ;;  %v4262_v31 = vpop.f32.mrf.mxu2 }
 0x437   : > { %v4196_v5 = vadd.f32 %v4182_v54, %v4051_v10  ;;  %v4396_v14 = vmax.f32 %v4380_v13, 0.0  ;;  %v4303_v34 = vrot.slane %v4262_v31, 1  ;;  %v7697_v10 = vld [vmem:[%s7801_s10] ss:$0 sm:$0xff] }
 0x439   : > { %v4406_v6 = vpack.c.bf16 %v4396_v14, %v4395_v2  ;;  %v4341_v18 = vadd.f32 %v4301_v44, %v4196_v5  ;;  %v4304_v40 = vsel %vm1727_vm3, %v4302_v23, %v4303_v34  ;;  %v4328_v62 = vsel %vm1727_vm3, %v4303_v34, 0.0 }
 0x43b   : > { %v4112_v56 = vpop.f32.mrf.mxu1  ;;  %5579 = vmatmul.msk.bf16.gmra.mxu3 %vm1409_vm1, %v4406_v6  ;;  %v4361_v53 = vmul.f32 %v7575_v33, %v4341_v18 }
 0x43c   : > { %v4155_v30 = vrot.slane %v4112_v56, 7  ;;  %v5921_v56 = vld [vmem:[%s6264_s16 + $0x48] sm:$0xff]  }
 0x43d   : > { %v4381_v11 = vadd.f32 %v7584_v50, %v4361_v53 }
 0x43e   : > { %v4156_v24 = vsel %vm1580_vm2, %v4154_v16, %v4155_v30  ;;  %v5840_v30 = vunpack.c.l.bf16 %v5921_v56 }
 0x43f   : > { %v4197_v19 = vadd.f32 %v4156_v24, %v4052_v39  ;;  %v4397_v9 = vmax.f32 %v4381_v11, 0.0  ;;  %v5841_v24 = vunpack.c.h.bf16 %v5921_v56  ;;  %v5922_v11 = vld [vmem:[%s6264_s16 + $0x50] sm:$0xff]  }
 0x440   : > { %v5845_v34 = vunpack.c.h.bf16 %v5922_v11 }
 0x441   : > { %v4342_v27 = vadd.f32 %v4327_v35, %v4197_v19 }
 0x443   : > { %v4362_v28 = vmul.f32 %v7575_v33, %v4342_v27  ;;  %v4115_v59 = vpop.f32.mrf.mxu1 }
 0x444   : > { %v4157_v46 = vrot.slane %v4115_v59, 7  ;;  %v5844_v59 = vunpack.c.l.bf16 %v5922_v11 }
 0x445   : > { %v4382_v25 = vadd.f32 %v7584_v50, %v4362_v28 }
 0x446   : > { %v4183_v43 = vsel %vm1580_vm2, 0.0, %v4157_v46 }
 0x447   : > { %v4198_v37 = vadd.f32 %v4183_v43, %v4053_v48  ;;  %v4398_v61 = vmax.f32 %v4382_v25, 0.0 }
 0x449   : > { %v4407_v55 = vpack.c.bf16 %v4398_v61, %v4397_v9  ;;  %v4343_v1 = vadd.f32 %v4304_v40, %v4198_v37 }
 0x44b   : > { %v4117_v45 = vpop.f32.mrf.mxu1  ;;  %5580 = vmatmul.msk.bf16.gmra.mxu3 %vm1409_vm1, %v4407_v55  ;;  %v4363_v4 = vmul.f32 %v7575_v33, %v4343_v1 }
 0x44c   : > { %v4158_v57 = vrot.slane %v4117_v45, 7 }
 0x44d   : > { %v4383_v60 = vadd.f32 %v7584_v50, %v4363_v4 }
 0x44e   : > { %v4159_v49 = vsel %vm1580_vm2, %v4157_v46, %v4158_v57  ;;  %v5849_v57 = vunpack.c.h.bf16 %v5923_v22 }
 0x44f   : > { %v4199_v52 = vadd.f32 %v4159_v49, %v4054_v8  ;;  %v4399_v32 = vmax.f32 %v4383_v60, 0.0 }
 0x451   : > { %v4344_v15 = vadd.f32 %v4328_v62, %v4199_v52 }
 0x453   : > { %v4364_v41 = vmul.f32 %v7575_v33, %v4344_v15  ;;  %v7703_v33 = vld [vmem:[%s7802_s11] ss:$0 sm:$0xff] }
 0x455   : > { %v4384_v58 = vadd.f32 %v7584_v50, %v4364_v41  ;;  %v5920_v50 = vld [vmem:[%s6264_s16 + $0x40] sm:$0xff]  }
 0x456   : > { %v5836_v5 = vunpack.c.l.bf16 %v5920_v50  ;;  %v5837_v0 = vunpack.c.h.bf16 %v5920_v50 }
 0x457   : > { %v4400_v47 = vmax.f32 %v4384_v58, 0.0  ;;  %v5924_v58 = vld [vmem:[%s6264_s16 + $0x60] sm:$0xff]  }
 0x459   : > { %v4408_v16 = vpack.c.bf16 %v4400_v47, %v4399_v32  ;;  %v5852_v47 = vunpack.c.l.bf16 %v5924_v58 }
 0x45b   : > { %5581 = vmatmul.msk.bf16.gmra.mxu3 %vm1409_vm1, %v4408_v16 }
 0x46e   : > { %v4458_v13 = vpop.f32.mrf.mxu3 }
 0x46f   : > { %v4502_v21 = vmul.f32 %v7697_v10, %v4458_v13 }
 0x471   : > { %v4522_v54 = vadd.f32 %v7703_v33, %v4502_v21  ;;  %v5853_v21 = vunpack.c.h.bf16 %v5924_v58 }
 0x473   : > { %v4570_v3 = vadd.f32 %v5836_v5, %v4522_v54 }
 0x475   : > { %v4586_v29 = vmax.f32 %v4570_v3, 0.0 }
 0x476   : > { %v4460_v2 = vpop.f32.mrf.mxu3 }
 0x477   : > { %v4503_v14 = vmul.f32 %v7697_v10, %v4460_v2 }
 0x479   : > { %v4523_v7 = vadd.f32 %v7703_v33, %v4503_v14 }
 0x47b   : > { %v4571_v17 = vadd.f32 %v5837_v0, %v4523_v7 }
 0x47d   : > { %v4587_v36 = vmax.f32 %v4571_v17, 0.0  ;;  %v5925_v17 = vld [vmem:[%s6264_s16 + $0x68] sm:$0xff]  }
 0x47e   : > { %v4463_v6 = vpop.f32.mrf.mxu3 }
 0x47f   : > { %v5869_v44 = vpack.c.bf16 %v4587_v36, %v4586_v29  ;;  %v4504_v18 = vmul.f32 %v7697_v10, %v4463_v6  ;;  %v5856_v36 = vunpack.c.l.bf16 %v5925_v17 }
 0x481   : > { %5928 = vst [vmem:[%s7317_s27 + $0x40] sm:$0xff] %v5869_v44   ;;  %v4524_v26 = vadd.f32 %v7703_v33, %v4504_v18  ;;  %v5857_v18 = vunpack.c.h.bf16 %v5925_v17 }
 0x483   : > { %v4572_v53 = vadd.f32 %v5840_v30, %v4524_v26 }
 0x485   : > { %v4588_v42 = vmax.f32 %v4572_v53, 0.0 }
 0x486   : > { %v4465_v39 = vpop.f32.mrf.mxu3 }
 0x487   : > { %v4505_v20 = vmul.f32 %v7697_v10, %v4465_v39 }
 0x489   : > { %v4525_v19 = vadd.f32 %v7703_v33, %v4505_v20 }
 0x48b   : > { %v4573_v38 = vadd.f32 %v5841_v24, %v4525_v19 }
 0x48d   : > { %v4589_v35 = vmax.f32 %v4573_v38, 0.0  ;;  %v5926_v38 = vld [vmem:[%s6264_s16 + $0x70] sm:$0xff]  }
 0x48e   : > { %v4468_v12 = vpop.f32.mrf.mxu3 }
 0x48f   : > { %v5874_v27 = vpack.c.bf16 %v4589_v35, %v4588_v42  ;;  %v4506_v31 = vmul.f32 %v7697_v10, %v4468_v12  ;;  %v5860_v35 = vunpack.c.l.bf16 %v5926_v38 }
 0x491   : > { %5929 = vst [vmem:[%s7317_s27 + $0x48] sm:$0xff] %v5874_v27   ;;  %v4526_v28 = vadd.f32 %v7703_v33, %v4506_v31  ;;  %v5861_v31 = vunpack.c.h.bf16 %v5926_v38 }
 0x493   : > { %v4574_v48 = vadd.f32 %v5844_v59, %v4526_v28 }
 0x495   : > { %v4590_v37 = vmax.f32 %v4574_v48, 0.0 }
 0x496   : > { %v4470_v23 = vpop.f32.mrf.mxu3 }
 0x497   : > { %v4507_v46 = vmul.f32 %v7697_v10, %v4470_v23 }
 0x499   : > { %v4527_v25 = vadd.f32 %v7703_v33, %v4507_v46 }
 0x49b   : > { %v4575_v43 = vadd.f32 %v5845_v34, %v4527_v25 }
 0x49d   : > { %v4591_v9 = vmax.f32 %v4575_v43, 0.0  ;;  %v5927_v43 = vld [vmem:[%s6264_s16 + $0x78] sm:$0xff]   ;;  %s4651_s16 = sshll.u32 %s7317_s27, 4  ;;  %s4652_s16 = int_to_ptr.vmem [resolvable:$true] %s4651_s16 }
 0x49e   : > { %v4473_v61 = vpop.f32.mrf.mxu3 }
 0x49f   : > { %v5879_v51 = vpack.c.bf16 %v4591_v9, %v4590_v37  ;;  %v4508_v40 = vmul.f32 %v7697_v10, %v4473_v61  ;;  %v5864_v9 = vunpack.c.l.bf16 %v5927_v43 }
 0x4a1   : > { %5930 = vst [vmem:[%s7317_s27 + $0x50] sm:$0xff] %v5879_v51   ;;  %v4528_v55 = vadd.f32 %v7703_v33, %v4508_v40  ;;  %v5865_v40 = vunpack.c.h.bf16 %v5927_v43 }
 0x4a3   : > { %v4576_v8 = vadd.f32 %v5848_v63, %v4528_v55 }
 0x4a5   : > { %v4592_v52 = vmax.f32 %v4576_v8, 0.0 }
 0x4a6   : > { %v4475_v1 = vpop.f32.mrf.mxu3 }
 0x4a7   : > { %v4509_v45 = vmul.f32 %v7697_v10, %v4475_v1 }
 0x4a9   : > { %v4529_v49 = vadd.f32 %v7703_v33, %v4509_v45 }
 0x4ab   : > { %v4577_v4 = vadd.f32 %v5849_v57, %v4529_v49 }
 0x4ad   : > { %v4593_v62 = vmax.f32 %v4577_v4, 0.0 }
 0x4ae   : > { %v4478_v15 = vpop.f32.mrf.mxu3 }
 0x4af   : > { %v5884_v60 = vpack.c.bf16 %v4593_v62, %v4592_v52  ;;  %v4510_v41 = vmul.f32 %v7697_v10, %v4478_v15 }
 0x4b1   : > { %5931 = vst [vmem:[%s7317_s27 + $0x58] sm:$0xff] %v5884_v60   ;;  %v4530_v32 = vadd.f32 %v7703_v33, %v4510_v41 }
 0x4b3   : > { %v4578_v50 = vadd.f32 %v5852_v47, %v4530_v32 }
 0x4b5   : > { %v4594_v2 = vmax.f32 %v4578_v50, 0.0 }
 0x4b6   : > { %v4480_v16 = vpop.f32.mrf.mxu3 }
 0x4b7   : > { %v4511_v13 = vmul.f32 %v7697_v10, %v4480_v16 }
 0x4b9   : > { %v4531_v54 = vadd.f32 %v7703_v33, %v4511_v13 }
 0x4bb   : > { %v4579_v5 = vadd.f32 %v5853_v21, %v4531_v54 }
 0x4bd   : > { %v4595_v14 = vmax.f32 %v4579_v5, 0.0 }
 0x4be   : > { %v4483_v0 = vpop.f32.mrf.mxu3 }
 0x4bf   : > { %v5889_v3 = vpack.c.bf16 %v4595_v14, %v4594_v2  ;;  %v4512_v7 = vmul.f32 %v7697_v10, %v4483_v0 }
 0x4c1   : > { %5932 = vst [vmem:[%s7317_s27 + $0x60] sm:$0xff] %v5889_v3   ;;  %v4532_v29 = vadd.f32 %v7703_v33, %v4512_v7 }
 0x4c3   : > { %v4580_v56 = vadd.f32 %v5856_v36, %v4532_v29 }
 0x4c5   : > { %v4596_v39 = vmax.f32 %v4580_v56, 0.0 }
 0x4c6   : > { %v4485_v6 = vpop.f32.mrf.mxu3 }
 0x4c7   : > { %v4513_v44 = vmul.f32 %v7697_v10, %v4485_v6 }
 0x4c9   : > { %v4533_v26 = vadd.f32 %v7703_v33, %v4513_v44 }
 0x4cb   : > { %v4581_v30 = vadd.f32 %v5857_v18, %v4533_v26 }
 0x4cd   : > { %v4597_v20 = vmax.f32 %v4581_v30, 0.0 }
 0x4ce   : > { %v4488_v24 = vpop.f32.mrf.mxu3 }
 0x4cf   : > { %v5894_v53 = vpack.c.bf16 %v4597_v20, %v4596_v39  ;;  %v4514_v19 = vmul.f32 %v7697_v10, %v4488_v24 }
 0x4d1   : > { %5933 = vst [vmem:[%s7317_s27 + $0x68] sm:$0xff] %v5894_v53   ;;  %v4534_v42 = vadd.f32 %v7703_v33, %v4514_v19 }
 0x4d3   : > { %v4582_v11 = vadd.f32 %v5860_v35, %v4534_v42 }
 0x4d5   : > { %v4598_v23 = vmax.f32 %v4582_v11, 0.0 }
 0x4d6   : > { %v4490_v12 = vpop.f32.mrf.mxu3 }
 0x4d7   : > { %v4515_v27 = vmul.f32 %v7697_v10, %v4490_v12 }
 0x4d9   : > { %v4535_v28 = vadd.f32 %v7703_v33, %v4515_v27 }
 0x4db   : > { %v4583_v59 = vadd.f32 %v5861_v31, %v4535_v28 }
 0x4dd   : > { %v4599_v46 = vmax.f32 %v4583_v59, 0.0 }
 0x4de   : > { %v4493_v34 = vpop.f32.mrf.mxu3 }
 0x4df   : > { %v5899_v48 = vpack.c.bf16 %v4599_v46, %v4598_v23  ;;  %v4516_v25 = vmul.f32 %v7697_v10, %v4493_v34 }
 0x4e1   : > { %5934 = vst [vmem:[%s7317_s27 + $0x70] sm:$0xff] %v5899_v48   ;;  %v4536_v37 = vadd.f32 %v7703_v33, %v4516_v25 }
 0x4e3   : > { %v4584_v22 = vadd.f32 %v5864_v9, %v4536_v37 }
 0x4e5   : > { %v4600_v1 = vmax.f32 %v4584_v22, 0.0 }
 0x4e6   : > { %v4495_v61 = vpop.f32.mrf.mxu3 }
 0x4e7   : > { %v4517_v51 = vmul.f32 %v7697_v10, %v4495_v61 }
 0x4e9   : > { %v4537_v55 = vadd.f32 %v7703_v33, %v4517_v51 }
 0x4eb   : > { %v4585_v63 = vadd.f32 %v5865_v40, %v4537_v55 }
 0x4ed   : > { %v4601_v45 = vmax.f32 %v4585_v63, 0.0 }
 0x4ef   : > { %v5904_v57 = vpack.c.bf16 %v4601_v45, %v4600_v1 }
 0x4f1   : > { %5935 = vst [vmem:[%s7317_s27 + $0x78] sm:$0xff] %v5904_v57  }
 0x4f2   : > { %6038 = shalt.err (!%p6035_p5)
}
 0x4f3   : > { %s6092_s17 = smov 64   ;;  %s6093_s27 = smov 4  }
 0x4f4   : > { %5940 = dma.vmem_to_hbm [thread:$0]  (%p6199_p4), %s4652_s16, 2048, %s4654_s13, %s4636_s22, %s6092_s17, %s6092_s17, %s6093_s27  }
 0x4f5 PF: > { %p5946_p6 = scmp.ge.s32.totalorder %s6089_s24, 2  ;;  %s4668_s18 = sand.u32 1, %s6069_s19  }
 0x4f6   : > { %s4669_s25 = scalar_lea.sflag [#allocation4], %s4668_s18 }
 0x4f7   : > { %p5943_p7 = pnand %p5946_p6, %p6206_p8 }
 0x4f9   : > { %p5944_p9 = pneg %p5943_p7 }
 0x4fb   : > { %6064 = dma.done.wait (%p5944_p9), %s4669_s25, 2048  }
 0x4fc   : > { %6066 = vsyncadd (%p5944_p9), %s4669_s25, 4294965248  ;;  %s25_s24 = sadd.s32 1, %s6089_s24   ;;  %s7808_s29 = sld [smem:[#allocation6_spill]] }
 0x4fd   : > { %p22_p10 = scmp.ge.s32.totalorder %s25_s24, 4   ;;  %s7809_s19 = smov %s6073_s20 }
 0x4fe   : > { %s7810_s20 = smov %s6077_s21  ;;  %s7811_s21 = smov %s6212_s2 }
 0x4ff   : > { %s7812_s22 = smov %s6085_s23  ;;  %24 = sbr.rel (!%p22_p10) target bundleno = 4 (0x4), region = 142 }
 0x502   : > { %s7813_s23 = smov %s7808_s29 }
 0x504   :  { %4675 = vsyncpa [#allocation4], 1 }
 0x505   :  { %4677 = vsyncpa [#allocation4 + $0x1], 1 }

</bundles_post_ra>
